<compile_context>
chip_gen: v5e
topology: v5e:2x2
jax: 0.10.0
libtpu: 0.0.40
codegen_flags: <defaults>
</compile_context>

<pallas_src>
import jax
import jax.numpy as jnp
from jax.experimental import pallas as pl
from jax.experimental.pallas import tpu as pltpu

SELU_ALPHA = 1.6732632423543772848170429916717
SELU_SCALE = 1.0507009873554804934193349852946

# ---- index constants for the packed weight/bias stacks of the branch kernel ----
W_OH_BI, W_OH_SI, W_SELF_BI, W_SELF_SI = 0, 1, 2, 3
W_HOP1_A, W_HOP1_B, W_SELFC_A, W_SELFC_B = 4, 5, 6, 7
W_CONV0_S, W_CONV0_O, W_CONV1_S, W_CONV1_O, W_CONV2_S, W_CONV2_O = 8, 9, 10, 11, 12, 13
W_GRU_R_S, W_GRU_R_O, W_GRU_Z_S, W_GRU_Z_O, W_GRU_N_S, W_GRU_N_O = 14, 15, 16, 17, 18, 19

B_OH_BI, B_OH_SI, B_SELF_BI, B_SELF_SI = 0, 1, 2, 3
B_HOP1, B_SELFC, B_CONV = 4, 5, 6
B_GRU_R, B_GRU_Z, B_GRU_NI, B_GRU_NH = 7, 8, 9, 10


# ----------------------------- small helpers -----------------------------

def _selu(x):
    return SELU_SCALE * jnp.where(x > 0, x, SELU_ALPHA * (jnp.exp(x) - 1.0))


def _sigmoid(x):
    # numerically stable: the exp argument is always <= 0
    p = 1.0 / (1.0 + jnp.exp(-jnp.abs(x)))
    return jnp.where(x >= 0, p, 1.0 - p)


def _dot(a, b):
    return jnp.dot(a, b, preferred_element_type=jnp.float32)


def _spec(shape):
    # full-array single block (all tensors here are tiny; block == full array,
    # which satisfies the (8,128) rule because block dims equal the array dims)
    return pl.BlockSpec(shape, lambda i: (0,) * len(shape))


def _full_call(kernel, args, out_shapes):
    """pallas_call with every operand as a single full-array VMEM block."""
    return pl.pallas_call(
        kernel,
        out_shape=tuple(jax.ShapeDtypeStruct(s, jnp.float32) for s in out_shapes),
        grid=(1,),
        in_specs=[_spec(a.shape) for a in args],
        out_specs=tuple(_spec(s) for s in out_shapes),
        compiler_params=pltpu.CompilerParams(dimension_semantics=("arbitrary",)),
    )(*args)


# ----------------------------- fused branch kernel -----------------------------
# Computes, entirely in VMEM, for one branch (POI or USER):
#   one-hop NFM -> one-hop embed, self NFM -> self embed,
#   GKNN conv gate (first E channels only), single-step GRU gate,
#   neighbour aggregation and the final selu combine.

def _branch_kernel(oh_feat_ref, oh_id_ref, self_feat_ref, self_id_ref,
                   rep_ref, pool_ref, shifts_ref, w_ref, b_ref,
                   gcn_ref, self_nfm_ref):
    def W(i):
        return w_ref[i]

    def Bv(i):
        return b_ref[i:i + 1, :]

    def nfm(feat, wbi, bbi, wsi, bsi):
        s = jnp.sum(feat, axis=1)
        sq = jnp.sum(feat * feat, axis=1)
        deep = 0.5 * (s * s - sq)
        return _selu(_dot(deep, W(wbi)) + Bv(bbi)) + _selu(_dot(s, W(wsi)) + Bv(bsi))

    # ---- one-hop embeddings (rows are (batch, neighbour) flattened) ----
    oh_nfm = nfm(oh_feat_ref[...], W_OH_BI, B_OH_BI, W_OH_SI, B_OH_SI)          # (BS, E)
    oh_embed = _dot(oh_nfm, W(W_HOP1_A)) + _dot(oh_id_ref[...], W(W_HOP1_B)) + Bv(B_HOP1)

    # ---- self embedding ----
    self_nfm = nfm(self_feat_ref[...], W_SELF_BI, B_SELF_BI, W_SELF_SI, B_SELF_SI)   # (B, E)
    self_nfm_ref[...] = self_nfm
    self_embed = (_dot(self_nfm, W(W_SELFC_A)) + _dot(self_id_ref[...], W(W_SELFC_B))
                  + Bv(B_SELFC))                                                 # (B, E)

    # ---- GKNN gate: Conv1d(k=3, pad=1) over the neighbour axis, relu, sigmoid ----
    # Only the first E output channels are computed (the reference discards the rest).
    # Boundary shifts are expressed as 0/1 shift matrices (MXU), not in-kernel concat.
    self_rep = _dot(rep_ref[...], self_embed)                                    # (BS, E)

    def tap(ws, wo):
        return _dot(self_rep, W(ws)) + _dot(oh_embed, W(wo))

    t_prev = tap(W_CONV0_S, W_CONV0_O)
    t_cur = tap(W_CONV1_S, W_CONV1_O)
    t_next = tap(W_CONV2_S, W_CONV2_O)
    conv = _dot(shifts_ref[0], t_prev) + t_cur + _dot(shifts_ref[1], t_next) + Bv(B_CONV)
    gate = _sigmoid(jnp.maximum(conv, 0.0))                                      # (BS, E)

    # ---- neighbour aggregation ----
    pool = pool_ref[...]                                                         # (B, BS), 1/S
    mean_weighted = _dot(pool, oh_embed * gate)                                  # (B, E)
    mean_oh = _dot(pool, oh_embed)                                               # (B, E)

    # ---- single-step GRU (h0 = 0) followed by sigmoid ----
    def gru_lin(ws, wo, b):
        return _dot(self_embed, W(ws)) + _dot(mean_oh, W(wo)) + Bv(b)

    r = _sigmoid(gru_lin(W_GRU_R_S, W_GRU_R_O, B_GRU_R))
    z = _sigmoid(gru_lin(W_GRU_Z_S, W_GRU_Z_O, B_GRU_Z))
    n = jnp.tanh(gru_lin(W_GRU_N_S, W_GRU_N_O, B_GRU_NI) + r * Bv(B_GRU_NH))
    gru = _sigmoid((1.0 - z) * n)                                                # h' = (1-z)*n

    gcn_ref[...] = _selu((1.0 - gru) * self_embed + mean_weighted)


def run_branch(oh_feat, oh_id, self_feat, self_id, bw):
    bs, _, e = oh_feat.shape
    b = self_id.shape[0]
    s = bs // b
    # constant-folded under jit (shape-dependent only)
    rep = jnp.repeat(jnp.eye(b, dtype=jnp.float32), s, axis=0)                   # (BS, B)
    pool = rep.T / float(s)                                                      # (B, BS)
    idx = jnp.arange(bs)
    prev = (idx[:, None] - 1 == idx[None, :]) & (idx[:, None] % s != 0)
    nxt = (idx[:, None] + 1 == idx[None, :]) & (idx[:, None] % s != s - 1)
    shifts = jnp.stack([prev, nxt]).astype(jnp.float32)                          # (2, BS, BS)
    gcn, self_nfm = _full_call(
        _branch_kernel,
        [oh_feat, oh_id, self_feat, self_id, rep, pool, shifts, bw["W"], bw["B"]],
        [(b, e), (b, e)])
    return gcn, self_nfm


# ----------------------------- fused tail kernel -----------------------------
# aVGAEAN encoder (poi_vgaean, used for both z's as in the reference), both decoders,
# discriminator, recon/kl/adv losses and the prediction head, in one launch.

def _tail_kernel(psf_ref, ugcn_ref, pgcn_ref, uemb_ref, pemb_ref, eps_ref, bu_ref, bi_ref,
                 enc1_w, enc1_b, encmu_w, encmu_b, enclv_w, enclv_b,
                 pdec1_w, pdec1_b, pdec2_w, pdec2_b,
                 udec1_w, udec1_b, udec2_w, udec2_b,
                 disc1_w, disc1_b, disc2_w, disc2_b,
                 fc_wu, fc_wp, fc_b, miu,
                 pred_ref, recon_ref, kl_ref, adv_ref):
    def lin(x, w, b):
        return _dot(x, w[...]) + b[...]

    x = psf_ref[...]
    h = _selu(lin(x, enc1_w, enc1_b))
    mu = lin(h, encmu_w, encmu_b)
    logvar = lin(h, enclv_w, enclv_b)
    std = jnp.exp(0.5 * logvar)
    z_p = mu + eps_ref[0] * std
    z_u = mu + eps_ref[1] * std

    def dec(z, w1, b1, w2, b2):
        return lin(_selu(lin(z, w1, b1)), w2, b2)

    p_sample = dec(z_p, pdec1_w, pdec1_b, pdec2_w, pdec2_b)
    u_sample = dec(z_u, udec1_w, udec1_b, udec2_w, udec2_b)

    def fro(d):
        return jnp.sqrt(jnp.sum(jnp.sum(d * d, axis=1, keepdims=True), axis=0, keepdims=True))

    recon_ref[...] = fro(p_sample - pemb_ref[...]) + fro(u_sample - uemb_ref[...])

    # NOTE: the reference uses exp(z) (the *sample*), not exp(logvar) -- bug preserved.
    def kl_half(z):
        per = 0.5 * jnp.sum(jnp.exp(z) + mu * mu - 1.0 - logvar, axis=1, keepdims=True)
        return jnp.mean(per, axis=0, keepdims=True)

    kl_ref[...] = kl_half(z_p) + kl_half(z_u)

    def disc(z):
        return _sigmoid(lin(_selu(lin(z, disc1_w, disc1_b)), disc2_w, disc2_b))

    d_real = disc(z_u)
    d_fake = disc(z_p)
    adv_ref[...] = -(jnp.mean(jnp.log(d_real + 1e-8), axis=0, keepdims=True)
                     + jnp.mean(jnp.log(1.0 - d_fake + 1e-8), axis=0, keepdims=True))

    # ---- prediction head ----
    u = ugcn_ref[...]
    p = pgcn_ref[...]
    dot_up = jnp.sum(u * p, axis=-1, keepdims=True)
    un = jnp.sqrt(jnp.sum(u * u, axis=-1, keepdims=True))
    pn = jnp.sqrt(jnp.sum(p * p, axis=-1, keepdims=True))
    trust = dot_up * pl.reciprocal(un * pn + 1e-8, approx=True)
    fc = _dot(u, fc_wu[...]) + _dot(p, fc_wp[...]) + fc_b[...]
    pred_ref[...] = fc + dot_up + bu_ref[...] + bi_ref[...] + miu[...] + trust


def run_tail(poi_self_feature, user_gcn, poi_gcn, user_emb, poi_emb, eps, bu, bi, tw):
    b, _ = poi_self_feature.shape
    args = [poi_self_feature, user_gcn, poi_gcn, user_emb, poi_emb, eps, bu, bi,
            tw["enc1_w"], tw["enc1_b"], tw["enc_mu_w"], tw["enc_mu_b"],
            tw["enc_lv_w"], tw["enc_lv_b"],
            tw["pdec1_w"], tw["pdec1_b"], tw["pdec2_w"], tw["pdec2_b"],
            tw["udec1_w"], tw["udec1_b"], tw["udec2_w"], tw["udec2_b"],
            tw["disc1_w"], tw["disc1_b"], tw["disc2_w"], tw["disc2_b"],
            tw["fc_wu"], tw["fc_wp"], tw["fc_b"], tw["miu"]]
    return _full_call(_tail_kernel, args, [(b, 1), (1, 1), (1, 1), (1, 1)])


# ----------------------------- parameters -----------------------------

def init_params(key, sizes):
    E = sizes["embed_size"]
    latent = 30
    assert E == latent, "reference only type-checks when embed_size == latent_dim == 30"
    keys = iter(jax.random.split(key, 128))

    def nk():
        return next(keys)

    def xavier(shape):
        fan_out, fan_in = shape
        lim = (6.0 / (fan_in + fan_out)) ** 0.5
        return jax.random.uniform(nk(), shape, jnp.float32, -lim, lim)

    def normal05(shape):
        return 0.05 * jax.random.normal(nk(), shape, jnp.float32)

    def uniform_fan(shape, fan):
        lim = 1.0 / (fan ** 0.5)
        return jax.random.uniform(nk(), shape, jnp.float32, -lim, lim)

    p = {"E": E}
    p["user_embed"] = xavier((sizes["user_size"], E))
    p["poi_embed"] = xavier((sizes["poi_size"], E))
    p["user_bias"] = jnp.zeros((sizes["user_size"], 1), jnp.float32)
    p["poi_bias"] = jnp.zeros((sizes["poi_size"], 1), jnp.float32)
    p["miu"] = jnp.zeros((1,), jnp.float32)
    for name in ["gender", "age", "occupation", "category", "landmark",
                 "facility", "rating", "location"]:
        p[f"{name}_embed"] = normal05((sizes[f"{name}_size"], E))
    for name in ["dense_poi_self_biinter", "dense_poi_self_siinter",
                 "dense_poi_onehop_biinter", "dense_poi_onehop_siinter",
                 "dense_user_self_biinter", "dense_user_self_siinter",
                 "dense_user_onehop_biinter", "dense_user_onehop_siinter"]:
        p[f"{name}_w"] = xavier((E, E))
        p[f"{name}_b"] = jnp.zeros((E,), jnp.float32)
    for name in ["dense_poi_cate_self", "dense_poi_cate_hop1",
                 "dense_user_cate_self", "dense_user_cate_hop1"]:
        p[f"{name}_w"] = xavier((E, 2 * E))
        p[f"{name}_b"] = jnp.zeros((E,), jnp.float32)
    C = 2 * E
    for pre in ["poi", "user"]:
        p[f"{pre}_gknn_conv_w"] = uniform_fan((C, C, 3), C * 3)
        p[f"{pre}_gknn_conv_b"] = uniform_fan((C,), C * 3)
        p[f"{pre}_gru_w_ih"] = uniform_fan((3 * E, 2 * E), E)
        p[f"{pre}_gru_w_hh"] = uniform_fan((3 * E, E), E)
        p[f"{pre}_gru_b_ih"] = uniform_fan((3 * E,), E)
        p[f"{pre}_gru_b_hh"] = uniform_fan((3 * E,), E)

    def vgaean():
        return {
            "enc1_w": xavier((E, E)), "enc1_b": jnp.zeros((E,), jnp.float32),
            "enc2_w": xavier((2 * latent, E)), "enc2_b": jnp.zeros((2 * latent,), jnp.float32),
            "dec1_w": xavier((E, latent)), "dec1_b": jnp.zeros((E,), jnp.float32),
            "dec2_w": xavier((E, E)), "dec2_b": jnp.zeros((E,), jnp.float32),
            "disc1_w": xavier((128, E)), "disc1_b": jnp.zeros((128,), jnp.float32),
            "disc2_w": xavier((1, 128)), "disc2_b": jnp.zeros((1,), jnp.float32),
        }

    p["poi_vgaean"] = vgaean()
    p["user_vgaean"] = vgaean()
    p["FC_pre_w"] = xavier((1, 2 * E))
    p["FC_pre_b"] = jnp.zeros((1,), jnp.float32)
    return p


def _prep_branch(p, pre, self_si):
    """Pack all branch weights (transposed / split / conv-sliced) into one stack."""
    E = p["user_embed"].shape[1]
    hop1 = p[f"dense_{pre}_cate_hop1_w"]
    selfc = p[f"dense_{pre}_cate_self_w"]
    cw = p[f"{pre}_gknn_conv_w"]
    gw = p[f"{pre}_gru_w_ih"]
    W = jnp.stack([
        p[f"dense_{pre}_onehop_biinter_w"].T,
        p[f"dense_{pre}_onehop_siinter_w"].T,
        p[f"dense_{pre}_self_biinter_w"].T,
        p[self_si + "_w"].T,
        hop1[:, :E].T, hop1[:, E:].T,
        selfc[:, :E].T, selfc[:, E:].T,
        cw[:E, :E, 0].T, cw[:E, E:, 0].T,      # conv tap k=0 (applies to x[t-1]); only E out chans
        cw[:E, :E, 1].T, cw[:E, E:, 1].T,
        cw[:E, :E, 2].T, cw[:E, E:, 2].T,
        gw[:E, :E].T, gw[:E, E:].T,            # GRU r gate (self / mean-onehop halves)
        gw[E:2 * E, :E].T, gw[E:2 * E, E:].T,  # z gate
        gw[2 * E:, :E].T, gw[2 * E:, E:].T,    # n gate
    ])
    bih = p[f"{pre}_gru_b_ih"]
    bhh = p[f"{pre}_gru_b_hh"]
    Bv = jnp.stack([
        p[f"dense_{pre}_onehop_biinter_b"],
        p[f"dense_{pre}_onehop_siinter_b"],
        p[f"dense_{pre}_self_biinter_b"],
        p[self_si + "_b"],
        p[f"dense_{pre}_cate_hop1_b"],
        p[f"dense_{pre}_cate_self_b"],
        p[f"{pre}_gknn_conv_b"][:E],
        bih[:E] + bhh[:E],
        bih[E:2 * E] + bhh[E:2 * E],
        bih[2 * E:],
        bhh[2 * E:],
    ])
    return {"W": W, "B": Bv}


def _prep_tail(p):
    E = p["user_embed"].shape[1]
    pv = p["poi_vgaean"]
    uv = p["user_vgaean"]
    L = pv["enc2_w"].shape[0] // 2
    return {
        "enc1_w": pv["enc1_w"].T, "enc1_b": pv["enc1_b"][None, :],
        "enc_mu_w": pv["enc2_w"][:L].T, "enc_mu_b": pv["enc2_b"][:L][None, :],
        "enc_lv_w": pv["enc2_w"][L:].T, "enc_lv_b": pv["enc2_b"][L:][None, :],
        "pdec1_w": pv["dec1_w"].T, "pdec1_b": pv["dec1_b"][None, :],
        "pdec2_w": pv["dec2_w"].T, "pdec2_b": pv["dec2_b"][None, :],
        "udec1_w": uv["dec1_w"].T, "udec1_b": uv["dec1_b"][None, :],
        "udec2_w": uv["dec2_w"].T, "udec2_b": uv["dec2_b"][None, :],
        "disc1_w": pv["disc1_w"].T, "disc1_b": pv["disc1_b"][None, :],
        "disc2_w": pv["disc2_w"].T, "disc2_b": pv["disc2_b"][None, :],
        "fc_wu": p["FC_pre_w"][:, :E].T, "fc_wp": p["FC_pre_w"][:, E:].T,
        "fc_b": p["FC_pre_b"].reshape(1, 1),
        "miu": p["miu"].reshape(1, 1),
    }


def prepare_params(p):
    """One-time weight prep (transposes, splits, conv slicing, bias packing)."""
    prep = {k: p[k] for k in [
        "user_embed", "poi_embed", "user_bias", "poi_bias",
        "gender_embed", "age_embed", "occupation_embed", "category_embed",
        "landmark_embed", "facility_embed", "rating_embed", "location_embed"]}
    prep["poi_branch"] = _prep_branch(p, "poi", "dense_poi_self_siinter")
    # NOTE: the reference uses dense_user_onehop_siinter for the USER *self* NFM (bug preserved).
    prep["user_branch"] = _prep_branch(p, "user", "dense_user_onehop_siinter")
    prep["tail"] = _prep_tail(p)
    return prep


# ----------------------------- DualGNN forward -----------------------------

@jax.jit
def dual_gnn_forward(prep, user, poi, user_self_cate, user_onehop_id, user_onehop_cate,
                     poi_self_cate, poi_self_landmark, poi_self_facility, poi_self_rating,
                     poi_self_location, poi_onehop_id, poi_onehop_cate, poi_onehop_landmark,
                     poi_onehop_facility, poi_onehop_rating, poi_onehop_location, noise_key):
    p = prep
    E = p["user_embed"].shape[1]
    B, P1 = poi_onehop_id.shape
    U1 = user_onehop_id.shape[1]

    user_embedding = p["user_embed"][user]                                   # (B, E)
    poi_embedding = p["poi_embed"][poi]                                      # (B, E)

    # ---------------- POI branch (one fused kernel) ----------------
    poi_oh_feat = jnp.concatenate(
        [p["category_embed"][poi_onehop_cate],
         p["landmark_embed"][poi_onehop_landmark],
         p["facility_embed"][poi_onehop_facility],
         p["rating_embed"][poi_onehop_rating],
         p["location_embed"][poi_onehop_location]], axis=2).reshape(B * P1, -1, E)
    poi_oh_id = p["poi_embed"][poi_onehop_id].reshape(B * P1, E)
    poi_self_feat = jnp.concatenate(
        [p["category_embed"][poi_self_cate],
         p["landmark_embed"][poi_self_landmark],
         p["facility_embed"][poi_self_facility],
         p["rating_embed"][poi_self_rating],
         p["location_embed"][poi_self_location]], axis=1)                    # (B, Ft, E)
    poi_gcn_embed, poi_self_feature = run_branch(
        poi_oh_feat, poi_oh_id, poi_self_feat, poi_embedding, p["poi_branch"])

    # ---------------- USER branch (one fused kernel) ----------------
    user_oh_feat = jnp.stack(
        [p["gender_embed"][user_onehop_cate[:, :, 0]],
         p["age_embed"][user_onehop_cate[:, :, 1]],
         p["occupation_embed"][user_onehop_cate[:, :, 2]]], axis=2).reshape(B * U1, 3, E)
    user_oh_id = p["user_embed"][user_onehop_id].reshape(B * U1, E)
    user_self_feat = jnp.stack(
        [p["gender_embed"][user_self_cate[:, 0]],
         p["age_embed"][user_self_cate[:, 1]],
         p["occupation_embed"][user_self_cate[:, 2]]], axis=1)               # (B, 3, E)
    user_gcn_embed, _ = run_branch(
        user_oh_feat, user_oh_id, user_self_feat, user_embedding, p["user_branch"])

    # ---------------- aVGAEAN + losses + prediction (one fused kernel) ----------------
    # TODO(synk): aVGAEAN.Q also computes reconstruction / HGCAN / discriminator outputs,
    # but DualGNN.forward discards them; only mu/logvar are reproduced here.
    latent = p["tail"]["pdec1_w"].shape[0]
    eps = jax.random.normal(noise_key, (2, B, latent), jnp.float32)
    bu = p["user_bias"][user]                                                # (B, 1)
    bi = p["poi_bias"][poi]                                                  # (B, 1)
    pred, recon, kl, adv = run_tail(poi_self_feature, user_gcn_embed, poi_gcn_embed,
                                    user_embedding, poi_embedding, eps, bu, bi, p["tail"])
    return pred.squeeze(), recon[0, 0], kl[0, 0], adv[0, 0]


# ----------------------------- driver -----------------------------

if __name__ == "__main__":
    key = jax.random.PRNGKey(0)
    sizes = dict(user_size=11, poi_size=13, gender_size=2, age_size=5, occupation_size=6,
                 category_size=7, landmark_size=5, facility_size=4, rating_size=5,
                 location_size=6, embed_size=30)   # embed_size == latent_dim (see header)
    pkey, dkey, nkey = jax.random.split(key, 3)
    params = init_params(pkey, sizes)
    prep = prepare_params(params)

    B, P1, U1 = 2, 4, 4
    Cn, Ln, Fn, Rn, Lon = 3, 2, 2, 1, 1
    ks = jax.random.split(dkey, 16)
    user = jax.random.randint(ks[0], (B,), 0, sizes["user_size"])
    poi = jax.random.randint(ks[1], (B,), 0, sizes["poi_size"])
    user_self_cate = jnp.stack([
        jax.random.randint(ks[2], (B,), 0, sizes["gender_size"]),
        jax.random.randint(ks[3], (B,), 0, sizes["age_size"]),
        jax.random.randint(ks[4], (B,), 0, sizes["occupation_size"])], axis=1)
    user_onehop_id = jax.random.randint(ks[5], (B, U1), 0, sizes["user_size"])
    user_onehop_cate = jnp.stack([
        jax.random.randint(ks[6], (B, U1), 0, sizes["gender_size"]),
        jax.random.randint(ks[7], (B, U1), 0, sizes["age_size"]),
        jax.random.randint(ks[8], (B, U1), 0, sizes["occupation_size"])], axis=2)
    poi_self_cate = jax.random.randint(ks[9], (B, Cn), 0, sizes["category_size"])
    poi_self_landmark = jax.random.randint(ks[10], (B, Ln), 0, sizes["landmark_size"])
    poi_self_facility = jax.random.randint(ks[11], (B, Fn), 0, sizes["facility_size"])
    poi_self_rating = jax.random.randint(ks[12], (B, Rn), 0, sizes["rating_size"])
    poi_self_location = jax.random.randint(ks[13], (B, Lon), 0, sizes["location_size"])
    poi_onehop_id = jax.random.randint(ks[14], (B, P1), 0, sizes["poi_size"])
    kk = jax.random.split(ks[15], 5)
    poi_onehop_cate = jax.random.randint(kk[0], (B, P1, Cn), 0, sizes["category_size"])
    poi_onehop_landmark = jax.random.randint(kk[1], (B, P1, Ln), 0, sizes["landmark_size"])
    poi_onehop_facility = jax.random.randint(kk[2], (B, P1, Fn), 0, sizes["facility_size"])
    poi_onehop_rating = jax.random.randint(kk[3], (B, P1, Rn), 0, sizes["rating_size"])
    poi_onehop_location = jax.random.randint(kk[4], (B, P1, Lon), 0, sizes["location_size"])

    out = dual_gnn_forward(
        prep, user, poi, user_self_cate, user_onehop_id, user_onehop_cate,
        poi_self_cate, poi_self_landmark, poi_self_facility, poi_self_rating,
        poi_self_location, poi_onehop_id, poi_onehop_cate, poi_onehop_landmark,
        poi_onehop_facility, poi_onehop_rating, poi_onehop_location, nkey)
    jax.block_until_ready(out)
    print("KERNEL_OK")
</pallas_src>

<mosaic_0001>
module attributes {stable_mosaic.version = 11 : i64} {
  func.func @_branch_kernel(%arg0: i32, %arg1: memref<8x9x30xf32, #tpu.memory_space<vmem>>, %arg2: memref<8x30xf32, #tpu.memory_space<vmem>>, %arg3: memref<2x9x30xf32, #tpu.memory_space<vmem>>, %arg4: memref<2x30xf32, #tpu.memory_space<vmem>>, %arg5: memref<8x2xf32, #tpu.memory_space<vmem>>, %arg6: memref<2x8xf32, #tpu.memory_space<vmem>>, %arg7: memref<2x8x8xf32, #tpu.memory_space<vmem>>, %arg8: memref<20x30x30xf32, #tpu.memory_space<vmem>>, %arg9: memref<11x30xf32, #tpu.memory_space<vmem>>, %arg10: memref<2x30xf32, #tpu.memory_space<vmem>>, %arg11: memref<2x30xf32, #tpu.memory_space<vmem>>) attributes {dimension_semantics = [#tpu.dimension_semantics<arbitrary>], iteration_bounds = array<i64: 1>, scalar_prefetch = 0 : i64, scratch_operands = 0 : i64, tpu.core_type = #tpu.core_type<tc>, window_params = [{pipeline_mode = #tpu.pipeline_mode<synchronous>, transform_indices = @transform_0, window_bounds = array<i64: 8, 9, 30>}, {pipeline_mode = #tpu.pipeline_mode<synchronous>, transform_indices = @transform_1, window_bounds = array<i64: 8, 30>}, {pipeline_mode = #tpu.pipeline_mode<synchronous>, transform_indices = @transform_2, window_bounds = array<i64: 2, 9, 30>}, {pipeline_mode = #tpu.pipeline_mode<synchronous>, transform_indices = @transform_3, window_bounds = array<i64: 2, 30>}, {pipeline_mode = #tpu.pipeline_mode<synchronous>, transform_indices = @transform_4, window_bounds = array<i64: 8, 2>}, {pipeline_mode = #tpu.pipeline_mode<synchronous>, transform_indices = @transform_5, window_bounds = array<i64: 2, 8>}, {pipeline_mode = #tpu.pipeline_mode<synchronous>, transform_indices = @transform_6, window_bounds = array<i64: 2, 8, 8>}, {pipeline_mode = #tpu.pipeline_mode<synchronous>, transform_indices = @transform_7, window_bounds = array<i64: 20, 30, 30>}, {pipeline_mode = #tpu.pipeline_mode<synchronous>, transform_indices = @transform_8, window_bounds = array<i64: 11, 30>}, {pipeline_mode = #tpu.pipeline_mode<synchronous>, transform_indices = @transform_9, window_bounds = array<i64: 2, 30>}, {pipeline_mode = #tpu.pipeline_mode<synchronous>, transform_indices = @transform_10, window_bounds = array<i64: 2, 30>}]} {
    %c0 = arith.constant 0 : index
    %c0_0 = arith.constant 0 : index
    %c0_1 = arith.constant 0 : index
    %0 = vector.load %arg1[%c0, %c0_0, %c0_1] : memref<8x9x30xf32, #tpu.memory_space<vmem>>, vector<8x9x30xf32>
    %cst = arith.constant dense<0.000000e+00> : vector<8x30xf32>
    %1 = vector.multi_reduction <add>, %0, %cst [1] : vector<8x9x30xf32> to vector<8x30xf32>
    %2 = arith.mulf %0, %0 : vector<8x9x30xf32>
    %cst_2 = arith.constant dense<0.000000e+00> : vector<8x30xf32>
    %3 = vector.multi_reduction <add>, %2, %cst_2 [1] : vector<8x9x30xf32> to vector<8x30xf32>
    %4 = arith.mulf %1, %1 : vector<8x30xf32>
    %5 = arith.subf %4, %3 : vector<8x30xf32>
    %cst_3 = arith.constant 5.000000e-01 : f32
    %6 = vector.broadcast %cst_3 : f32 to vector<8x30xf32>
    %7 = arith.mulf %6, %5 : vector<8x30xf32>
    %c0_4 = arith.constant 0 : index
    %c0_5 = arith.constant 0 : index
    %c0_6 = arith.constant 0 : index
    %8 = vector.load %arg8[%c0_4, %c0_5, %c0_6] : memref<20x30x30xf32, #tpu.memory_space<vmem>>, vector<1x30x30xf32>
    %9 = vector.shape_cast %8 : vector<1x30x30xf32> to vector<30x30xf32>
    %cst_7 = arith.constant dense<0.000000e+00> : vector<8x30xf32>
    %10 = tpu.matmul %7, %9, %cst_7 {dimension_numbers = #tpu.dot_dimension_numbers<[1], [0], [0], [1], [0, 0, 1, 1], [], []>} : vector<8x30xf32>, vector<30x30xf32>, vector<8x30xf32> -> vector<8x30xf32>
    %c0_8 = arith.constant 0 : index
    %c0_9 = arith.constant 0 : index
    %11 = vector.load %arg9[%c0_8, %c0_9] : memref<11x30xf32, #tpu.memory_space<vmem>>, vector<1x30xf32>
    %12 = vector.broadcast %11 : vector<1x30xf32> to vector<8x30xf32>
    %13 = arith.addf %10, %12 : vector<8x30xf32>
    %cst_10 = arith.constant 0.000000e+00 : f32
    %14 = vector.broadcast %cst_10 : f32 to vector<8x30xf32>
    %15 = arith.cmpf ogt, %13, %14 : vector<8x30xf32>
    %16 = math.exp %13 : vector<8x30xf32>
    %cst_11 = arith.constant 1.000000e+00 : f32
    %17 = vector.broadcast %cst_11 : f32 to vector<8x30xf32>
    %18 = arith.subf %16, %17 : vector<8x30xf32>
    %cst_12 = arith.constant 1.67326319 : f32
    %19 = vector.broadcast %cst_12 : f32 to vector<8x30xf32>
    %20 = arith.mulf %19, %18 : vector<8x30xf32>
    %21 = arith.select %15, %13, %20 : vector<8x30xi1>, vector<8x30xf32>
    %cst_13 = arith.constant 1.05070102 : f32
    %22 = vector.broadcast %cst_13 : f32 to vector<8x30xf32>
    %23 = arith.mulf %22, %21 : vector<8x30xf32>
    %c1 = arith.constant 1 : index
    %c0_14 = arith.constant 0 : index
    %c0_15 = arith.constant 0 : index
    %24 = vector.load %arg8[%c1, %c0_14, %c0_15] : memref<20x30x30xf32, #tpu.memory_space<vmem>>, vector<1x30x30xf32>
    %25 = vector.shape_cast %24 : vector<1x30x30xf32> to vector<30x30xf32>
    %cst_16 = arith.constant dense<0.000000e+00> : vector<8x30xf32>
    %26 = tpu.matmul %1, %25, %cst_16 {dimension_numbers = #tpu.dot_dimension_numbers<[1], [0], [0], [1], [0, 0, 1, 1], [], []>} : vector<8x30xf32>, vector<30x30xf32>, vector<8x30xf32> -> vector<8x30xf32>
    %c1_17 = arith.constant 1 : index
    %c0_18 = arith.constant 0 : index
    %27 = vector.load %arg9[%c1_17, %c0_18] : memref<11x30xf32, #tpu.memory_space<vmem>>, vector<1x30xf32>
    %28 = vector.broadcast %27 : vector<1x30xf32> to vector<8x30xf32>
    %29 = arith.addf %26, %28 : vector<8x30xf32>
    %cst_19 = arith.constant 0.000000e+00 : f32
    %30 = vector.broadcast %cst_19 : f32 to vector<8x30xf32>
    %31 = arith.cmpf ogt, %29, %30 : vector<8x30xf32>
    %32 = math.exp %29 : vector<8x30xf32>
    %cst_20 = arith.constant 1.000000e+00 : f32
    %33 = vector.broadcast %cst_20 : f32 to vector<8x30xf32>
    %34 = arith.subf %32, %33 : vector<8x30xf32>
    %cst_21 = arith.constant 1.67326319 : f32
    %35 = vector.broadcast %cst_21 : f32 to vector<8x30xf32>
    %36 = arith.mulf %35, %34 : vector<8x30xf32>
    %37 = arith.select %31, %29, %36 : vector<8x30xi1>, vector<8x30xf32>
    %cst_22 = arith.constant 1.05070102 : f32
    %38 = vector.broadcast %cst_22 : f32 to vector<8x30xf32>
    %39 = arith.mulf %38, %37 : vector<8x30xf32>
    %40 = arith.addf %23, %39 : vector<8x30xf32>
    %c4 = arith.constant 4 : index
    %c0_23 = arith.constant 0 : index
    %c0_24 = arith.constant 0 : index
    %41 = vector.load %arg8[%c4, %c0_23, %c0_24] : memref<20x30x30xf32, #tpu.memory_space<vmem>>, vector<1x30x30xf32>
    %42 = vector.shape_cast %41 : vector<1x30x30xf32> to vector<30x30xf32>
    %cst_25 = arith.constant dense<0.000000e+00> : vector<8x30xf32>
    %43 = tpu.matmul %40, %42, %cst_25 {dimension_numbers = #tpu.dot_dimension_numbers<[1], [0], [0], [1], [0, 0, 1, 1], [], []>} : vector<8x30xf32>, vector<30x30xf32>, vector<8x30xf32> -> vector<8x30xf32>
    %c0_26 = arith.constant 0 : index
    %c0_27 = arith.constant 0 : index
    %44 = vector.load %arg2[%c0_26, %c0_27] : memref<8x30xf32, #tpu.memory_space<vmem>>, vector<8x30xf32>
    %c5 = arith.constant 5 : index
    %c0_28 = arith.constant 0 : index
    %c0_29 = arith.constant 0 : index
    %45 = vector.load %arg8[%c5, %c0_28, %c0_29] : memref<20x30x30xf32, #tpu.memory_space<vmem>>, vector<1x30x30xf32>
    %46 = vector.shape_cast %45 : vector<1x30x30xf32> to vector<30x30xf32>
    %cst_30 = arith.constant dense<0.000000e+00> : vector<8x30xf32>
    %47 = tpu.matmul %44, %46, %cst_30 {dimension_numbers = #tpu.dot_dimension_numbers<[1], [0], [0], [1], [0, 0, 1, 1], [], []>} : vector<8x30xf32>, vector<30x30xf32>, vector<8x30xf32> -> vector<8x30xf32>
    %48 = arith.addf %43, %47 : vector<8x30xf32>
    %c4_31 = arith.constant 4 : index
    %c0_32 = arith.constant 0 : index
    %49 = vector.load %arg9[%c4_31, %c0_32] : memref<11x30xf32, #tpu.memory_space<vmem>>, vector<1x30xf32>
    %50 = vector.broadcast %49 : vector<1x30xf32> to vector<8x30xf32>
    %51 = arith.addf %48, %50 : vector<8x30xf32>
    %c0_33 = arith.constant 0 : index
    %c0_34 = arith.constant 0 : index
    %c0_35 = arith.constant 0 : index
    %52 = vector.load %arg3[%c0_33, %c0_34, %c0_35] : memref<2x9x30xf32, #tpu.memory_space<vmem>>, vector<2x9x30xf32>
    %cst_36 = arith.constant dense<0.000000e+00> : vector<2x30xf32>
    %53 = vector.multi_reduction <add>, %52, %cst_36 [1] : vector<2x9x30xf32> to vector<2x30xf32>
    %54 = arith.mulf %52, %52 : vector<2x9x30xf32>
    %cst_37 = arith.constant dense<0.000000e+00> : vector<2x30xf32>
    %55 = vector.multi_reduction <add>, %54, %cst_37 [1] : vector<2x9x30xf32> to vector<2x30xf32>
    %56 = arith.mulf %53, %53 : vector<2x30xf32>
    %57 = arith.subf %56, %55 : vector<2x30xf32>
    %cst_38 = arith.constant 5.000000e-01 : f32
    %58 = vector.broadcast %cst_38 : f32 to vector<2x30xf32>
    %59 = arith.mulf %58, %57 : vector<2x30xf32>
    %c2 = arith.constant 2 : index
    %c0_39 = arith.constant 0 : index
    %c0_40 = arith.constant 0 : index
    %60 = vector.load %arg8[%c2, %c0_39, %c0_40] : memref<20x30x30xf32, #tpu.memory_space<vmem>>, vector<1x30x30xf32>
    %61 = vector.shape_cast %60 : vector<1x30x30xf32> to vector<30x30xf32>
    %cst_41 = arith.constant dense<0.000000e+00> : vector<2x30xf32>
    %62 = tpu.matmul %59, %61, %cst_41 {dimension_numbers = #tpu.dot_dimension_numbers<[1], [0], [0], [1], [0, 0, 1, 1], [], []>} : vector<2x30xf32>, vector<30x30xf32>, vector<2x30xf32> -> vector<2x30xf32>
    %c2_42 = arith.constant 2 : index
    %c0_43 = arith.constant 0 : index
    %63 = vector.load %arg9[%c2_42, %c0_43] : memref<11x30xf32, #tpu.memory_space<vmem>>, vector<1x30xf32>
    %64 = vector.broadcast %63 : vector<1x30xf32> to vector<2x30xf32>
    %65 = arith.addf %62, %64 : vector<2x30xf32>
    %cst_44 = arith.constant 0.000000e+00 : f32
    %66 = vector.broadcast %cst_44 : f32 to vector<2x30xf32>
    %67 = arith.cmpf ogt, %65, %66 : vector<2x30xf32>
    %68 = math.exp %65 : vector<2x30xf32>
    %cst_45 = arith.constant 1.000000e+00 : f32
    %69 = vector.broadcast %cst_45 : f32 to vector<2x30xf32>
    %70 = arith.subf %68, %69 : vector<2x30xf32>
    %cst_46 = arith.constant 1.67326319 : f32
    %71 = vector.broadcast %cst_46 : f32 to vector<2x30xf32>
    %72 = arith.mulf %71, %70 : vector<2x30xf32>
    %73 = arith.select %67, %65, %72 : vector<2x30xi1>, vector<2x30xf32>
    %cst_47 = arith.constant 1.05070102 : f32
    %74 = vector.broadcast %cst_47 : f32 to vector<2x30xf32>
    %75 = arith.mulf %74, %73 : vector<2x30xf32>
    %c3 = arith.constant 3 : index
    %c0_48 = arith.constant 0 : index
    %c0_49 = arith.constant 0 : index
    %76 = vector.load %arg8[%c3, %c0_48, %c0_49] : memref<20x30x30xf32, #tpu.memory_space<vmem>>, vector<1x30x30xf32>
    %77 = vector.shape_cast %76 : vector<1x30x30xf32> to vector<30x30xf32>
    %cst_50 = arith.constant dense<0.000000e+00> : vector<2x30xf32>
    %78 = tpu.matmul %53, %77, %cst_50 {dimension_numbers = #tpu.dot_dimension_numbers<[1], [0], [0], [1], [0, 0, 1, 1], [], []>} : vector<2x30xf32>, vector<30x30xf32>, vector<2x30xf32> -> vector<2x30xf32>
    %c3_51 = arith.constant 3 : index
    %c0_52 = arith.constant 0 : index
    %79 = vector.load %arg9[%c3_51, %c0_52] : memref<11x30xf32, #tpu.memory_space<vmem>>, vector<1x30xf32>
    %80 = vector.broadcast %79 : vector<1x30xf32> to vector<2x30xf32>
    %81 = arith.addf %78, %80 : vector<2x30xf32>
    %cst_53 = arith.constant 0.000000e+00 : f32
    %82 = vector.broadcast %cst_53 : f32 to vector<2x30xf32>
    %83 = arith.cmpf ogt, %81, %82 : vector<2x30xf32>
    %84 = math.exp %81 : vector<2x30xf32>
    %cst_54 = arith.constant 1.000000e+00 : f32
    %85 = vector.broadcast %cst_54 : f32 to vector<2x30xf32>
    %86 = arith.subf %84, %85 : vector<2x30xf32>
    %cst_55 = arith.constant 1.67326319 : f32
    %87 = vector.broadcast %cst_55 : f32 to vector<2x30xf32>
    %88 = arith.mulf %87, %86 : vector<2x30xf32>
    %89 = arith.select %83, %81, %88 : vector<2x30xi1>, vector<2x30xf32>
    %cst_56 = arith.constant 1.05070102 : f32
    %90 = vector.broadcast %cst_56 : f32 to vector<2x30xf32>
    %91 = arith.mulf %90, %89 : vector<2x30xf32>
    %92 = arith.addf %75, %91 : vector<2x30xf32>
    %c0_57 = arith.constant 0 : index
    %c0_58 = arith.constant 0 : index
    %93 = vector.load %arg11[%c0_57, %c0_58] : memref<2x30xf32, #tpu.memory_space<vmem>>, vector<2x30xf32>
    tpu.vector_store %arg11[%c0_57, %c0_58], %92 {strides = array<i32>} : memref<2x30xf32, #tpu.memory_space<vmem>>, vector<2x30xf32>,
    %c6 = arith.constant 6 : index
    %c0_59 = arith.constant 0 : index
    %c0_60 = arith.constant 0 : index
    %94 = vector.load %arg8[%c6, %c0_59, %c0_60] : memref<20x30x30xf32, #tpu.memory_space<vmem>>, vector<1x30x30xf32>
    %95 = vector.shape_cast %94 : vector<1x30x30xf32> to vector<30x30xf32>
    %cst_61 = arith.constant dense<0.000000e+00> : vector<2x30xf32>
    %96 = tpu.matmul %92, %95, %cst_61 {dimension_numbers = #tpu.dot_dimension_numbers<[1], [0], [0], [1], [0, 0, 1, 1], [], []>} : vector<2x30xf32>, vector<30x30xf32>, vector<2x30xf32> -> vector<2x30xf32>
    %c0_62 = arith.constant 0 : index
    %c0_63 = arith.constant 0 : index
    %97 = vector.load %arg4[%c0_62, %c0_63] : memref<2x30xf32, #tpu.memory_space<vmem>>, vector<2x30xf32>
    %c7 = arith.constant 7 : index
    %c0_64 = arith.constant 0 : index
    %c0_65 = arith.constant 0 : index
    %98 = vector.load %arg8[%c7, %c0_64, %c0_65] : memref<20x30x30xf32, #tpu.memory_space<vmem>>, vector<1x30x30xf32>
    %99 = vector.shape_cast %98 : vector<1x30x30xf32> to vector<30x30xf32>
    %cst_66 = arith.constant dense<0.000000e+00> : vector<2x30xf32>
    %100 = tpu.matmul %97, %99, %cst_66 {dimension_numbers = #tpu.dot_dimension_numbers<[1], [0], [0], [1], [0, 0, 1, 1], [], []>} : vector<2x30xf32>, vector<30x30xf32>, vector<2x30xf32> -> vector<2x30xf32>
    %101 = arith.addf %96, %100 : vector<2x30xf32>
    %c5_67 = arith.constant 5 : index
    %c0_68 = arith.constant 0 : index
    %102 = vector.load %arg9[%c5_67, %c0_68] : memref<11x30xf32, #tpu.memory_space<vmem>>, vector<1x30xf32>
    %103 = vector.broadcast %102 : vector<1x30xf32> to vector<2x30xf32>
    %104 = arith.addf %101, %103 : vector<2x30xf32>
    %c0_69 = arith.constant 0 : index
    %c0_70 = arith.constant 0 : index
    %105 = vector.load %arg5[%c0_69, %c0_70] : memref<8x2xf32, #tpu.memory_space<vmem>>, vector<8x2xf32>
    %cst_71 = arith.constant dense<0.000000e+00> : vector<8x30xf32>
    %106 = tpu.matmul %105, %104, %cst_71 {dimension_numbers = #tpu.dot_dimension_numbers<[1], [0], [0], [1], [0, 0, 1, 1], [], []>} : vector<8x2xf32>, vector<2x30xf32>, vector<8x30xf32> -> vector<8x30xf32>
    %c8 = arith.constant 8 : index
    %c0_72 = arith.constant 0 : index
    %c0_73 = arith.constant 0 : index
    %107 = vector.load %arg8[%c8, %c0_72, %c0_73] : memref<20x30x30xf32, #tpu.memory_space<vmem>>, vector<1x30x30xf32>
    %108 = vector.shape_cast %107 : vector<1x30x30xf32> to vector<30x30xf32>
    %cst_74 = arith.constant dense<0.000000e+00> : vector<8x30xf32>
    %109 = tpu.matmul %106, %108, %cst_74 {dimension_numbers = #tpu.dot_dimension_numbers<[1], [0], [0], [1], [0, 0, 1, 1], [], []>} : vector<8x30xf32>, vector<30x30xf32>, vector<8x30xf32> -> vector<8x30xf32>
    %c9 = arith.constant 9 : index
    %c0_75 = arith.constant 0 : index
    %c0_76 = arith.constant 0 : index
    %110 = vector.load %arg8[%c9, %c0_75, %c0_76] : memref<20x30x30xf32, #tpu.memory_space<vmem>>, vector<1x30x30xf32>
    %111 = vector.shape_cast %110 : vector<1x30x30xf32> to vector<30x30xf32>
    %cst_77 = arith.constant dense<0.000000e+00> : vector<8x30xf32>
    %112 = tpu.matmul %51, %111, %cst_77 {dimension_numbers = #tpu.dot_dimension_numbers<[1], [0], [0], [1], [0, 0, 1, 1], [], []>} : vector<8x30xf32>, vector<30x30xf32>, vector<8x30xf32> -> vector<8x30xf32>
    %113 = arith.addf %109, %112 : vector<8x30xf32>
    %c10 = arith.constant 10 : index
    %c0_78 = arith.constant 0 : index
    %c0_79 = arith.constant 0 : index
    %114 = vector.load %arg8[%c10, %c0_78, %c0_79] : memref<20x30x30xf32, #tpu.memory_space<vmem>>, vector<1x30x30xf32>
    %115 = vector.shape_cast %114 : vector<1x30x30xf32> to vector<30x30xf32>
    %cst_80 = arith.constant dense<0.000000e+00> : vector<8x30xf32>
    %116 = tpu.matmul %106, %115, %cst_80 {dimension_numbers = #tpu.dot_dimension_numbers<[1], [0], [0], [1], [0, 0, 1, 1], [], []>} : vector<8x30xf32>, vector<30x30xf32>, vector<8x30xf32> -> vector<8x30xf32>
    %c11 = arith.constant 11 : index
    %c0_81 = arith.constant 0 : index
    %c0_82 = arith.constant 0 : index
    %117 = vector.load %arg8[%c11, %c0_81, %c0_82] : memref<20x30x30xf32, #tpu.memory_space<vmem>>, vector<1x30x30xf32>
    %118 = vector.shape_cast %117 : vector<1x30x30xf32> to vector<30x30xf32>
    %cst_83 = arith.constant dense<0.000000e+00> : vector<8x30xf32>
    %119 = tpu.matmul %51, %118, %cst_83 {dimension_numbers = #tpu.dot_dimension_numbers<[1], [0], [0], [1], [0, 0, 1, 1], [], []>} : vector<8x30xf32>, vector<30x30xf32>, vector<8x30xf32> -> vector<8x30xf32>
    %120 = arith.addf %116, %119 : vector<8x30xf32>
    %c12 = arith.constant 12 : index
    %c0_84 = arith.constant 0 : index
    %c0_85 = arith.constant 0 : index
    %121 = vector.load %arg8[%c12, %c0_84, %c0_85] : memref<20x30x30xf32, #tpu.memory_space<vmem>>, vector<1x30x30xf32>
    %122 = vector.shape_cast %121 : vector<1x30x30xf32> to vector<30x30xf32>
    %cst_86 = arith.constant dense<0.000000e+00> : vector<8x30xf32>
    %123 = tpu.matmul %106, %122, %cst_86 {dimension_numbers = #tpu.dot_dimension_numbers<[1], [0], [0], [1], [0, 0, 1, 1], [], []>} : vector<8x30xf32>, vector<30x30xf32>, vector<8x30xf32> -> vector<8x30xf32>
    %c13 = arith.constant 13 : index
    %c0_87 = arith.constant 0 : index
    %c0_88 = arith.constant 0 : index
    %124 = vector.load %arg8[%c13, %c0_87, %c0_88] : memref<20x30x30xf32, #tpu.memory_space<vmem>>, vector<1x30x30xf32>
    %125 = vector.shape_cast %124 : vector<1x30x30xf32> to vector<30x30xf32>
    %cst_89 = arith.constant dense<0.000000e+00> : vector<8x30xf32>
    %126 = tpu.matmul %51, %125, %cst_89 {dimension_numbers = #tpu.dot_dimension_numbers<[1], [0], [0], [1], [0, 0, 1, 1], [], []>} : vector<8x30xf32>, vector<30x30xf32>, vector<8x30xf32> -> vector<8x30xf32>
    %127 = arith.addf %123, %126 : vector<8x30xf32>
    %c0_90 = arith.constant 0 : index
    %c0_91 = arith.constant 0 : index
    %c0_92 = arith.constant 0 : index
    %128 = vector.load %arg7[%c0_90, %c0_91, %c0_92] : memref<2x8x8xf32, #tpu.memory_space<vmem>>, vector<1x8x8xf32>
    %129 = vector.shape_cast %128 : vector<1x8x8xf32> to vector<8x8xf32>
    %cst_93 = arith.constant dense<0.000000e+00> : vector<8x30xf32>
    %130 = tpu.matmul %129, %113, %cst_93 {dimension_numbers = #tpu.dot_dimension_numbers<[1], [0], [0], [1], [0, 0, 1, 1], [], []>} : vector<8x8xf32>, vector<8x30xf32>, vector<8x30xf32> -> vector<8x30xf32>
    %131 = arith.addf %130, %120 : vector<8x30xf32>
    %c1_94 = arith.constant 1 : index
    %c0_95 = arith.constant 0 : index
    %c0_96 = arith.constant 0 : index
    %132 = vector.load %arg7[%c1_94, %c0_95, %c0_96] : memref<2x8x8xf32, #tpu.memory_space<vmem>>, vector<1x8x8xf32>
    %133 = vector.shape_cast %132 : vector<1x8x8xf32> to vector<8x8xf32>
    %cst_97 = arith.constant dense<0.000000e+00> : vector<8x30xf32>
    %134 = tpu.matmul %133, %127, %cst_97 {dimension_numbers = #tpu.dot_dimension_numbers<[1], [0], [0], [1], [0, 0, 1, 1], [], []>} : vector<8x8xf32>, vector<8x30xf32>, vector<8x30xf32> -> vector<8x30xf32>
    %135 = arith.addf %131, %134 : vector<8x30xf32>
    %c6_98 = arith.constant 6 : index
    %c0_99 = arith.constant 0 : index
    %136 = vector.load %arg9[%c6_98, %c0_99] : memref<11x30xf32, #tpu.memory_space<vmem>>, vector<1x30xf32>
    %137 = vector.broadcast %136 : vector<1x30xf32> to vector<8x30xf32>
    %138 = arith.addf %135, %137 : vector<8x30xf32>
    %cst_100 = arith.constant 0.000000e+00 : f32
    %139 = vector.broadcast %cst_100 : f32 to vector<8x30xf32>
    %140 = arith.maximumf %138, %139 : vector<8x30xf32>
    %141 = math.absf %140 : vector<8x30xf32>
    %cst_101 = arith.constant 0.000000e+00 : f32
    %142 = vector.broadcast %cst_101 : f32 to vector<8x30xf32>
    %143 = arith.subf %142, %141 : vector<8x30xf32>
    %144 = math.exp %143 : vector<8x30xf32>
    %cst_102 = arith.constant 1.000000e+00 : f32
    %145 = vector.broadcast %cst_102 : f32 to vector<8x30xf32>
    %146 = arith.addf %145, %144 : vector<8x30xf32>
    %cst_103 = arith.constant 1.000000e+00 : f32
    %147 = vector.broadcast %cst_103 : f32 to vector<8x30xf32>
    %148 = arith.divf %147, %146 : vector<8x30xf32>
    %cst_104 = arith.constant 0.000000e+00 : f32
    %149 = vector.broadcast %cst_104 : f32 to vector<8x30xf32>
    %150 = arith.cmpf oge, %140, %149 : vector<8x30xf32>
    %cst_105 = arith.constant 1.000000e+00 : f32
    %151 = vector.broadcast %cst_105 : f32 to vector<8x30xf32>
    %152 = arith.subf %151, %148 : vector<8x30xf32>
    %153 = arith.select %150, %148, %152 : vector<8x30xi1>, vector<8x30xf32>
    %c0_106 = arith.constant 0 : index
    %c0_107 = arith.constant 0 : index
    %154 = vector.load %arg6[%c0_106, %c0_107] : memref<2x8xf32, #tpu.memory_space<vmem>>, vector<2x8xf32>
    %155 = arith.mulf %51, %153 : vector<8x30xf32>
    %cst_108 = arith.constant dense<0.000000e+00> : vector<2x30xf32>
    %156 = tpu.matmul %154, %155, %cst_108 {dimension_numbers = #tpu.dot_dimension_numbers<[1], [0], [0], [1], [0, 0, 1, 1], [], []>} : vector<2x8xf32>, vector<8x30xf32>, vector<2x30xf32> -> vector<2x30xf32>
    %cst_109 = arith.constant dense<0.000000e+00> : vector<2x30xf32>
    %157 = tpu.matmul %154, %51, %cst_109 {dimension_numbers = #tpu.dot_dimension_numbers<[1], [0], [0], [1], [0, 0, 1, 1], [], []>} : vector<2x8xf32>, vector<8x30xf32>, vector<2x30xf32> -> vector<2x30xf32>
    %c14 = arith.constant 14 : index
    %c0_110 = arith.constant 0 : index
    %c0_111 = arith.constant 0 : index
    %158 = vector.load %arg8[%c14, %c0_110, %c0_111] : memref<20x30x30xf32, #tpu.memory_space<vmem>>, vector<1x30x30xf32>
    %159 = vector.shape_cast %158 : vector<1x30x30xf32> to vector<30x30xf32>
    %cst_112 = arith.constant dense<0.000000e+00> : vector<2x30xf32>
    %160 = tpu.matmul %104, %159, %cst_112 {dimension_numbers = #tpu.dot_dimension_numbers<[1], [0], [0], [1], [0, 0, 1, 1], [], []>} : vector<2x30xf32>, vector<30x30xf32>, vector<2x30xf32> -> vector<2x30xf32>
    %c15 = arith.constant 15 : index
    %c0_113 = arith.constant 0 : index
    %c0_114 = arith.constant 0 : index
    %161 = vector.load %arg8[%c15, %c0_113, %c0_114] : memref<20x30x30xf32, #tpu.memory_space<vmem>>, vector<1x30x30xf32>
    %162 = vector.shape_cast %161 : vector<1x30x30xf32> to vector<30x30xf32>
    %cst_115 = arith.constant dense<0.000000e+00> : vector<2x30xf32>
    %163 = tpu.matmul %157, %162, %cst_115 {dimension_numbers = #tpu.dot_dimension_numbers<[1], [0], [0], [1], [0, 0, 1, 1], [], []>} : vector<2x30xf32>, vector<30x30xf32>, vector<2x30xf32> -> vector<2x30xf32>
    %164 = arith.addf %160, %163 : vector<2x30xf32>
    %c7_116 = arith.constant 7 : index
    %c0_117 = arith.constant 0 : index
    %165 = vector.load %arg9[%c7_116, %c0_117] : memref<11x30xf32, #tpu.memory_space<vmem>>, vector<1x30xf32>
    %166 = vector.broadcast %165 : vector<1x30xf32> to vector<2x30xf32>
    %167 = arith.addf %164, %166 : vector<2x30xf32>
    %168 = math.absf %167 : vector<2x30xf32>
    %cst_118 = arith.constant 0.000000e+00 : f32
    %169 = vector.broadcast %cst_118 : f32 to vector<2x30xf32>
    %170 = arith.subf %169, %168 : vector<2x30xf32>
    %171 = math.exp %170 : vector<2x30xf32>
    %cst_119 = arith.constant 1.000000e+00 : f32
    %172 = vector.broadcast %cst_119 : f32 to vector<2x30xf32>
    %173 = arith.addf %172, %171 : vector<2x30xf32>
    %cst_120 = arith.constant 1.000000e+00 : f32
    %174 = vector.broadcast %cst_120 : f32 to vector<2x30xf32>
    %175 = arith.divf %174, %173 : vector<2x30xf32>
    %cst_121 = arith.constant 0.000000e+00 : f32
    %176 = vector.broadcast %cst_121 : f32 to vector<2x30xf32>
    %177 = arith.cmpf oge, %167, %176 : vector<2x30xf32>
    %cst_122 = arith.constant 1.000000e+00 : f32
    %178 = vector.broadcast %cst_122 : f32 to vector<2x30xf32>
    %179 = arith.subf %178, %175 : vector<2x30xf32>
    %180 = arith.select %177, %175, %179 : vector<2x30xi1>, vector<2x30xf32>
    %c16 = arith.constant 16 : index
    %c0_123 = arith.constant 0 : index
    %c0_124 = arith.constant 0 : index
    %181 = vector.load %arg8[%c16, %c0_123, %c0_124] : memref<20x30x30xf32, #tpu.memory_space<vmem>>, vector<1x30x30xf32>
    %182 = vector.shape_cast %181 : vector<1x30x30xf32> to vector<30x30xf32>
    %cst_125 = arith.constant dense<0.000000e+00> : vector<2x30xf32>
    %183 = tpu.matmul %104, %182, %cst_125 {dimension_numbers = #tpu.dot_dimension_numbers<[1], [0], [0], [1], [0, 0, 1, 1], [], []>} : vector<2x30xf32>, vector<30x30xf32>, vector<2x30xf32> -> vector<2x30xf32>
    %c17 = arith.constant 17 : index
    %c0_126 = arith.constant 0 : index
    %c0_127 = arith.constant 0 : index
    %184 = vector.load %arg8[%c17, %c0_126, %c0_127] : memref<20x30x30xf32, #tpu.memory_space<vmem>>, vector<1x30x30xf32>
    %185 = vector.shape_cast %184 : vector<1x30x30xf32> to vector<30x30xf32>
    %cst_128 = arith.constant dense<0.000000e+00> : vector<2x30xf32>
    %186 = tpu.matmul %157, %185, %cst_128 {dimension_numbers = #tpu.dot_dimension_numbers<[1], [0], [0], [1], [0, 0, 1, 1], [], []>} : vector<2x30xf32>, vector<30x30xf32>, vector<2x30xf32> -> vector<2x30xf32>
    %187 = arith.addf %183, %186 : vector<2x30xf32>
    %c8_129 = arith.constant 8 : index
    %c0_130 = arith.constant 0 : index
    %188 = vector.load %arg9[%c8_129, %c0_130] : memref<11x30xf32, #tpu.memory_space<vmem>>, vector<1x30xf32>
    %189 = vector.broadcast %188 : vector<1x30xf32> to vector<2x30xf32>
    %190 = arith.addf %187, %189 : vector<2x30xf32>
    %191 = math.absf %190 : vector<2x30xf32>
    %cst_131 = arith.constant 0.000000e+00 : f32
    %192 = vector.broadcast %cst_131 : f32 to vector<2x30xf32>
    %193 = arith.subf %192, %191 : vector<2x30xf32>
    %194 = math.exp %193 : vector<2x30xf32>
    %cst_132 = arith.constant 1.000000e+00 : f32
    %195 = vector.broadcast %cst_132 : f32 to vector<2x30xf32>
    %196 = arith.addf %195, %194 : vector<2x30xf32>
    %cst_133 = arith.constant 1.000000e+00 : f32
    %197 = vector.broadcast %cst_133 : f32 to vector<2x30xf32>
    %198 = arith.divf %197, %196 : vector<2x30xf32>
    %cst_134 = arith.constant 0.000000e+00 : f32
    %199 = vector.broadcast %cst_134 : f32 to vector<2x30xf32>
    %200 = arith.cmpf oge, %190, %199 : vector<2x30xf32>
    %cst_135 = arith.constant 1.000000e+00 : f32
    %201 = vector.broadcast %cst_135 : f32 to vector<2x30xf32>
    %202 = arith.subf %201, %198 : vector<2x30xf32>
    %203 = arith.select %200, %198, %202 : vector<2x30xi1>, vector<2x30xf32>
    %c18 = arith.constant 18 : index
    %c0_136 = arith.constant 0 : index
    %c0_137 = arith.constant 0 : index
    %204 = vector.load %arg8[%c18, %c0_136, %c0_137] : memref<20x30x30xf32, #tpu.memory_space<vmem>>, vector<1x30x30xf32>
    %205 = vector.shape_cast %204 : vector<1x30x30xf32> to vector<30x30xf32>
    %cst_138 = arith.constant dense<0.000000e+00> : vector<2x30xf32>
    %206 = tpu.matmul %104, %205, %cst_138 {dimension_numbers = #tpu.dot_dimension_numbers<[1], [0], [0], [1], [0, 0, 1, 1], [], []>} : vector<2x30xf32>, vector<30x30xf32>, vector<2x30xf32> -> vector<2x30xf32>
    %c19 = arith.constant 19 : index
    %c0_139 = arith.constant 0 : index
    %c0_140 = arith.constant 0 : index
    %207 = vector.load %arg8[%c19, %c0_139, %c0_140] : memref<20x30x30xf32, #tpu.memory_space<vmem>>, vector<1x30x30xf32>
    %208 = vector.shape_cast %207 : vector<1x30x30xf32> to vector<30x30xf32>
    %cst_141 = arith.constant dense<0.000000e+00> : vector<2x30xf32>
    %209 = tpu.matmul %157, %208, %cst_141 {dimension_numbers = #tpu.dot_dimension_numbers<[1], [0], [0], [1], [0, 0, 1, 1], [], []>} : vector<2x30xf32>, vector<30x30xf32>, vector<2x30xf32> -> vector<2x30xf32>
    %210 = arith.addf %206, %209 : vector<2x30xf32>
    %c9_142 = arith.constant 9 : index
    %c0_143 = arith.constant 0 : index
    %211 = vector.load %arg9[%c9_142, %c0_143] : memref<11x30xf32, #tpu.memory_space<vmem>>, vector<1x30xf32>
    %212 = vector.broadcast %211 : vector<1x30xf32> to vector<2x30xf32>
    %213 = arith.addf %210, %212 : vector<2x30xf32>
    %c10_144 = arith.constant 10 : index
    %c0_145 = arith.constant 0 : index
    %214 = vector.load %arg9[%c10_144, %c0_145] : memref<11x30xf32, #tpu.memory_space<vmem>>, vector<1x30xf32>
    %215 = vector.broadcast %214 : vector<1x30xf32> to vector<2x30xf32>
    %216 = arith.mulf %180, %215 : vector<2x30xf32>
    %217 = arith.addf %213, %216 : vector<2x30xf32>
    %218 = math.tanh %217 : vector<2x30xf32>
    %cst_146 = arith.constant 1.000000e+00 : f32
    %219 = vector.broadcast %cst_146 : f32 to vector<2x30xf32>
    %220 = arith.subf %219, %203 : vector<2x30xf32>
    %221 = arith.mulf %220, %218 : vector<2x30xf32>
    %222 = math.absf %221 : vector<2x30xf32>
    %cst_147 = arith.constant 0.000000e+00 : f32
    %223 = vector.broadcast %cst_147 : f32 to vector<2x30xf32>
    %224 = arith.subf %223, %222 : vector<2x30xf32>
    %225 = math.exp %224 : vector<2x30xf32>
    %cst_148 = arith.constant 1.000000e+00 : f32
    %226 = vector.broadcast %cst_148 : f32 to vector<2x30xf32>
    %227 = arith.addf %226, %225 : vector<2x30xf32>
    %cst_149 = arith.constant 1.000000e+00 : f32
    %228 = vector.broadcast %cst_149 : f32 to vector<2x30xf32>
    %229 = arith.divf %228, %227 : vector<2x30xf32>
    %cst_150 = arith.constant 0.000000e+00 : f32
    %230 = vector.broadcast %cst_150 : f32 to vector<2x30xf32>
    %231 = arith.cmpf oge, %221, %230 : vector<2x30xf32>
    %cst_151 = arith.constant 1.000000e+00 : f32
    %232 = vector.broadcast %cst_151 : f32 to vector<2x30xf32>
    %233 = arith.subf %232, %229 : vector<2x30xf32>
    %234 = arith.select %231, %229, %233 : vector<2x30xi1>, vector<2x30xf32>
    %cst_152 = arith.constant 1.000000e+00 : f32
    %235 = vector.broadcast %cst_152 : f32 to vector<2x30xf32>
    %236 = arith.subf %235, %234 : vector<2x30xf32>
    %237 = arith.mulf %236, %104 : vector<2x30xf32>
    %238 = arith.addf %237, %156 : vector<2x30xf32>
    %cst_153 = arith.constant 0.000000e+00 : f32
    %239 = vector.broadcast %cst_153 : f32 to vector<2x30xf32>
    %240 = arith.cmpf ogt, %238, %239 : vector<2x30xf32>
    %241 = math.exp %238 : vector<2x30xf32>
    %cst_154 = arith.constant 1.000000e+00 : f32
    %242 = vector.broadcast %cst_154 : f32 to vector<2x30xf32>
    %243 = arith.subf %241, %242 : vector<2x30xf32>
    %cst_155 = arith.constant 1.67326319 : f32
    %244 = vector.broadcast %cst_155 : f32 to vector<2x30xf32>
    %245 = arith.mulf %244, %243 : vector<2x30xf32>
    %246 = arith.select %240, %238, %245 : vector<2x30xi1>, vector<2x30xf32>
    %cst_156 = arith.constant 1.05070102 : f32
    %247 = vector.broadcast %cst_156 : f32 to vector<2x30xf32>
    %248 = arith.mulf %247, %246 : vector<2x30xf32>
    %c0_157 = arith.constant 0 : index
    %c0_158 = arith.constant 0 : index
    %249 = vector.load %arg10[%c0_157, %c0_158] : memref<2x30xf32, #tpu.memory_space<vmem>>, vector<2x30xf32>
    tpu.vector_store %arg10[%c0_157, %c0_158], %248 {strides = array<i32>} : memref<2x30xf32, #tpu.memory_space<vmem>>, vector<2x30xf32>,
    return
  }
  func.func @transform_0(%arg0: i32) -> (i32, i32, i32) {
    %c0_i32 = arith.constant 0 : i32
    %c0_i32_0 = arith.constant 0 : i32
    %c0_i32_1 = arith.constant 0 : i32
    %c0_i32_2 = arith.constant 0 : i32
    return %c0_i32, %c0_i32_0, %c0_i32_1 : i32, i32, i32
  }
  func.func @transform_1(%arg0: i32) -> (i32, i32) {
    %c0_i32 = arith.constant 0 : i32
    %c0_i32_0 = arith.constant 0 : i32
    %c0_i32_1 = arith.constant 0 : i32
    return %c0_i32, %c0_i32_0 : i32, i32
  }
  func.func @transform_2(%arg0: i32) -> (i32, i32, i32) {
    %c0_i32 = arith.constant 0 : i32
    %c0_i32_0 = arith.constant 0 : i32
    %c0_i32_1 = arith.constant 0 : i32
    %c0_i32_2 = arith.constant 0 : i32
    return %c0_i32, %c0_i32_0, %c0_i32_1 : i32, i32, i32
  }
  func.func @transform_3(%arg0: i32) -> (i32, i32) {
    %c0_i32 = arith.constant 0 : i32
    %c0_i32_0 = arith.constant 0 : i32
    %c0_i32_1 = arith.constant 0 : i32
    return %c0_i32, %c0_i32_0 : i32, i32
  }
  func.func @transform_4(%arg0: i32) -> (i32, i32) {
    %c0_i32 = arith.constant 0 : i32
    %c0_i32_0 = arith.constant 0 : i32
    %c0_i32_1 = arith.constant 0 : i32
    return %c0_i32, %c0_i32_0 : i32, i32
  }
  func.func @transform_5(%arg0: i32) -> (i32, i32) {
    %c0_i32 = arith.constant 0 : i32
    %c0_i32_0 = arith.constant 0 : i32
    %c0_i32_1 = arith.constant 0 : i32
    return %c0_i32, %c0_i32_0 : i32, i32
  }
  func.func @transform_6(%arg0: i32) -> (i32, i32, i32) {
    %c0_i32 = arith.constant 0 : i32
    %c0_i32_0 = arith.constant 0 : i32
    %c0_i32_1 = arith.constant 0 : i32
    %c0_i32_2 = arith.constant 0 : i32
    return %c0_i32, %c0_i32_0, %c0_i32_1 : i32, i32, i32
  }
  func.func @transform_7(%arg0: i32) -> (i32, i32, i32) {
    %c0_i32 = arith.constant 0 : i32
    %c0_i32_0 = arith.constant 0 : i32
    %c0_i32_1 = arith.constant 0 : i32
    %c0_i32_2 = arith.constant 0 : i32
    return %c0_i32, %c0_i32_0, %c0_i32_1 : i32, i32, i32
  }
  func.func @transform_8(%arg0: i32) -> (i32, i32) {
    %c0_i32 = arith.constant 0 : i32
    %c0_i32_0 = arith.constant 0 : i32
    %c0_i32_1 = arith.constant 0 : i32
    return %c0_i32, %c0_i32_0 : i32, i32
  }
  func.func @transform_9(%arg0: i32) -> (i32, i32) {
    %c0_i32 = arith.constant 0 : i32
    %c0_i32_0 = arith.constant 0 : i32
    %c0_i32_1 = arith.constant 0 : i32
    return %c0_i32, %c0_i32_0 : i32, i32
  }
  func.func @transform_10(%arg0: i32) -> (i32, i32) {
    %c0_i32 = arith.constant 0 : i32
    %c0_i32_0 = arith.constant 0 : i32
    %c0_i32_1 = arith.constant 0 : i32
    return %c0_i32, %c0_i32_0 : i32, i32
  }
}

module attributes {stable_mosaic.version = 11 : i64} {
  func.func @_branch_kernel(%arg0: i32, %arg1: memref<8x3x30xf32, #tpu.memory_space<vmem>>, %arg2: memref<8x30xf32, #tpu.memory_space<vmem>>, %arg3: memref<2x3x30xf32, #tpu.memory_space<vmem>>, %arg4: memref<2x30xf32, #tpu.memory_space<vmem>>, %arg5: memref<8x2xf32, #tpu.memory_space<vmem>>, %arg6: memref<2x8xf32, #tpu.memory_space<vmem>>, %arg7: memref<2x8x8xf32, #tpu.memory_space<vmem>>, %arg8: memref<20x30x30xf32, #tpu.memory_space<vmem>>, %arg9: memref<11x30xf32, #tpu.memory_space<vmem>>, %arg10: memref<2x30xf32, #tpu.memory_space<vmem>>, %arg11: memref<2x30xf32, #tpu.memory_space<vmem>>) attributes {dimension_semantics = [#tpu.dimension_semantics<arbitrary>], iteration_bounds = array<i64: 1>, scalar_prefetch = 0 : i64, scratch_operands = 0 : i64, tpu.core_type = #tpu.core_type<tc>, window_params = [{pipeline_mode = #tpu.pipeline_mode<synchronous>, transform_indices = @transform_0, window_bounds = array<i64: 8, 3, 30>}, {pipeline_mode = #tpu.pipeline_mode<synchronous>, transform_indices = @transform_1, window_bounds = array<i64: 8, 30>}, {pipeline_mode = #tpu.pipeline_mode<synchronous>, transform_indices = @transform_2, window_bounds = array<i64: 2, 3, 30>}, {pipeline_mode = #tpu.pipeline_mode<synchronous>, transform_indices = @transform_3, window_bounds = array<i64: 2, 30>}, {pipeline_mode = #tpu.pipeline_mode<synchronous>, transform_indices = @transform_4, window_bounds = array<i64: 8, 2>}, {pipeline_mode = #tpu.pipeline_mode<synchronous>, transform_indices = @transform_5, window_bounds = array<i64: 2, 8>}, {pipeline_mode = #tpu.pipeline_mode<synchronous>, transform_indices = @transform_6, window_bounds = array<i64: 2, 8, 8>}, {pipeline_mode = #tpu.pipeline_mode<synchronous>, transform_indices = @transform_7, window_bounds = array<i64: 20, 30, 30>}, {pipeline_mode = #tpu.pipeline_mode<synchronous>, transform_indices = @transform_8, window_bounds = array<i64: 11, 30>}, {pipeline_mode = #tpu.pipeline_mode<synchronous>, transform_indices = @transform_9, window_bounds = array<i64: 2, 30>}, {pipeline_mode = #tpu.pipeline_mode<synchronous>, transform_indices = @transform_10, window_bounds = array<i64: 2, 30>}]} {
    %c0 = arith.constant 0 : index
    %c0_0 = arith.constant 0 : index
    %c0_1 = arith.constant 0 : index
    %0 = vector.load %arg1[%c0, %c0_0, %c0_1] : memref<8x3x30xf32, #tpu.memory_space<vmem>>, vector<8x3x30xf32>
    %cst = arith.constant dense<0.000000e+00> : vector<8x30xf32>
    %1 = vector.multi_reduction <add>, %0, %cst [1] : vector<8x3x30xf32> to vector<8x30xf32>
    %2 = arith.mulf %0, %0 : vector<8x3x30xf32>
    %cst_2 = arith.constant dense<0.000000e+00> : vector<8x30xf32>
    %3 = vector.multi_reduction <add>, %2, %cst_2 [1] : vector<8x3x30xf32> to vector<8x30xf32>
    %4 = arith.mulf %1, %1 : vector<8x30xf32>
    %5 = arith.subf %4, %3 : vector<8x30xf32>
    %cst_3 = arith.constant 5.000000e-01 : f32
    %6 = vector.broadcast %cst_3 : f32 to vector<8x30xf32>
    %7 = arith.mulf %6, %5 : vector<8x30xf32>
    %c0_4 = arith.constant 0 : index
    %c0_5 = arith.constant 0 : index
    %c0_6 = arith.constant 0 : index
    %8 = vector.load %arg8[%c0_4, %c0_5, %c0_6] : memref<20x30x30xf32, #tpu.memory_space<vmem>>, vector<1x30x30xf32>
    %9 = vector.shape_cast %8 : vector<1x30x30xf32> to vector<30x30xf32>
    %cst_7 = arith.constant dense<0.000000e+00> : vector<8x30xf32>
    %10 = tpu.matmul %7, %9, %cst_7 {dimension_numbers = #tpu.dot_dimension_numbers<[1], [0], [0], [1], [0, 0, 1, 1], [], []>} : vector<8x30xf32>, vector<30x30xf32>, vector<8x30xf32> -> vector<8x30xf32>
    %c0_8 = arith.constant 0 : index
    %c0_9 = arith.constant 0 : index
    %11 = vector.load %arg9[%c0_8, %c0_9] : memref<11x30xf32, #tpu.memory_space<vmem>>, vector<1x30xf32>
    %12 = vector.broadcast %11 : vector<1x30xf32> to vector<8x30xf32>
    %13 = arith.addf %10, %12 : vector<8x30xf32>
    %cst_10 = arith.constant 0.000000e+00 : f32
    %14 = vector.broadcast %cst_10 : f32 to vector<8x30xf32>
    %15 = arith.cmpf ogt, %13, %14 : vector<8x30xf32>
    %16 = math.exp %13 : vector<8x30xf32>
    %cst_11 = arith.constant 1.000000e+00 : f32
    %17 = vector.broadcast %cst_11 : f32 to vector<8x30xf32>
    %18 = arith.subf %16, %17 : vector<8x30xf32>
    %cst_12 = arith.constant 1.67326319 : f32
    %19 = vector.broadcast %cst_12 : f32 to vector<8x30xf32>
    %20 = arith.mulf %19, %18 : vector<8x30xf32>
    %21 = arith.select %15, %13, %20 : vector<8x30xi1>, vector<8x30xf32>
    %cst_13 = arith.constant 1.05070102 : f32
    %22 = vector.broadcast %cst_13 : f32 to vector<8x30xf32>
    %23 = arith.mulf %22, %21 : vector<8x30xf32>
    %c1 = arith.constant 1 : index
    %c0_14 = arith.constant 0 : index
    %c0_15 = arith.constant 0 : index
    %24 = vector.load %arg8[%c1, %c0_14, %c0_15] : memref<20x30x30xf32, #tpu.memory_space<vmem>>, vector<1x30x30xf32>
    %25 = vector.shape_cast %24 : vector<1x30x30xf32> to vector<30x30xf32>
    %cst_16 = arith.constant dense<0.000000e+00> : vector<8x30xf32>
    %26 = tpu.matmul %1, %25, %cst_16 {dimension_numbers = #tpu.dot_dimension_numbers<[1], [0], [0], [1], [0, 0, 1, 1], [], []>} : vector<8x30xf32>, vector<30x30xf32>, vector<8x30xf32> -> vector<8x30xf32>
    %c1_17 = arith.constant 1 : index
    %c0_18 = arith.constant 0 : index
    %27 = vector.load %arg9[%c1_17, %c0_18] : memref<11x30xf32, #tpu.memory_space<vmem>>, vector<1x30xf32>
    %28 = vector.broadcast %27 : vector<1x30xf32> to vector<8x30xf32>
    %29 = arith.addf %26, %28 : vector<8x30xf32>
    %cst_19 = arith.constant 0.000000e+00 : f32
    %30 = vector.broadcast %cst_19 : f32 to vector<8x30xf32>
    %31 = arith.cmpf ogt, %29, %30 : vector<8x30xf32>
    %32 = math.exp %29 : vector<8x30xf32>
    %cst_20 = arith.constant 1.000000e+00 : f32
    %33 = vector.broadcast %cst_20 : f32 to vector<8x30xf32>
    %34 = arith.subf %32, %33 : vector<8x30xf32>
    %cst_21 = arith.constant 1.67326319 : f32
    %35 = vector.broadcast %cst_21 : f32 to vector<8x30xf32>
    %36 = arith.mulf %35, %34 : vector<8x30xf32>
    %37 = arith.select %31, %29, %36 : vector<8x30xi1>, vector<8x30xf32>
    %cst_22 = arith.constant 1.05070102 : f32
    %38 = vector.broadcast %cst_22 : f32 to vector<8x30xf32>
    %39 = arith.mulf %38, %37 : vector<8x30xf32>
    %40 = arith.addf %23, %39 : vector<8x30xf32>
    %c4 = arith.constant 4 : index
    %c0_23 = arith.constant 0 : index
    %c0_24 = arith.constant 0 : index
    %41 = vector.load %arg8[%c4, %c0_23, %c0_24] : memref<20x30x30xf32, #tpu.memory_space<vmem>>, vector<1x30x30xf32>
    %42 = vector.shape_cast %41 : vector<1x30x30xf32> to vector<30x30xf32>
    %cst_25 = arith.constant dense<0.000000e+00> : vector<8x30xf32>
    %43 = tpu.matmul %40, %42, %cst_25 {dimension_numbers = #tpu.dot_dimension_numbers<[1], [0], [0], [1], [0, 0, 1, 1], [], []>} : vector<8x30xf32>, vector<30x30xf32>, vector<8x30xf32> -> vector<8x30xf32>
    %c0_26 = arith.constant 0 : index
    %c0_27 = arith.constant 0 : index
    %44 = vector.load %arg2[%c0_26, %c0_27] : memref<8x30xf32, #tpu.memory_space<vmem>>, vector<8x30xf32>
    %c5 = arith.constant 5 : index
    %c0_28 = arith.constant 0 : index
    %c0_29 = arith.constant 0 : index
    %45 = vector.load %arg8[%c5, %c0_28, %c0_29] : memref<20x30x30xf32, #tpu.memory_space<vmem>>, vector<1x30x30xf32>
    %46 = vector.shape_cast %45 : vector<1x30x30xf32> to vector<30x30xf32>
    %cst_30 = arith.constant dense<0.000000e+00> : vector<8x30xf32>
    %47 = tpu.matmul %44, %46, %cst_30 {dimension_numbers = #tpu.dot_dimension_numbers<[1], [0], [0], [1], [0, 0, 1, 1], [], []>} : vector<8x30xf32>, vector<30x30xf32>, vector<8x30xf32> -> vector<8x30xf32>
    %48 = arith.addf %43, %47 : vector<8x30xf32>
    %c4_31 = arith.constant 4 : index
    %c0_32 = arith.constant 0 : index
    %49 = vector.load %arg9[%c4_31, %c0_32] : memref<11x30xf32, #tpu.memory_space<vmem>>, vector<1x30xf32>
    %50 = vector.broadcast %49 : vector<1x30xf32> to vector<8x30xf32>
    %51 = arith.addf %48, %50 : vector<8x30xf32>
    %c0_33 = arith.constant 0 : index
    %c0_34 = arith.constant 0 : index
    %c0_35 = arith.constant 0 : index
    %52 = vector.load %arg3[%c0_33, %c0_34, %c0_35] : memref<2x3x30xf32, #tpu.memory_space<vmem>>, vector<2x3x30xf32>
    %cst_36 = arith.constant dense<0.000000e+00> : vector<2x30xf32>
    %53 = vector.multi_reduction <add>, %52, %cst_36 [1] : vector<2x3x30xf32> to vector<2x30xf32>
    %54 = arith.mulf %52, %52 : vector<2x3x30xf32>
    %cst_37 = arith.constant dense<0.000000e+00> : vector<2x30xf32>
    %55 = vector.multi_reduction <add>, %54, %cst_37 [1] : vector<2x3x30xf32> to vector<2x30xf32>
    %56 = arith.mulf %53, %53 : vector<2x30xf32>
    %57 = arith.subf %56, %55 : vector<2x30xf32>
    %cst_38 = arith.constant 5.000000e-01 : f32
    %58 = vector.broadcast %cst_38 : f32 to vector<2x30xf32>
    %59 = arith.mulf %58, %57 : vector<2x30xf32>
    %c2 = arith.constant 2 : index
    %c0_39 = arith.constant 0 : index
    %c0_40 = arith.constant 0 : index
    %60 = vector.load %arg8[%c2, %c0_39, %c0_40] : memref<20x30x30xf32, #tpu.memory_space<vmem>>, vector<1x30x30xf32>
    %61 = vector.shape_cast %60 : vector<1x30x30xf32> to vector<30x30xf32>
    %cst_41 = arith.constant dense<0.000000e+00> : vector<2x30xf32>
    %62 = tpu.matmul %59, %61, %cst_41 {dimension_numbers = #tpu.dot_dimension_numbers<[1], [0], [0], [1], [0, 0, 1, 1], [], []>} : vector<2x30xf32>, vector<30x30xf32>, vector<2x30xf32> -> vector<2x30xf32>
    %c2_42 = arith.constant 2 : index
    %c0_43 = arith.constant 0 : index
    %63 = vector.load %arg9[%c2_42, %c0_43] : memref<11x30xf32, #tpu.memory_space<vmem>>, vector<1x30xf32>
    %64 = vector.broadcast %63 : vector<1x30xf32> to vector<2x30xf32>
    %65 = arith.addf %62, %64 : vector<2x30xf32>
    %cst_44 = arith.constant 0.000000e+00 : f32
    %66 = vector.broadcast %cst_44 : f32 to vector<2x30xf32>
    %67 = arith.cmpf ogt, %65, %66 : vector<2x30xf32>
    %68 = math.exp %65 : vector<2x30xf32>
    %cst_45 = arith.constant 1.000000e+00 : f32
    %69 = vector.broadcast %cst_45 : f32 to vector<2x30xf32>
    %70 = arith.subf %68, %69 : vector<2x30xf32>
    %cst_46 = arith.constant 1.67326319 : f32
    %71 = vector.broadcast %cst_46 : f32 to vector<2x30xf32>
    %72 = arith.mulf %71, %70 : vector<2x30xf32>
    %73 = arith.select %67, %65, %72 : vector<2x30xi1>, vector<2x30xf32>
    %cst_47 = arith.constant 1.05070102 : f32
    %74 = vector.broadcast %cst_47 : f32 to vector<2x30xf32>
    %75 = arith.mulf %74, %73 : vector<2x30xf32>
    %c3 = arith.constant 3 : index
    %c0_48 = arith.constant 0 : index
    %c0_49 = arith.constant 0 : index
    %76 = vector.load %arg8[%c3, %c0_48, %c0_49] : memref<20x30x30xf32, #tpu.memory_space<vmem>>, vector<1x30x30xf32>
    %77 = vector.shape_cast %76 : vector<1x30x30xf32> to vector<30x30xf32>
    %cst_50 = arith.constant dense<0.000000e+00> : vector<2x30xf32>
    %78 = tpu.matmul %53, %77, %cst_50 {dimension_numbers = #tpu.dot_dimension_numbers<[1], [0], [0], [1], [0, 0, 1, 1], [], []>} : vector<2x30xf32>, vector<30x30xf32>, vector<2x30xf32> -> vector<2x30xf32>
    %c3_51 = arith.constant 3 : index
    %c0_52 = arith.constant 0 : index
    %79 = vector.load %arg9[%c3_51, %c0_52] : memref<11x30xf32, #tpu.memory_space<vmem>>, vector<1x30xf32>
    %80 = vector.broadcast %79 : vector<1x30xf32> to vector<2x30xf32>
    %81 = arith.addf %78, %80 : vector<2x30xf32>
    %cst_53 = arith.constant 0.000000e+00 : f32
    %82 = vector.broadcast %cst_53 : f32 to vector<2x30xf32>
    %83 = arith.cmpf ogt, %81, %82 : vector<2x30xf32>
    %84 = math.exp %81 : vector<2x30xf32>
    %cst_54 = arith.constant 1.000000e+00 : f32
    %85 = vector.broadcast %cst_54 : f32 to vector<2x30xf32>
    %86 = arith.subf %84, %85 : vector<2x30xf32>
    %cst_55 = arith.constant 1.67326319 : f32
    %87 = vector.broadcast %cst_55 : f32 to vector<2x30xf32>
    %88 = arith.mulf %87, %86 : vector<2x30xf32>
    %89 = arith.select %83, %81, %88 : vector<2x30xi1>, vector<2x30xf32>
    %cst_56 = arith.constant 1.05070102 : f32
    %90 = vector.broadcast %cst_56 : f32 to vector<2x30xf32>
    %91 = arith.mulf %90, %89 : vector<2x30xf32>
    %92 = arith.addf %75, %91 : vector<2x30xf32>
    %c0_57 = arith.constant 0 : index
    %c0_58 = arith.constant 0 : index
    %93 = vector.load %arg11[%c0_57, %c0_58] : memref<2x30xf32, #tpu.memory_space<vmem>>, vector<2x30xf32>
    tpu.vector_store %arg11[%c0_57, %c0_58], %92 {strides = array<i32>} : memref<2x30xf32, #tpu.memory_space<vmem>>, vector<2x30xf32>,
    %c6 = arith.constant 6 : index
    %c0_59 = arith.constant 0 : index
    %c0_60 = arith.constant 0 : index
    %94 = vector.load %arg8[%c6, %c0_59, %c0_60] : memref<20x30x30xf32, #tpu.memory_space<vmem>>, vector<1x30x30xf32>
    %95 = vector.shape_cast %94 : vector<1x30x30xf32> to vector<30x30xf32>
    %cst_61 = arith.constant dense<0.000000e+00> : vector<2x30xf32>
    %96 = tpu.matmul %92, %95, %cst_61 {dimension_numbers = #tpu.dot_dimension_numbers<[1], [0], [0], [1], [0, 0, 1, 1], [], []>} : vector<2x30xf32>, vector<30x30xf32>, vector<2x30xf32> -> vector<2x30xf32>
    %c0_62 = arith.constant 0 : index
    %c0_63 = arith.constant 0 : index
    %97 = vector.load %arg4[%c0_62, %c0_63] : memref<2x30xf32, #tpu.memory_space<vmem>>, vector<2x30xf32>
    %c7 = arith.constant 7 : index
    %c0_64 = arith.constant 0 : index
    %c0_65 = arith.constant 0 : index
    %98 = vector.load %arg8[%c7, %c0_64, %c0_65] : memref<20x30x30xf32, #tpu.memory_space<vmem>>, vector<1x30x30xf32>
    %99 = vector.shape_cast %98 : vector<1x30x30xf32> to vector<30x30xf32>
    %cst_66 = arith.constant dense<0.000000e+00> : vector<2x30xf32>
    %100 = tpu.matmul %97, %99, %cst_66 {dimension_numbers = #tpu.dot_dimension_numbers<[1], [0], [0], [1], [0, 0, 1, 1], [], []>} : vector<2x30xf32>, vector<30x30xf32>, vector<2x30xf32> -> vector<2x30xf32>
    %101 = arith.addf %96, %100 : vector<2x30xf32>
    %c5_67 = arith.constant 5 : index
    %c0_68 = arith.constant 0 : index
    %102 = vector.load %arg9[%c5_67, %c0_68] : memref<11x30xf32, #tpu.memory_space<vmem>>, vector<1x30xf32>
    %103 = vector.broadcast %102 : vector<1x30xf32> to vector<2x30xf32>
    %104 = arith.addf %101, %103 : vector<2x30xf32>
    %c0_69 = arith.constant 0 : index
    %c0_70 = arith.constant 0 : index
    %105 = vector.load %arg5[%c0_69, %c0_70] : memref<8x2xf32, #tpu.memory_space<vmem>>, vector<8x2xf32>
    %cst_71 = arith.constant dense<0.000000e+00> : vector<8x30xf32>
    %106 = tpu.matmul %105, %104, %cst_71 {dimension_numbers = #tpu.dot_dimension_numbers<[1], [0], [0], [1], [0, 0, 1, 1], [], []>} : vector<8x2xf32>, vector<2x30xf32>, vector<8x30xf32> -> vector<8x30xf32>
    %c8 = arith.constant 8 : index
    %c0_72 = arith.constant 0 : index
    %c0_73 = arith.constant 0 : index
    %107 = vector.load %arg8[%c8, %c0_72, %c0_73] : memref<20x30x30xf32, #tpu.memory_space<vmem>>, vector<1x30x30xf32>
    %108 = vector.shape_cast %107 : vector<1x30x30xf32> to vector<30x30xf32>
    %cst_74 = arith.constant dense<0.000000e+00> : vector<8x30xf32>
    %109 = tpu.matmul %106, %108, %cst_74 {dimension_numbers = #tpu.dot_dimension_numbers<[1], [0], [0], [1], [0, 0, 1, 1], [], []>} : vector<8x30xf32>, vector<30x30xf32>, vector<8x30xf32> -> vector<8x30xf32>
    %c9 = arith.constant 9 : index
    %c0_75 = arith.constant 0 : index
    %c0_76 = arith.constant 0 : index
    %110 = vector.load %arg8[%c9, %c0_75, %c0_76] : memref<20x30x30xf32, #tpu.memory_space<vmem>>, vector<1x30x30xf32>
    %111 = vector.shape_cast %110 : vector<1x30x30xf32> to vector<30x30xf32>
    %cst_77 = arith.constant dense<0.000000e+00> : vector<8x30xf32>
    %112 = tpu.matmul %51, %111, %cst_77 {dimension_numbers = #tpu.dot_dimension_numbers<[1], [0], [0], [1], [0, 0, 1, 1], [], []>} : vector<8x30xf32>, vector<30x30xf32>, vector<8x30xf32> -> vector<8x30xf32>
    %113 = arith.addf %109, %112 : vector<8x30xf32>
    %c10 = arith.constant 10 : index
    %c0_78 = arith.constant 0 : index
    %c0_79 = arith.constant 0 : index
    %114 = vector.load %arg8[%c10, %c0_78, %c0_79] : memref<20x30x30xf32, #tpu.memory_space<vmem>>, vector<1x30x30xf32>
    %115 = vector.shape_cast %114 : vector<1x30x30xf32> to vector<30x30xf32>
    %cst_80 = arith.constant dense<0.000000e+00> : vector<8x30xf32>
    %116 = tpu.matmul %106, %115, %cst_80 {dimension_numbers = #tpu.dot_dimension_numbers<[1], [0], [0], [1], [0, 0, 1, 1], [], []>} : vector<8x30xf32>, vector<30x30xf32>, vector<8x30xf32> -> vector<8x30xf32>
    %c11 = arith.constant 11 : index
    %c0_81 = arith.constant 0 : index
    %c0_82 = arith.constant 0 : index
    %117 = vector.load %arg8[%c11, %c0_81, %c0_82] : memref<20x30x30xf32, #tpu.memory_space<vmem>>, vector<1x30x30xf32>
    %118 = vector.shape_cast %117 : vector<1x30x30xf32> to vector<30x30xf32>
    %cst_83 = arith.constant dense<0.000000e+00> : vector<8x30xf32>
    %119 = tpu.matmul %51, %118, %cst_83 {dimension_numbers = #tpu.dot_dimension_numbers<[1], [0], [0], [1], [0, 0, 1, 1], [], []>} : vector<8x30xf32>, vector<30x30xf32>, vector<8x30xf32> -> vector<8x30xf32>
    %120 = arith.addf %116, %119 : vector<8x30xf32>
    %c12 = arith.constant 12 : index
    %c0_84 = arith.constant 0 : index
    %c0_85 = arith.constant 0 : index
    %121 = vector.load %arg8[%c12, %c0_84, %c0_85] : memref<20x30x30xf32, #tpu.memory_space<vmem>>, vector<1x30x30xf32>
    %122 = vector.shape_cast %121 : vector<1x30x30xf32> to vector<30x30xf32>
    %cst_86 = arith.constant dense<0.000000e+00> : vector<8x30xf32>
    %123 = tpu.matmul %106, %122, %cst_86 {dimension_numbers = #tpu.dot_dimension_numbers<[1], [0], [0], [1], [0, 0, 1, 1], [], []>} : vector<8x30xf32>, vector<30x30xf32>, vector<8x30xf32> -> vector<8x30xf32>
    %c13 = arith.constant 13 : index
    %c0_87 = arith.constant 0 : index
    %c0_88 = arith.constant 0 : index
    %124 = vector.load %arg8[%c13, %c0_87, %c0_88] : memref<20x30x30xf32, #tpu.memory_space<vmem>>, vector<1x30x30xf32>
    %125 = vector.shape_cast %124 : vector<1x30x30xf32> to vector<30x30xf32>
    %cst_89 = arith.constant dense<0.000000e+00> : vector<8x30xf32>
    %126 = tpu.matmul %51, %125, %cst_89 {dimension_numbers = #tpu.dot_dimension_numbers<[1], [0], [0], [1], [0, 0, 1, 1], [], []>} : vector<8x30xf32>, vector<30x30xf32>, vector<8x30xf32> -> vector<8x30xf32>
    %127 = arith.addf %123, %126 : vector<8x30xf32>
    %c0_90 = arith.constant 0 : index
    %c0_91 = arith.constant 0 : index
    %c0_92 = arith.constant 0 : index
    %128 = vector.load %arg7[%c0_90, %c0_91, %c0_92] : memref<2x8x8xf32, #tpu.memory_space<vmem>>, vector<1x8x8xf32>
    %129 = vector.shape_cast %128 : vector<1x8x8xf32> to vector<8x8xf32>
    %cst_93 = arith.constant dense<0.000000e+00> : vector<8x30xf32>
    %130 = tpu.matmul %129, %113, %cst_93 {dimension_numbers = #tpu.dot_dimension_numbers<[1], [0], [0], [1], [0, 0, 1, 1], [], []>} : vector<8x8xf32>, vector<8x30xf32>, vector<8x30xf32> -> vector<8x30xf32>
    %131 = arith.addf %130, %120 : vector<8x30xf32>
    %c1_94 = arith.constant 1 : index
    %c0_95 = arith.constant 0 : index
    %c0_96 = arith.constant 0 : index
    %132 = vector.load %arg7[%c1_94, %c0_95, %c0_96] : memref<2x8x8xf32, #tpu.memory_space<vmem>>, vector<1x8x8xf32>
    %133 = vector.shape_cast %132 : vector<1x8x8xf32> to vector<8x8xf32>
    %cst_97 = arith.constant dense<0.000000e+00> : vector<8x30xf32>
    %134 = tpu.matmul %133, %127, %cst_97 {dimension_numbers = #tpu.dot_dimension_numbers<[1], [0], [0], [1], [0, 0, 1, 1], [], []>} : vector<8x8xf32>, vector<8x30xf32>, vector<8x30xf32> -> vector<8x30xf32>
    %135 = arith.addf %131, %134 : vector<8x30xf32>
    %c6_98 = arith.constant 6 : index
    %c0_99 = arith.constant 0 : index
    %136 = vector.load %arg9[%c6_98, %c0_99] : memref<11x30xf32, #tpu.memory_space<vmem>>, vector<1x30xf32>
    %137 = vector.broadcast %136 : vector<1x30xf32> to vector<8x30xf32>
    %138 = arith.addf %135, %137 : vector<8x30xf32>
    %cst_100 = arith.constant 0.000000e+00 : f32
    %139 = vector.broadcast %cst_100 : f32 to vector<8x30xf32>
    %140 = arith.maximumf %138, %139 : vector<8x30xf32>
    %141 = math.absf %140 : vector<8x30xf32>
    %cst_101 = arith.constant 0.000000e+00 : f32
    %142 = vector.broadcast %cst_101 : f32 to vector<8x30xf32>
    %143 = arith.subf %142, %141 : vector<8x30xf32>
    %144 = math.exp %143 : vector<8x30xf32>
    %cst_102 = arith.constant 1.000000e+00 : f32
    %145 = vector.broadcast %cst_102 : f32 to vector<8x30xf32>
    %146 = arith.addf %145, %144 : vector<8x30xf32>
    %cst_103 = arith.constant 1.000000e+00 : f32
    %147 = vector.broadcast %cst_103 : f32 to vector<8x30xf32>
    %148 = arith.divf %147, %146 : vector<8x30xf32>
    %cst_104 = arith.constant 0.000000e+00 : f32
    %149 = vector.broadcast %cst_104 : f32 to vector<8x30xf32>
    %150 = arith.cmpf oge, %140, %149 : vector<8x30xf32>
    %cst_105 = arith.constant 1.000000e+00 : f32
    %151 = vector.broadcast %cst_105 : f32 to vector<8x30xf32>
    %152 = arith.subf %151, %148 : vector<8x30xf32>
    %153 = arith.select %150, %148, %152 : vector<8x30xi1>, vector<8x30xf32>
    %c0_106 = arith.constant 0 : index
    %c0_107 = arith.constant 0 : index
    %154 = vector.load %arg6[%c0_106, %c0_107] : memref<2x8xf32, #tpu.memory_space<vmem>>, vector<2x8xf32>
    %155 = arith.mulf %51, %153 : vector<8x30xf32>
    %cst_108 = arith.constant dense<0.000000e+00> : vector<2x30xf32>
    %156 = tpu.matmul %154, %155, %cst_108 {dimension_numbers = #tpu.dot_dimension_numbers<[1], [0], [0], [1], [0, 0, 1, 1], [], []>} : vector<2x8xf32>, vector<8x30xf32>, vector<2x30xf32> -> vector<2x30xf32>
    %cst_109 = arith.constant dense<0.000000e+00> : vector<2x30xf32>
    %157 = tpu.matmul %154, %51, %cst_109 {dimension_numbers = #tpu.dot_dimension_numbers<[1], [0], [0], [1], [0, 0, 1, 1], [], []>} : vector<2x8xf32>, vector<8x30xf32>, vector<2x30xf32> -> vector<2x30xf32>
    %c14 = arith.constant 14 : index
    %c0_110 = arith.constant 0 : index
    %c0_111 = arith.constant 0 : index
    %158 = vector.load %arg8[%c14, %c0_110, %c0_111] : memref<20x30x30xf32, #tpu.memory_space<vmem>>, vector<1x30x30xf32>
    %159 = vector.shape_cast %158 : vector<1x30x30xf32> to vector<30x30xf32>
    %cst_112 = arith.constant dense<0.000000e+00> : vector<2x30xf32>
    %160 = tpu.matmul %104, %159, %cst_112 {dimension_numbers = #tpu.dot_dimension_numbers<[1], [0], [0], [1], [0, 0, 1, 1], [], []>} : vector<2x30xf32>, vector<30x30xf32>, vector<2x30xf32> -> vector<2x30xf32>
    %c15 = arith.constant 15 : index
    %c0_113 = arith.constant 0 : index
    %c0_114 = arith.constant 0 : index
    %161 = vector.load %arg8[%c15, %c0_113, %c0_114] : memref<20x30x30xf32, #tpu.memory_space<vmem>>, vector<1x30x30xf32>
    %162 = vector.shape_cast %161 : vector<1x30x30xf32> to vector<30x30xf32>
    %cst_115 = arith.constant dense<0.000000e+00> : vector<2x30xf32>
    %163 = tpu.matmul %157, %162, %cst_115 {dimension_numbers = #tpu.dot_dimension_numbers<[1], [0], [0], [1], [0, 0, 1, 1], [], []>} : vector<2x30xf32>, vector<30x30xf32>, vector<2x30xf32> -> vector<2x30xf32>
    %164 = arith.addf %160, %163 : vector<2x30xf32>
    %c7_116 = arith.constant 7 : index
    %c0_117 = arith.constant 0 : index
    %165 = vector.load %arg9[%c7_116, %c0_117] : memref<11x30xf32, #tpu.memory_space<vmem>>, vector<1x30xf32>
    %166 = vector.broadcast %165 : vector<1x30xf32> to vector<2x30xf32>
    %167 = arith.addf %164, %166 : vector<2x30xf32>
    %168 = math.absf %167 : vector<2x30xf32>
    %cst_118 = arith.constant 0.000000e+00 : f32
    %169 = vector.broadcast %cst_118 : f32 to vector<2x30xf32>
    %170 = arith.subf %169, %168 : vector<2x30xf32>
    %171 = math.exp %170 : vector<2x30xf32>
    %cst_119 = arith.constant 1.000000e+00 : f32
    %172 = vector.broadcast %cst_119 : f32 to vector<2x30xf32>
    %173 = arith.addf %172, %171 : vector<2x30xf32>
    %cst_120 = arith.constant 1.000000e+00 : f32
    %174 = vector.broadcast %cst_120 : f32 to vector<2x30xf32>
    %175 = arith.divf %174, %173 : vector<2x30xf32>
    %cst_121 = arith.constant 0.000000e+00 : f32
    %176 = vector.broadcast %cst_121 : f32 to vector<2x30xf32>
    %177 = arith.cmpf oge, %167, %176 : vector<2x30xf32>
    %cst_122 = arith.constant 1.000000e+00 : f32
    %178 = vector.broadcast %cst_122 : f32 to vector<2x30xf32>
    %179 = arith.subf %178, %175 : vector<2x30xf32>
    %180 = arith.select %177, %175, %179 : vector<2x30xi1>, vector<2x30xf32>
    %c16 = arith.constant 16 : index
    %c0_123 = arith.constant 0 : index
    %c0_124 = arith.constant 0 : index
    %181 = vector.load %arg8[%c16, %c0_123, %c0_124] : memref<20x30x30xf32, #tpu.memory_space<vmem>>, vector<1x30x30xf32>
    %182 = vector.shape_cast %181 : vector<1x30x30xf32> to vector<30x30xf32>
    %cst_125 = arith.constant dense<0.000000e+00> : vector<2x30xf32>
    %183 = tpu.matmul %104, %182, %cst_125 {dimension_numbers = #tpu.dot_dimension_numbers<[1], [0], [0], [1], [0, 0, 1, 1], [], []>} : vector<2x30xf32>, vector<30x30xf32>, vector<2x30xf32> -> vector<2x30xf32>
    %c17 = arith.constant 17 : index
    %c0_126 = arith.constant 0 : index
    %c0_127 = arith.constant 0 : index
    %184 = vector.load %arg8[%c17, %c0_126, %c0_127] : memref<20x30x30xf32, #tpu.memory_space<vmem>>, vector<1x30x30xf32>
    %185 = vector.shape_cast %184 : vector<1x30x30xf32> to vector<30x30xf32>
    %cst_128 = arith.constant dense<0.000000e+00> : vector<2x30xf32>
    %186 = tpu.matmul %157, %185, %cst_128 {dimension_numbers = #tpu.dot_dimension_numbers<[1], [0], [0], [1], [0, 0, 1, 1], [], []>} : vector<2x30xf32>, vector<30x30xf32>, vector<2x30xf32> -> vector<2x30xf32>
    %187 = arith.addf %183, %186 : vector<2x30xf32>
    %c8_129 = arith.constant 8 : index
    %c0_130 = arith.constant 0 : index
    %188 = vector.load %arg9[%c8_129, %c0_130] : memref<11x30xf32, #tpu.memory_space<vmem>>, vector<1x30xf32>
    %189 = vector.broadcast %188 : vector<1x30xf32> to vector<2x30xf32>
    %190 = arith.addf %187, %189 : vector<2x30xf32>
    %191 = math.absf %190 : vector<2x30xf32>
    %cst_131 = arith.constant 0.000000e+00 : f32
    %192 = vector.broadcast %cst_131 : f32 to vector<2x30xf32>
    %193 = arith.subf %192, %191 : vector<2x30xf32>
    %194 = math.exp %193 : vector<2x30xf32>
    %cst_132 = arith.constant 1.000000e+00 : f32
    %195 = vector.broadcast %cst_132 : f32 to vector<2x30xf32>
    %196 = arith.addf %195, %194 : vector<2x30xf32>
    %cst_133 = arith.constant 1.000000e+00 : f32
    %197 = vector.broadcast %cst_133 : f32 to vector<2x30xf32>
    %198 = arith.divf %197, %196 : vector<2x30xf32>
    %cst_134 = arith.constant 0.000000e+00 : f32
    %199 = vector.broadcast %cst_134 : f32 to vector<2x30xf32>
    %200 = arith.cmpf oge, %190, %199 : vector<2x30xf32>
    %cst_135 = arith.constant 1.000000e+00 : f32
    %201 = vector.broadcast %cst_135 : f32 to vector<2x30xf32>
    %202 = arith.subf %201, %198 : vector<2x30xf32>
    %203 = arith.select %200, %198, %202 : vector<2x30xi1>, vector<2x30xf32>
    %c18 = arith.constant 18 : index
    %c0_136 = arith.constant 0 : index
    %c0_137 = arith.constant 0 : index
    %204 = vector.load %arg8[%c18, %c0_136, %c0_137] : memref<20x30x30xf32, #tpu.memory_space<vmem>>, vector<1x30x30xf32>
    %205 = vector.shape_cast %204 : vector<1x30x30xf32> to vector<30x30xf32>
    %cst_138 = arith.constant dense<0.000000e+00> : vector<2x30xf32>
    %206 = tpu.matmul %104, %205, %cst_138 {dimension_numbers = #tpu.dot_dimension_numbers<[1], [0], [0], [1], [0, 0, 1, 1], [], []>} : vector<2x30xf32>, vector<30x30xf32>, vector<2x30xf32> -> vector<2x30xf32>
    %c19 = arith.constant 19 : index
    %c0_139 = arith.constant 0 : index
    %c0_140 = arith.constant 0 : index
    %207 = vector.load %arg8[%c19, %c0_139, %c0_140] : memref<20x30x30xf32, #tpu.memory_space<vmem>>, vector<1x30x30xf32>
    %208 = vector.shape_cast %207 : vector<1x30x30xf32> to vector<30x30xf32>
    %cst_141 = arith.constant dense<0.000000e+00> : vector<2x30xf32>
    %209 = tpu.matmul %157, %208, %cst_141 {dimension_numbers = #tpu.dot_dimension_numbers<[1], [0], [0], [1], [0, 0, 1, 1], [], []>} : vector<2x30xf32>, vector<30x30xf32>, vector<2x30xf32> -> vector<2x30xf32>
    %210 = arith.addf %206, %209 : vector<2x30xf32>
    %c9_142 = arith.constant 9 : index
    %c0_143 = arith.constant 0 : index
    %211 = vector.load %arg9[%c9_142, %c0_143] : memref<11x30xf32, #tpu.memory_space<vmem>>, vector<1x30xf32>
    %212 = vector.broadcast %211 : vector<1x30xf32> to vector<2x30xf32>
    %213 = arith.addf %210, %212 : vector<2x30xf32>
    %c10_144 = arith.constant 10 : index
    %c0_145 = arith.constant 0 : index
    %214 = vector.load %arg9[%c10_144, %c0_145] : memref<11x30xf32, #tpu.memory_space<vmem>>, vector<1x30xf32>
    %215 = vector.broadcast %214 : vector<1x30xf32> to vector<2x30xf32>
    %216 = arith.mulf %180, %215 : vector<2x30xf32>
    %217 = arith.addf %213, %216 : vector<2x30xf32>
    %218 = math.tanh %217 : vector<2x30xf32>
    %cst_146 = arith.constant 1.000000e+00 : f32
    %219 = vector.broadcast %cst_146 : f32 to vector<2x30xf32>
    %220 = arith.subf %219, %203 : vector<2x30xf32>
    %221 = arith.mulf %220, %218 : vector<2x30xf32>
    %222 = math.absf %221 : vector<2x30xf32>
    %cst_147 = arith.constant 0.000000e+00 : f32
    %223 = vector.broadcast %cst_147 : f32 to vector<2x30xf32>
    %224 = arith.subf %223, %222 : vector<2x30xf32>
    %225 = math.exp %224 : vector<2x30xf32>
    %cst_148 = arith.constant 1.000000e+00 : f32
    %226 = vector.broadcast %cst_148 : f32 to vector<2x30xf32>
    %227 = arith.addf %226, %225 : vector<2x30xf32>
    %cst_149 = arith.constant 1.000000e+00 : f32
    %228 = vector.broadcast %cst_149 : f32 to vector<2x30xf32>
    %229 = arith.divf %228, %227 : vector<2x30xf32>
    %cst_150 = arith.constant 0.000000e+00 : f32
    %230 = vector.broadcast %cst_150 : f32 to vector<2x30xf32>
    %231 = arith.cmpf oge, %221, %230 : vector<2x30xf32>
    %cst_151 = arith.constant 1.000000e+00 : f32
    %232 = vector.broadcast %cst_151 : f32 to vector<2x30xf32>
    %233 = arith.subf %232, %229 : vector<2x30xf32>
    %234 = arith.select %231, %229, %233 : vector<2x30xi1>, vector<2x30xf32>
    %cst_152 = arith.constant 1.000000e+00 : f32
    %235 = vector.broadcast %cst_152 : f32 to vector<2x30xf32>
    %236 = arith.subf %235, %234 : vector<2x30xf32>
    %237 = arith.mulf %236, %104 : vector<2x30xf32>
    %238 = arith.addf %237, %156 : vector<2x30xf32>
    %cst_153 = arith.constant 0.000000e+00 : f32
    %239 = vector.broadcast %cst_153 : f32 to vector<2x30xf32>
    %240 = arith.cmpf ogt, %238, %239 : vector<2x30xf32>
    %241 = math.exp %238 : vector<2x30xf32>
    %cst_154 = arith.constant 1.000000e+00 : f32
    %242 = vector.broadcast %cst_154 : f32 to vector<2x30xf32>
    %243 = arith.subf %241, %242 : vector<2x30xf32>
    %cst_155 = arith.constant 1.67326319 : f32
    %244 = vector.broadcast %cst_155 : f32 to vector<2x30xf32>
    %245 = arith.mulf %244, %243 : vector<2x30xf32>
    %246 = arith.select %240, %238, %245 : vector<2x30xi1>, vector<2x30xf32>
    %cst_156 = arith.constant 1.05070102 : f32
    %247 = vector.broadcast %cst_156 : f32 to vector<2x30xf32>
    %248 = arith.mulf %247, %246 : vector<2x30xf32>
    %c0_157 = arith.constant 0 : index
    %c0_158 = arith.constant 0 : index
    %249 = vector.load %arg10[%c0_157, %c0_158] : memref<2x30xf32, #tpu.memory_space<vmem>>, vector<2x30xf32>
    tpu.vector_store %arg10[%c0_157, %c0_158], %248 {strides = array<i32>} : memref<2x30xf32, #tpu.memory_space<vmem>>, vector<2x30xf32>,
    return
  }
  func.func @transform_0(%arg0: i32) -> (i32, i32, i32) {
    %c0_i32 = arith.constant 0 : i32
    %c0_i32_0 = arith.constant 0 : i32
    %c0_i32_1 = arith.constant 0 : i32
    %c0_i32_2 = arith.constant 0 : i32
    return %c0_i32, %c0_i32_0, %c0_i32_1 : i32, i32, i32
  }
  func.func @transform_1(%arg0: i32) -> (i32, i32) {
    %c0_i32 = arith.constant 0 : i32
    %c0_i32_0 = arith.constant 0 : i32
    %c0_i32_1 = arith.constant 0 : i32
    return %c0_i32, %c0_i32_0 : i32, i32
  }
  func.func @transform_2(%arg0: i32) -> (i32, i32, i32) {
    %c0_i32 = arith.constant 0 : i32
    %c0_i32_0 = arith.constant 0 : i32
    %c0_i32_1 = arith.constant 0 : i32
    %c0_i32_2 = arith.constant 0 : i32
    return %c0_i32, %c0_i32_0, %c0_i32_1 : i32, i32, i32
  }
  func.func @transform_3(%arg0: i32) -> (i32, i32) {
    %c0_i32 = arith.constant 0 : i32
    %c0_i32_0 = arith.constant 0 : i32
    %c0_i32_1 = arith.constant 0 : i32
    return %c0_i32, %c0_i32_0 : i32, i32
  }
  func.func @transform_4(%arg0: i32) -> (i32, i32) {
    %c0_i32 = arith.constant 0 : i32
    %c0_i32_0 = arith.constant 0 : i32
    %c0_i32_1 = arith.constant 0 : i32
    return %c0_i32, %c0_i32_0 : i32, i32
  }
  func.func @transform_5(%arg0: i32) -> (i32, i32) {
    %c0_i32 = arith.constant 0 : i32
    %c0_i32_0 = arith.constant 0 : i32
    %c0_i32_1 = arith.constant 0 : i32
    return %c0_i32, %c0_i32_0 : i32, i32
  }
  func.func @transform_6(%arg0: i32) -> (i32, i32, i32) {
    %c0_i32 = arith.constant 0 : i32
    %c0_i32_0 = arith.constant 0 : i32
    %c0_i32_1 = arith.constant 0 : i32
    %c0_i32_2 = arith.constant 0 : i32
    return %c0_i32, %c0_i32_0, %c0_i32_1 : i32, i32, i32
  }
  func.func @transform_7(%arg0: i32) -> (i32, i32, i32) {
    %c0_i32 = arith.constant 0 : i32
    %c0_i32_0 = arith.constant 0 : i32
    %c0_i32_1 = arith.constant 0 : i32
    %c0_i32_2 = arith.constant 0 : i32
    return %c0_i32, %c0_i32_0, %c0_i32_1 : i32, i32, i32
  }
  func.func @transform_8(%arg0: i32) -> (i32, i32) {
    %c0_i32 = arith.constant 0 : i32
    %c0_i32_0 = arith.constant 0 : i32
    %c0_i32_1 = arith.constant 0 : i32
    return %c0_i32, %c0_i32_0 : i32, i32
  }
  func.func @transform_9(%arg0: i32) -> (i32, i32) {
    %c0_i32 = arith.constant 0 : i32
    %c0_i32_0 = arith.constant 0 : i32
    %c0_i32_1 = arith.constant 0 : i32
    return %c0_i32, %c0_i32_0 : i32, i32
  }
  func.func @transform_10(%arg0: i32) -> (i32, i32) {
    %c0_i32 = arith.constant 0 : i32
    %c0_i32_0 = arith.constant 0 : i32
    %c0_i32_1 = arith.constant 0 : i32
    return %c0_i32, %c0_i32_0 : i32, i32
  }
}

module attributes {stable_mosaic.version = 11 : i64} {
  func.func @_tail_kernel(%arg0: i32, %arg1: memref<2x30xf32, #tpu.memory_space<vmem>>, %arg2: memref<2x30xf32, #tpu.memory_space<vmem>>, %arg3: memref<2x30xf32, #tpu.memory_space<vmem>>, %arg4: memref<2x30xf32, #tpu.memory_space<vmem>>, %arg5: memref<2x30xf32, #tpu.memory_space<vmem>>, %arg6: memref<2x2x30xf32, #tpu.memory_space<vmem>>, %arg7: memref<2x1xf32, #tpu.memory_space<vmem>>, %arg8: memref<2x1xf32, #tpu.memory_space<vmem>>, %arg9: memref<30x30xf32, #tpu.memory_space<vmem>>, %arg10: memref<1x30xf32, #tpu.memory_space<vmem>>, %arg11: memref<30x30xf32, #tpu.memory_space<vmem>>, %arg12: memref<1x30xf32, #tpu.memory_space<vmem>>, %arg13: memref<30x30xf32, #tpu.memory_space<vmem>>, %arg14: memref<1x30xf32, #tpu.memory_space<vmem>>, %arg15: memref<30x30xf32, #tpu.memory_space<vmem>>, %arg16: memref<1x30xf32, #tpu.memory_space<vmem>>, %arg17: memref<30x30xf32, #tpu.memory_space<vmem>>, %arg18: memref<1x30xf32, #tpu.memory_space<vmem>>, %arg19: memref<30x30xf32, #tpu.memory_space<vmem>>, %arg20: memref<1x30xf32, #tpu.memory_space<vmem>>, %arg21: memref<30x30xf32, #tpu.memory_space<vmem>>, %arg22: memref<1x30xf32, #tpu.memory_space<vmem>>, %arg23: memref<30x128xf32, #tpu.memory_space<vmem>>, %arg24: memref<1x128xf32, #tpu.memory_space<vmem>>, %arg25: memref<128x1xf32, #tpu.memory_space<vmem>>, %arg26: memref<1x1xf32, #tpu.memory_space<vmem>>, %arg27: memref<30x1xf32, #tpu.memory_space<vmem>>, %arg28: memref<30x1xf32, #tpu.memory_space<vmem>>, %arg29: memref<1x1xf32, #tpu.memory_space<vmem>>, %arg30: memref<1x1xf32, #tpu.memory_space<vmem>>, %arg31: memref<2x1xf32, #tpu.memory_space<vmem>>, %arg32: memref<1x1xf32, #tpu.memory_space<vmem>>, %arg33: memref<1x1xf32, #tpu.memory_space<vmem>>, %arg34: memref<1x1xf32, #tpu.memory_space<vmem>>) attributes {dimension_semantics = [#tpu.dimension_semantics<arbitrary>], iteration_bounds = array<i64: 1>, scalar_prefetch = 0 : i64, scratch_operands = 0 : i64, tpu.core_type = #tpu.core_type<tc>, window_params = [{pipeline_mode = #tpu.pipeline_mode<synchronous>, transform_indices = @transform_0, window_bounds = array<i64: 2, 30>}, {pipeline_mode = #tpu.pipeline_mode<synchronous>, transform_indices = @transform_1, window_bounds = array<i64: 2, 30>}, {pipeline_mode = #tpu.pipeline_mode<synchronous>, transform_indices = @transform_2, window_bounds = array<i64: 2, 30>}, {pipeline_mode = #tpu.pipeline_mode<synchronous>, transform_indices = @transform_3, window_bounds = array<i64: 2, 30>}, {pipeline_mode = #tpu.pipeline_mode<synchronous>, transform_indices = @transform_4, window_bounds = array<i64: 2, 30>}, {pipeline_mode = #tpu.pipeline_mode<synchronous>, transform_indices = @transform_5, window_bounds = array<i64: 2, 2, 30>}, {pipeline_mode = #tpu.pipeline_mode<synchronous>, transform_indices = @transform_6, window_bounds = array<i64: 2, 1>}, {pipeline_mode = #tpu.pipeline_mode<synchronous>, transform_indices = @transform_7, window_bounds = array<i64: 2, 1>}, {pipeline_mode = #tpu.pipeline_mode<synchronous>, transform_indices = @transform_8, window_bounds = array<i64: 30, 30>}, {pipeline_mode = #tpu.pipeline_mode<synchronous>, transform_indices = @transform_9, window_bounds = array<i64: 1, 30>}, {pipeline_mode = #tpu.pipeline_mode<synchronous>, transform_indices = @transform_10, window_bounds = array<i64: 30, 30>}, {pipeline_mode = #tpu.pipeline_mode<synchronous>, transform_indices = @transform_11, window_bounds = array<i64: 1, 30>}, {pipeline_mode = #tpu.pipeline_mode<synchronous>, transform_indices = @transform_12, window_bounds = array<i64: 30, 30>}, {pipeline_mode = #tpu.pipeline_mode<synchronous>, transform_indices = @transform_13, window_bounds = array<i64: 1, 30>}, {pipeline_mode = #tpu.pipeline_mode<synchronous>, transform_indices = @transform_14, window_bounds = array<i64: 30, 30>}, {pipeline_mode = #tpu.pipeline_mode<synchronous>, transform_indices = @transform_15, window_bounds = array<i64: 1, 30>}, {pipeline_mode = #tpu.pipeline_mode<synchronous>, transform_indices = @transform_16, window_bounds = array<i64: 30, 30>}, {pipeline_mode = #tpu.pipeline_mode<synchronous>, transform_indices = @transform_17, window_bounds = array<i64: 1, 30>}, {pipeline_mode = #tpu.pipeline_mode<synchronous>, transform_indices = @transform_18, window_bounds = array<i64: 30, 30>}, {pipeline_mode = #tpu.pipeline_mode<synchronous>, transform_indices = @transform_19, window_bounds = array<i64: 1, 30>}, {pipeline_mode = #tpu.pipeline_mode<synchronous>, transform_indices = @transform_20, window_bounds = array<i64: 30, 30>}, {pipeline_mode = #tpu.pipeline_mode<synchronous>, transform_indices = @transform_21, window_bounds = array<i64: 1, 30>}, {pipeline_mode = #tpu.pipeline_mode<synchronous>, transform_indices = @transform_22, window_bounds = array<i64: 30, 128>}, {pipeline_mode = #tpu.pipeline_mode<synchronous>, transform_indices = @transform_23, window_bounds = array<i64: 1, 128>}, {pipeline_mode = #tpu.pipeline_mode<synchronous>, transform_indices = @transform_24, window_bounds = array<i64: 128, 1>}, {pipeline_mode = #tpu.pipeline_mode<synchronous>, transform_indices = @transform_25, window_bounds = array<i64: 1, 1>}, {pipeline_mode = #tpu.pipeline_mode<synchronous>, transform_indices = @transform_26, window_bounds = array<i64: 30, 1>}, {pipeline_mode = #tpu.pipeline_mode<synchronous>, transform_indices = @transform_27, window_bounds = array<i64: 30, 1>}, {pipeline_mode = #tpu.pipeline_mode<synchronous>, transform_indices = @transform_28, window_bounds = array<i64: 1, 1>}, {pipeline_mode = #tpu.pipeline_mode<synchronous>, transform_indices = @transform_29, window_bounds = array<i64: 1, 1>}, {pipeline_mode = #tpu.pipeline_mode<synchronous>, transform_indices = @transform_30, window_bounds = array<i64: 2, 1>}, {pipeline_mode = #tpu.pipeline_mode<synchronous>, transform_indices = @transform_31, window_bounds = array<i64: 1, 1>}, {pipeline_mode = #tpu.pipeline_mode<synchronous>, transform_indices = @transform_32, window_bounds = array<i64: 1, 1>}, {pipeline_mode = #tpu.pipeline_mode<synchronous>, transform_indices = @transform_33, window_bounds = array<i64: 1, 1>}]} {
    %c0 = arith.constant 0 : index
    %c0_0 = arith.constant 0 : index
    %0 = vector.load %arg1[%c0, %c0_0] : memref<2x30xf32, #tpu.memory_space<vmem>>, vector<2x30xf32>
    %c0_1 = arith.constant 0 : index
    %c0_2 = arith.constant 0 : index
    %1 = vector.load %arg9[%c0_1, %c0_2] : memref<30x30xf32, #tpu.memory_space<vmem>>, vector<30x30xf32>
    %cst = arith.constant dense<0.000000e+00> : vector<2x30xf32>
    %2 = tpu.matmul %0, %1, %cst {dimension_numbers = #tpu.dot_dimension_numbers<[1], [0], [0], [1], [0, 0, 1, 1], [], []>} : vector<2x30xf32>, vector<30x30xf32>, vector<2x30xf32> -> vector<2x30xf32>
    %c0_3 = arith.constant 0 : index
    %c0_4 = arith.constant 0 : index
    %3 = vector.load %arg10[%c0_3, %c0_4] : memref<1x30xf32, #tpu.memory_space<vmem>>, vector<1x30xf32>
    %4 = vector.broadcast %3 : vector<1x30xf32> to vector<2x30xf32>
    %5 = arith.addf %2, %4 : vector<2x30xf32>
    %cst_5 = arith.constant 0.000000e+00 : f32
    %6 = vector.broadcast %cst_5 : f32 to vector<2x30xf32>
    %7 = arith.cmpf ogt, %5, %6 : vector<2x30xf32>
    %8 = math.exp %5 : vector<2x30xf32>
    %cst_6 = arith.constant 1.000000e+00 : f32
    %9 = vector.broadcast %cst_6 : f32 to vector<2x30xf32>
    %10 = arith.subf %8, %9 : vector<2x30xf32>
    %cst_7 = arith.constant 1.67326319 : f32
    %11 = vector.broadcast %cst_7 : f32 to vector<2x30xf32>
    %12 = arith.mulf %11, %10 : vector<2x30xf32>
    %13 = arith.select %7, %5, %12 : vector<2x30xi1>, vector<2x30xf32>
    %cst_8 = arith.constant 1.05070102 : f32
    %14 = vector.broadcast %cst_8 : f32 to vector<2x30xf32>
    %15 = arith.mulf %14, %13 : vector<2x30xf32>
    %c0_9 = arith.constant 0 : index
    %c0_10 = arith.constant 0 : index
    %16 = vector.load %arg11[%c0_9, %c0_10] : memref<30x30xf32, #tpu.memory_space<vmem>>, vector<30x30xf32>
    %cst_11 = arith.constant dense<0.000000e+00> : vector<2x30xf32>
    %17 = tpu.matmul %15, %16, %cst_11 {dimension_numbers = #tpu.dot_dimension_numbers<[1], [0], [0], [1], [0, 0, 1, 1], [], []>} : vector<2x30xf32>, vector<30x30xf32>, vector<2x30xf32> -> vector<2x30xf32>
    %c0_12 = arith.constant 0 : index
    %c0_13 = arith.constant 0 : index
    %18 = vector.load %arg12[%c0_12, %c0_13] : memref<1x30xf32, #tpu.memory_space<vmem>>, vector<1x30xf32>
    %19 = vector.broadcast %18 : vector<1x30xf32> to vector<2x30xf32>
    %20 = arith.addf %17, %19 : vector<2x30xf32>
    %c0_14 = arith.constant 0 : index
    %c0_15 = arith.constant 0 : index
    %21 = vector.load %arg13[%c0_14, %c0_15] : memref<30x30xf32, #tpu.memory_space<vmem>>, vector<30x30xf32>
    %cst_16 = arith.constant dense<0.000000e+00> : vector<2x30xf32>
    %22 = tpu.matmul %15, %21, %cst_16 {dimension_numbers = #tpu.dot_dimension_numbers<[1], [0], [0], [1], [0, 0, 1, 1], [], []>} : vector<2x30xf32>, vector<30x30xf32>, vector<2x30xf32> -> vector<2x30xf32>
    %c0_17 = arith.constant 0 : index
    %c0_18 = arith.constant 0 : index
    %23 = vector.load %arg14[%c0_17, %c0_18] : memref<1x30xf32, #tpu.memory_space<vmem>>, vector<1x30xf32>
    %24 = vector.broadcast %23 : vector<1x30xf32> to vector<2x30xf32>
    %25 = arith.addf %22, %24 : vector<2x30xf32>
    %cst_19 = arith.constant 5.000000e-01 : f32
    %26 = vector.broadcast %cst_19 : f32 to vector<2x30xf32>
    %27 = arith.mulf %26, %25 : vector<2x30xf32>
    %28 = math.exp %27 : vector<2x30xf32>
    %c0_20 = arith.constant 0 : index
    %c0_21 = arith.constant 0 : index
    %c0_22 = arith.constant 0 : index
    %29 = vector.load %arg6[%c0_20, %c0_21, %c0_22] : memref<2x2x30xf32, #tpu.memory_space<vmem>>, vector<1x2x30xf32>
    %30 = vector.shape_cast %29 : vector<1x2x30xf32> to vector<2x30xf32>
    %31 = arith.mulf %30, %28 : vector<2x30xf32>
    %32 = arith.addf %20, %31 : vector<2x30xf32>
    %c1 = arith.constant 1 : index
    %c0_23 = arith.constant 0 : index
    %c0_24 = arith.constant 0 : index
    %33 = vector.load %arg6[%c1, %c0_23, %c0_24] : memref<2x2x30xf32, #tpu.memory_space<vmem>>, vector<1x2x30xf32>
    %34 = vector.shape_cast %33 : vector<1x2x30xf32> to vector<2x30xf32>
    %35 = arith.mulf %34, %28 : vector<2x30xf32>
    %36 = arith.addf %20, %35 : vector<2x30xf32>
    %c0_25 = arith.constant 0 : index
    %c0_26 = arith.constant 0 : index
    %37 = vector.load %arg15[%c0_25, %c0_26] : memref<30x30xf32, #tpu.memory_space<vmem>>, vector<30x30xf32>
    %cst_27 = arith.constant dense<0.000000e+00> : vector<2x30xf32>
    %38 = tpu.matmul %32, %37, %cst_27 {dimension_numbers = #tpu.dot_dimension_numbers<[1], [0], [0], [1], [0, 0, 1, 1], [], []>} : vector<2x30xf32>, vector<30x30xf32>, vector<2x30xf32> -> vector<2x30xf32>
    %c0_28 = arith.constant 0 : index
    %c0_29 = arith.constant 0 : index
    %39 = vector.load %arg16[%c0_28, %c0_29] : memref<1x30xf32, #tpu.memory_space<vmem>>, vector<1x30xf32>
    %40 = vector.broadcast %39 : vector<1x30xf32> to vector<2x30xf32>
    %41 = arith.addf %38, %40 : vector<2x30xf32>
    %cst_30 = arith.constant 0.000000e+00 : f32
    %42 = vector.broadcast %cst_30 : f32 to vector<2x30xf32>
    %43 = arith.cmpf ogt, %41, %42 : vector<2x30xf32>
    %44 = math.exp %41 : vector<2x30xf32>
    %cst_31 = arith.constant 1.000000e+00 : f32
    %45 = vector.broadcast %cst_31 : f32 to vector<2x30xf32>
    %46 = arith.subf %44, %45 : vector<2x30xf32>
    %cst_32 = arith.constant 1.67326319 : f32
    %47 = vector.broadcast %cst_32 : f32 to vector<2x30xf32>
    %48 = arith.mulf %47, %46 : vector<2x30xf32>
    %49 = arith.select %43, %41, %48 : vector<2x30xi1>, vector<2x30xf32>
    %cst_33 = arith.constant 1.05070102 : f32
    %50 = vector.broadcast %cst_33 : f32 to vector<2x30xf32>
    %51 = arith.mulf %50, %49 : vector<2x30xf32>
    %c0_34 = arith.constant 0 : index
    %c0_35 = arith.constant 0 : index
    %52 = vector.load %arg17[%c0_34, %c0_35] : memref<30x30xf32, #tpu.memory_space<vmem>>, vector<30x30xf32>
    %cst_36 = arith.constant dense<0.000000e+00> : vector<2x30xf32>
    %53 = tpu.matmul %51, %52, %cst_36 {dimension_numbers = #tpu.dot_dimension_numbers<[1], [0], [0], [1], [0, 0, 1, 1], [], []>} : vector<2x30xf32>, vector<30x30xf32>, vector<2x30xf32> -> vector<2x30xf32>
    %c0_37 = arith.constant 0 : index
    %c0_38 = arith.constant 0 : index
    %54 = vector.load %arg18[%c0_37, %c0_38] : memref<1x30xf32, #tpu.memory_space<vmem>>, vector<1x30xf32>
    %55 = vector.broadcast %54 : vector<1x30xf32> to vector<2x30xf32>
    %56 = arith.addf %53, %55 : vector<2x30xf32>
    %c0_39 = arith.constant 0 : index
    %c0_40 = arith.constant 0 : index
    %57 = vector.load %arg19[%c0_39, %c0_40] : memref<30x30xf32, #tpu.memory_space<vmem>>, vector<30x30xf32>
    %cst_41 = arith.constant dense<0.000000e+00> : vector<2x30xf32>
    %58 = tpu.matmul %36, %57, %cst_41 {dimension_numbers = #tpu.dot_dimension_numbers<[1], [0], [0], [1], [0, 0, 1, 1], [], []>} : vector<2x30xf32>, vector<30x30xf32>, vector<2x30xf32> -> vector<2x30xf32>
    %c0_42 = arith.constant 0 : index
    %c0_43 = arith.constant 0 : index
    %59 = vector.load %arg20[%c0_42, %c0_43] : memref<1x30xf32, #tpu.memory_space<vmem>>, vector<1x30xf32>
    %60 = vector.broadcast %59 : vector<1x30xf32> to vector<2x30xf32>
    %61 = arith.addf %58, %60 : vector<2x30xf32>
    %cst_44 = arith.constant 0.000000e+00 : f32
    %62 = vector.broadcast %cst_44 : f32 to vector<2x30xf32>
    %63 = arith.cmpf ogt, %61, %62 : vector<2x30xf32>
    %64 = math.exp %61 : vector<2x30xf32>
    %cst_45 = arith.constant 1.000000e+00 : f32
    %65 = vector.broadcast %cst_45 : f32 to vector<2x30xf32>
    %66 = arith.subf %64, %65 : vector<2x30xf32>
    %cst_46 = arith.constant 1.67326319 : f32
    %67 = vector.broadcast %cst_46 : f32 to vector<2x30xf32>
    %68 = arith.mulf %67, %66 : vector<2x30xf32>
    %69 = arith.select %63, %61, %68 : vector<2x30xi1>, vector<2x30xf32>
    %cst_47 = arith.constant 1.05070102 : f32
    %70 = vector.broadcast %cst_47 : f32 to vector<2x30xf32>
    %71 = arith.mulf %70, %69 : vector<2x30xf32>
    %c0_48 = arith.constant 0 : index
    %c0_49 = arith.constant 0 : index
    %72 = vector.load %arg21[%c0_48, %c0_49] : memref<30x30xf32, #tpu.memory_space<vmem>>, vector<30x30xf32>
    %cst_50 = arith.constant dense<0.000000e+00> : vector<2x30xf32>
    %73 = tpu.matmul %71, %72, %cst_50 {dimension_numbers = #tpu.dot_dimension_numbers<[1], [0], [0], [1], [0, 0, 1, 1], [], []>} : vector<2x30xf32>, vector<30x30xf32>, vector<2x30xf32> -> vector<2x30xf32>
    %c0_51 = arith.constant 0 : index
    %c0_52 = arith.constant 0 : index
    %74 = vector.load %arg22[%c0_51, %c0_52] : memref<1x30xf32, #tpu.memory_space<vmem>>, vector<1x30xf32>
    %75 = vector.broadcast %74 : vector<1x30xf32> to vector<2x30xf32>
    %76 = arith.addf %73, %75 : vector<2x30xf32>
    %c0_53 = arith.constant 0 : index
    %c0_54 = arith.constant 0 : index
    %77 = vector.load %arg5[%c0_53, %c0_54] : memref<2x30xf32, #tpu.memory_space<vmem>>, vector<2x30xf32>
    %78 = arith.subf %56, %77 : vector<2x30xf32>
    %79 = arith.mulf %78, %78 : vector<2x30xf32>
    %cst_55 = arith.constant dense<0.000000e+00> : vector<2xf32>
    %80 = vector.multi_reduction <add>, %79, %cst_55 [1] : vector<2x30xf32> to vector<2xf32>
    %81 = vector.shape_cast %80 : vector<2xf32> to vector<2x1xf32>
    %cst_56 = arith.constant dense<0.000000e+00> : vector<1xf32>
    %82 = vector.multi_reduction <add>, %81, %cst_56 [0] : vector<2x1xf32> to vector<1xf32>
    %83 = vector.shape_cast %82 : vector<1xf32> to vector<1x1xf32>
    %84 = math.sqrt %83 : vector<1x1xf32>
    %c0_57 = arith.constant 0 : index
    %c0_58 = arith.constant 0 : index
    %85 = vector.load %arg4[%c0_57, %c0_58] : memref<2x30xf32, #tpu.memory_space<vmem>>, vector<2x30xf32>
    %86 = arith.subf %76, %85 : vector<2x30xf32>
    %87 = arith.mulf %86, %86 : vector<2x30xf32>
    %cst_59 = arith.constant dense<0.000000e+00> : vector<2xf32>
    %88 = vector.multi_reduction <add>, %87, %cst_59 [1] : vector<2x30xf32> to vector<2xf32>
    %89 = vector.shape_cast %88 : vector<2xf32> to vector<2x1xf32>
    %cst_60 = arith.constant dense<0.000000e+00> : vector<1xf32>
    %90 = vector.multi_reduction <add>, %89, %cst_60 [0] : vector<2x1xf32> to vector<1xf32>
    %91 = vector.shape_cast %90 : vector<1xf32> to vector<1x1xf32>
    %92 = math.sqrt %91 : vector<1x1xf32>
    %93 = arith.addf %84, %92 : vector<1x1xf32>
    %c0_61 = arith.constant 0 : index
    %c0_62 = arith.constant 0 : index
    %94 = vector.load %arg32[%c0_61, %c0_62] : memref<1x1xf32, #tpu.memory_space<vmem>>, vector<1x1xf32>
    tpu.vector_store %arg32[%c0_61, %c0_62], %93 {strides = array<i32>} : memref<1x1xf32, #tpu.memory_space<vmem>>, vector<1x1xf32>,
    %95 = math.exp %32 : vector<2x30xf32>
    %96 = arith.mulf %20, %20 : vector<2x30xf32>
    %97 = arith.addf %95, %96 : vector<2x30xf32>
    %cst_63 = arith.constant 1.000000e+00 : f32
    %98 = vector.broadcast %cst_63 : f32 to vector<2x30xf32>
    %99 = arith.subf %97, %98 : vector<2x30xf32>
    %100 = arith.subf %99, %25 : vector<2x30xf32>
    %cst_64 = arith.constant dense<0.000000e+00> : vector<2xf32>
    %101 = vector.multi_reduction <add>, %100, %cst_64 [1] : vector<2x30xf32> to vector<2xf32>
    %102 = vector.shape_cast %101 : vector<2xf32> to vector<2x1xf32>
    %cst_65 = arith.constant 5.000000e-01 : f32
    %103 = vector.broadcast %cst_65 : f32 to vector<2x1xf32>
    %104 = arith.mulf %103, %102 : vector<2x1xf32>
    %cst_66 = arith.constant dense<0.000000e+00> : vector<1xf32>
    %105 = vector.multi_reduction <add>, %104, %cst_66 [0] : vector<2x1xf32> to vector<1xf32>
    %106 = vector.shape_cast %105 : vector<1xf32> to vector<1x1xf32>
    %cst_67 = arith.constant 2.000000e+00 : f32
    %107 = vector.broadcast %cst_67 : f32 to vector<1x1xf32>
    %108 = arith.divf %106, %107 : vector<1x1xf32>
    %109 = math.exp %36 : vector<2x30xf32>
    %110 = arith.mulf %20, %20 : vector<2x30xf32>
    %111 = arith.addf %109, %110 : vector<2x30xf32>
    %cst_68 = arith.constant 1.000000e+00 : f32
    %112 = vector.broadcast %cst_68 : f32 to vector<2x30xf32>
    %113 = arith.subf %111, %112 : vector<2x30xf32>
    %114 = arith.subf %113, %25 : vector<2x30xf32>
    %cst_69 = arith.constant dense<0.000000e+00> : vector<2xf32>
    %115 = vector.multi_reduction <add>, %114, %cst_69 [1] : vector<2x30xf32> to vector<2xf32>
    %116 = vector.shape_cast %115 : vector<2xf32> to vector<2x1xf32>
    %cst_70 = arith.constant 5.000000e-01 : f32
    %117 = vector.broadcast %cst_70 : f32 to vector<2x1xf32>
    %118 = arith.mulf %117, %116 : vector<2x1xf32>
    %cst_71 = arith.constant dense<0.000000e+00> : vector<1xf32>
    %119 = vector.multi_reduction <add>, %118, %cst_71 [0] : vector<2x1xf32> to vector<1xf32>
    %120 = vector.shape_cast %119 : vector<1xf32> to vector<1x1xf32>
    %cst_72 = arith.constant 2.000000e+00 : f32
    %121 = vector.broadcast %cst_72 : f32 to vector<1x1xf32>
    %122 = arith.divf %120, %121 : vector<1x1xf32>
    %123 = arith.addf %108, %122 : vector<1x1xf32>
    %c0_73 = arith.constant 0 : index
    %c0_74 = arith.constant 0 : index
    %124 = vector.load %arg33[%c0_73, %c0_74] : memref<1x1xf32, #tpu.memory_space<vmem>>, vector<1x1xf32>
    tpu.vector_store %arg33[%c0_73, %c0_74], %123 {strides = array<i32>} : memref<1x1xf32, #tpu.memory_space<vmem>>, vector<1x1xf32>,
    %c0_75 = arith.constant 0 : index
    %c0_76 = arith.constant 0 : index
    %125 = vector.load %arg23[%c0_75, %c0_76] : memref<30x128xf32, #tpu.memory_space<vmem>>, vector<30x128xf32>
    %cst_77 = arith.constant dense<0.000000e+00> : vector<2x128xf32>
    %126 = tpu.matmul %36, %125, %cst_77 {dimension_numbers = #tpu.dot_dimension_numbers<[1], [0], [0], [1], [0, 0, 1, 1], [], []>} : vector<2x30xf32>, vector<30x128xf32>, vector<2x128xf32> -> vector<2x128xf32>
    %c0_78 = arith.constant 0 : index
    %c0_79 = arith.constant 0 : index
    %127 = vector.load %arg24[%c0_78, %c0_79] : memref<1x128xf32, #tpu.memory_space<vmem>>, vector<1x128xf32>
    %128 = vector.broadcast %127 : vector<1x128xf32> to vector<2x128xf32>
    %129 = arith.addf %126, %128 : vector<2x128xf32>
    %cst_80 = arith.constant 0.000000e+00 : f32
    %130 = vector.broadcast %cst_80 : f32 to vector<2x128xf32>
    %131 = arith.cmpf ogt, %129, %130 : vector<2x128xf32>
    %132 = math.exp %129 : vector<2x128xf32>
    %cst_81 = arith.constant 1.000000e+00 : f32
    %133 = vector.broadcast %cst_81 : f32 to vector<2x128xf32>
    %134 = arith.subf %132, %133 : vector<2x128xf32>
    %cst_82 = arith.constant 1.67326319 : f32
    %135 = vector.broadcast %cst_82 : f32 to vector<2x128xf32>
    %136 = arith.mulf %135, %134 : vector<2x128xf32>
    %137 = arith.select %131, %129, %136 : vector<2x128xi1>, vector<2x128xf32>
    %cst_83 = arith.constant 1.05070102 : f32
    %138 = vector.broadcast %cst_83 : f32 to vector<2x128xf32>
    %139 = arith.mulf %138, %137 : vector<2x128xf32>
    %c0_84 = arith.constant 0 : index
    %c0_85 = arith.constant 0 : index
    %140 = vector.load %arg25[%c0_84, %c0_85] : memref<128x1xf32, #tpu.memory_space<vmem>>, vector<128x1xf32>
    %cst_86 = arith.constant dense<0.000000e+00> : vector<2x1xf32>
    %141 = tpu.matmul %139, %140, %cst_86 {dimension_numbers = #tpu.dot_dimension_numbers<[1], [0], [0], [1], [0, 0, 1, 1], [], []>} : vector<2x128xf32>, vector<128x1xf32>, vector<2x1xf32> -> vector<2x1xf32>
    %c0_87 = arith.constant 0 : index
    %c0_88 = arith.constant 0 : index
    %142 = vector.load %arg26[%c0_87, %c0_88] : memref<1x1xf32, #tpu.memory_space<vmem>>, vector<1x1xf32>
    %143 = vector.broadcast %142 : vector<1x1xf32> to vector<2x1xf32>
    %144 = arith.addf %141, %143 : vector<2x1xf32>
    %145 = math.absf %144 : vector<2x1xf32>
    %cst_89 = arith.constant 0.000000e+00 : f32
    %146 = vector.broadcast %cst_89 : f32 to vector<2x1xf32>
    %147 = arith.subf %146, %145 : vector<2x1xf32>
    %148 = math.exp %147 : vector<2x1xf32>
    %cst_90 = arith.constant 1.000000e+00 : f32
    %149 = vector.broadcast %cst_90 : f32 to vector<2x1xf32>
    %150 = arith.addf %149, %148 : vector<2x1xf32>
    %cst_91 = arith.constant 1.000000e+00 : f32
    %151 = vector.broadcast %cst_91 : f32 to vector<2x1xf32>
    %152 = arith.divf %151, %150 : vector<2x1xf32>
    %cst_92 = arith.constant 0.000000e+00 : f32
    %153 = vector.broadcast %cst_92 : f32 to vector<2x1xf32>
    %154 = arith.cmpf oge, %144, %153 : vector<2x1xf32>
    %cst_93 = arith.constant 1.000000e+00 : f32
    %155 = vector.broadcast %cst_93 : f32 to vector<2x1xf32>
    %156 = arith.subf %155, %152 : vector<2x1xf32>
    %157 = arith.select %154, %152, %156 : vector<2x1xi1>, vector<2x1xf32>
    %c0_94 = arith.constant 0 : index
    %c0_95 = arith.constant 0 : index
    %158 = vector.load %arg23[%c0_94, %c0_95] : memref<30x128xf32, #tpu.memory_space<vmem>>, vector<30x128xf32>
    %cst_96 = arith.constant dense<0.000000e+00> : vector<2x128xf32>
    %159 = tpu.matmul %32, %158, %cst_96 {dimension_numbers = #tpu.dot_dimension_numbers<[1], [0], [0], [1], [0, 0, 1, 1], [], []>} : vector<2x30xf32>, vector<30x128xf32>, vector<2x128xf32> -> vector<2x128xf32>
    %c0_97 = arith.constant 0 : index
    %c0_98 = arith.constant 0 : index
    %160 = vector.load %arg24[%c0_97, %c0_98] : memref<1x128xf32, #tpu.memory_space<vmem>>, vector<1x128xf32>
    %161 = vector.broadcast %160 : vector<1x128xf32> to vector<2x128xf32>
    %162 = arith.addf %159, %161 : vector<2x128xf32>
    %cst_99 = arith.constant 0.000000e+00 : f32
    %163 = vector.broadcast %cst_99 : f32 to vector<2x128xf32>
    %164 = arith.cmpf ogt, %162, %163 : vector<2x128xf32>
    %165 = math.exp %162 : vector<2x128xf32>
    %cst_100 = arith.constant 1.000000e+00 : f32
    %166 = vector.broadcast %cst_100 : f32 to vector<2x128xf32>
    %167 = arith.subf %165, %166 : vector<2x128xf32>
    %cst_101 = arith.constant 1.67326319 : f32
    %168 = vector.broadcast %cst_101 : f32 to vector<2x128xf32>
    %169 = arith.mulf %168, %167 : vector<2x128xf32>
    %170 = arith.select %164, %162, %169 : vector<2x128xi1>, vector<2x128xf32>
    %cst_102 = arith.constant 1.05070102 : f32
    %171 = vector.broadcast %cst_102 : f32 to vector<2x128xf32>
    %172 = arith.mulf %171, %170 : vector<2x128xf32>
    %c0_103 = arith.constant 0 : index
    %c0_104 = arith.constant 0 : index
    %173 = vector.load %arg25[%c0_103, %c0_104] : memref<128x1xf32, #tpu.memory_space<vmem>>, vector<128x1xf32>
    %cst_105 = arith.constant dense<0.000000e+00> : vector<2x1xf32>
    %174 = tpu.matmul %172, %173, %cst_105 {dimension_numbers = #tpu.dot_dimension_numbers<[1], [0], [0], [1], [0, 0, 1, 1], [], []>} : vector<2x128xf32>, vector<128x1xf32>, vector<2x1xf32> -> vector<2x1xf32>
    %c0_106 = arith.constant 0 : index
    %c0_107 = arith.constant 0 : index
    %175 = vector.load %arg26[%c0_106, %c0_107] : memref<1x1xf32, #tpu.memory_space<vmem>>, vector<1x1xf32>
    %176 = vector.broadcast %175 : vector<1x1xf32> to vector<2x1xf32>
    %177 = arith.addf %174, %176 : vector<2x1xf32>
    %178 = math.absf %177 : vector<2x1xf32>
    %cst_108 = arith.constant 0.000000e+00 : f32
    %179 = vector.broadcast %cst_108 : f32 to vector<2x1xf32>
    %180 = arith.subf %179, %178 : vector<2x1xf32>
    %181 = math.exp %180 : vector<2x1xf32>
    %cst_109 = arith.constant 1.000000e+00 : f32
    %182 = vector.broadcast %cst_109 : f32 to vector<2x1xf32>
    %183 = arith.addf %182, %181 : vector<2x1xf32>
    %cst_110 = arith.constant 1.000000e+00 : f32
    %184 = vector.broadcast %cst_110 : f32 to vector<2x1xf32>
    %185 = arith.divf %184, %183 : vector<2x1xf32>
    %cst_111 = arith.constant 0.000000e+00 : f32
    %186 = vector.broadcast %cst_111 : f32 to vector<2x1xf32>
    %187 = arith.cmpf oge, %177, %186 : vector<2x1xf32>
    %cst_112 = arith.constant 1.000000e+00 : f32
    %188 = vector.broadcast %cst_112 : f32 to vector<2x1xf32>
    %189 = arith.subf %188, %185 : vector<2x1xf32>
    %190 = arith.select %187, %185, %189 : vector<2x1xi1>, vector<2x1xf32>
    %cst_113 = arith.constant 9.99999993E-9 : f32
    %191 = vector.broadcast %cst_113 : f32 to vector<2x1xf32>
    %192 = arith.addf %157, %191 : vector<2x1xf32>
    %193 = math.log %192 : vector<2x1xf32>
    %cst_114 = arith.constant dense<0.000000e+00> : vector<1xf32>
    %194 = vector.multi_reduction <add>, %193, %cst_114 [0] : vector<2x1xf32> to vector<1xf32>
    %195 = vector.shape_cast %194 : vector<1xf32> to vector<1x1xf32>
    %cst_115 = arith.constant 2.000000e+00 : f32
    %196 = vector.broadcast %cst_115 : f32 to vector<1x1xf32>
    %197 = arith.divf %195, %196 : vector<1x1xf32>
    %cst_116 = arith.constant 1.000000e+00 : f32
    %198 = vector.broadcast %cst_116 : f32 to vector<2x1xf32>
    %199 = arith.subf %198, %190 : vector<2x1xf32>
    %cst_117 = arith.constant 9.99999993E-9 : f32
    %200 = vector.broadcast %cst_117 : f32 to vector<2x1xf32>
    %201 = arith.addf %199, %200 : vector<2x1xf32>
    %202 = math.log %201 : vector<2x1xf32>
    %cst_118 = arith.constant dense<0.000000e+00> : vector<1xf32>
    %203 = vector.multi_reduction <add>, %202, %cst_118 [0] : vector<2x1xf32> to vector<1xf32>
    %204 = vector.shape_cast %203 : vector<1xf32> to vector<1x1xf32>
    %cst_119 = arith.constant 2.000000e+00 : f32
    %205 = vector.broadcast %cst_119 : f32 to vector<1x1xf32>
    %206 = arith.divf %204, %205 : vector<1x1xf32>
    %207 = arith.addf %197, %206 : vector<1x1xf32>
    %cst_120 = arith.constant 0.000000e+00 : f32
    %208 = vector.broadcast %cst_120 : f32 to vector<1x1xf32>
    %209 = arith.subf %208, %207 : vector<1x1xf32>
    %c0_121 = arith.constant 0 : index
    %c0_122 = arith.constant 0 : index
    %210 = vector.load %arg34[%c0_121, %c0_122] : memref<1x1xf32, #tpu.memory_space<vmem>>, vector<1x1xf32>
    tpu.vector_store %arg34[%c0_121, %c0_122], %209 {strides = array<i32>} : memref<1x1xf32, #tpu.memory_space<vmem>>, vector<1x1xf32>,
    %c0_123 = arith.constant 0 : index
    %c0_124 = arith.constant 0 : index
    %211 = vector.load %arg2[%c0_123, %c0_124] : memref<2x30xf32, #tpu.memory_space<vmem>>, vector<2x30xf32>
    %c0_125 = arith.constant 0 : index
    %c0_126 = arith.constant 0 : index
    %212 = vector.load %arg3[%c0_125, %c0_126] : memref<2x30xf32, #tpu.memory_space<vmem>>, vector<2x30xf32>
    %213 = arith.mulf %211, %212 : vector<2x30xf32>
    %cst_127 = arith.constant dense<0.000000e+00> : vector<2xf32>
    %214 = vector.multi_reduction <add>, %213, %cst_127 [1] : vector<2x30xf32> to vector<2xf32>
    %215 = vector.shape_cast %214 : vector<2xf32> to vector<2x1xf32>
    %216 = arith.mulf %211, %211 : vector<2x30xf32>
    %cst_128 = arith.constant dense<0.000000e+00> : vector<2xf32>
    %217 = vector.multi_reduction <add>, %216, %cst_128 [1] : vector<2x30xf32> to vector<2xf32>
    %218 = vector.shape_cast %217 : vector<2xf32> to vector<2x1xf32>
    %219 = math.sqrt %218 : vector<2x1xf32>
    %220 = arith.mulf %212, %212 : vector<2x30xf32>
    %cst_129 = arith.constant dense<0.000000e+00> : vector<2xf32>
    %221 = vector.multi_reduction <add>, %220, %cst_129 [1] : vector<2x30xf32> to vector<2xf32>
    %222 = vector.shape_cast %221 : vector<2xf32> to vector<2x1xf32>
    %223 = math.sqrt %222 : vector<2x1xf32>
    %224 = arith.mulf %219, %223 : vector<2x1xf32>
    %cst_130 = arith.constant 9.99999993E-9 : f32
    %225 = vector.broadcast %cst_130 : f32 to vector<2x1xf32>
    %226 = arith.addf %224, %225 : vector<2x1xf32>
    %227 = tpu.reciprocal %226 {approx = true} : vector<2x1xf32> -> vector<2x1xf32>
    %228 = arith.mulf %215, %227 : vector<2x1xf32>
    %c0_131 = arith.constant 0 : index
    %c0_132 = arith.constant 0 : index
    %229 = vector.load %arg27[%c0_131, %c0_132] : memref<30x1xf32, #tpu.memory_space<vmem>>, vector<30x1xf32>
    %cst_133 = arith.constant dense<0.000000e+00> : vector<2x1xf32>
    %230 = tpu.matmul %211, %229, %cst_133 {dimension_numbers = #tpu.dot_dimension_numbers<[1], [0], [0], [1], [0, 0, 1, 1], [], []>} : vector<2x30xf32>, vector<30x1xf32>, vector<2x1xf32> -> vector<2x1xf32>
    %c0_134 = arith.constant 0 : index
    %c0_135 = arith.constant 0 : index
    %231 = vector.load %arg28[%c0_134, %c0_135] : memref<30x1xf32, #tpu.memory_space<vmem>>, vector<30x1xf32>
    %cst_136 = arith.constant dense<0.000000e+00> : vector<2x1xf32>
    %232 = tpu.matmul %212, %231, %cst_136 {dimension_numbers = #tpu.dot_dimension_numbers<[1], [0], [0], [1], [0, 0, 1, 1], [], []>} : vector<2x30xf32>, vector<30x1xf32>, vector<2x1xf32> -> vector<2x1xf32>
    %233 = arith.addf %230, %232 : vector<2x1xf32>
    %c0_137 = arith.constant 0 : index
    %c0_138 = arith.constant 0 : index
    %234 = vector.load %arg29[%c0_137, %c0_138] : memref<1x1xf32, #tpu.memory_space<vmem>>, vector<1x1xf32>
    %235 = vector.broadcast %234 : vector<1x1xf32> to vector<2x1xf32>
    %236 = arith.addf %233, %235 : vector<2x1xf32>
    %237 = arith.addf %236, %215 : vector<2x1xf32>
    %c0_139 = arith.constant 0 : index
    %c0_140 = arith.constant 0 : index
    %238 = vector.load %arg7[%c0_139, %c0_140] : memref<2x1xf32, #tpu.memory_space<vmem>>, vector<2x1xf32>
    %239 = arith.addf %237, %238 : vector<2x1xf32>
    %c0_141 = arith.constant 0 : index
    %c0_142 = arith.constant 0 : index
    %240 = vector.load %arg8[%c0_141, %c0_142] : memref<2x1xf32, #tpu.memory_space<vmem>>, vector<2x1xf32>
    %241 = arith.addf %239, %240 : vector<2x1xf32>
    %c0_143 = arith.constant 0 : index
    %c0_144 = arith.constant 0 : index
    %242 = vector.load %arg30[%c0_143, %c0_144] : memref<1x1xf32, #tpu.memory_space<vmem>>, vector<1x1xf32>
    %243 = vector.broadcast %242 : vector<1x1xf32> to vector<2x1xf32>
    %244 = arith.addf %241, %243 : vector<2x1xf32>
    %245 = arith.addf %244, %228 : vector<2x1xf32>
    %c0_145 = arith.constant 0 : index
    %c0_146 = arith.constant 0 : index
    %246 = vector.load %arg31[%c0_145, %c0_146] : memref<2x1xf32, #tpu.memory_space<vmem>>, vector<2x1xf32>
    tpu.vector_store %arg31[%c0_145, %c0_146], %245 {strides = array<i32>} : memref<2x1xf32, #tpu.memory_space<vmem>>, vector<2x1xf32>,
    return
  }
  func.func @transform_0(%arg0: i32) -> (i32, i32) {
    %c0_i32 = arith.constant 0 : i32
    %c0_i32_0 = arith.constant 0 : i32
    %c0_i32_1 = arith.constant 0 : i32
    return %c0_i32, %c0_i32_0 : i32, i32
  }
  func.func @transform_1(%arg0: i32) -> (i32, i32) {
    %c0_i32 = arith.constant 0 : i32
    %c0_i32_0 = arith.constant 0 : i32
    %c0_i32_1 = arith.constant 0 : i32
    return %c0_i32, %c0_i32_0 : i32, i32
  }
  func.func @transform_2(%arg0: i32) -> (i32, i32) {
    %c0_i32 = arith.constant 0 : i32
    %c0_i32_0 = arith.constant 0 : i32
    %c0_i32_1 = arith.constant 0 : i32
    return %c0_i32, %c0_i32_0 : i32, i32
  }
  func.func @transform_3(%arg0: i32) -> (i32, i32) {
    %c0_i32 = arith.constant 0 : i32
    %c0_i32_0 = arith.constant 0 : i32
    %c0_i32_1 = arith.constant 0 : i32
    return %c0_i32, %c0_i32_0 : i32, i32
  }
  func.func @transform_4(%arg0: i32) -> (i32, i32) {
    %c0_i32 = arith.constant 0 : i32
    %c0_i32_0 = arith.constant 0 : i32
    %c0_i32_1 = arith.constant 0 : i32
    return %c0_i32, %c0_i32_0 : i32, i32
  }
  func.func @transform_5(%arg0: i32) -> (i32, i32, i32) {
    %c0_i32 = arith.constant 0 : i32
    %c0_i32_0 = arith.constant 0 : i32
    %c0_i32_1 = arith.constant 0 : i32
    %c0_i32_2 = arith.constant 0 : i32
    return %c0_i32, %c0_i32_0, %c0_i32_1 : i32, i32, i32
  }
  func.func @transform_6(%arg0: i32) -> (i32, i32) {
    %c0_i32 = arith.constant 0 : i32
    %c0_i32_0 = arith.constant 0 : i32
    %c0_i32_1 = arith.constant 0 : i32
    return %c0_i32, %c0_i32_0 : i32, i32
  }
  func.func @transform_7(%arg0: i32) -> (i32, i32) {
    %c0_i32 = arith.constant 0 : i32
    %c0_i32_0 = arith.constant 0 : i32
    %c0_i32_1 = arith.constant 0 : i32
    return %c0_i32, %c0_i32_0 : i32, i32
  }
  func.func @transform_8(%arg0: i32) -> (i32, i32) {
    %c0_i32 = arith.constant 0 : i32
    %c0_i32_0 = arith.constant 0 : i32
    %c0_i32_1 = arith.constant 0 : i32
    return %c0_i32, %c0_i32_0 : i32, i32
  }
  func.func @transform_9(%arg0: i32) -> (i32, i32) {
    %c0_i32 = arith.constant 0 : i32
    %c0_i32_0 = arith.constant 0 : i32
    %c0_i32_1 = arith.constant 0 : i32
    return %c0_i32, %c0_i32_0 : i32, i32
  }
  func.func @transform_10(%arg0: i32) -> (i32, i32) {
    %c0_i32 = arith.constant 0 : i32
    %c0_i32_0 = arith.constant 0 : i32
    %c0_i32_1 = arith.constant 0 : i32
    return %c0_i32, %c0_i32_0 : i32, i32
  }
  func.func @transform_11(%arg0: i32) -> (i32, i32) {
    %c0_i32 = arith.constant 0 : i32
    %c0_i32_0 = arith.constant 0 : i32
    %c0_i32_1 = arith.constant 0 : i32
    return %c0_i32, %c0_i32_0 : i32, i32
  }
  func.func @transform_12(%arg0: i32) -> (i32, i32) {
    %c0_i32 = arith.constant 0 : i32
    %c0_i32_0 = arith.constant 0 : i32
    %c0_i32_1 = arith.constant 0 : i32
    return %c0_i32, %c0_i32_0 : i32, i32
  }
  func.func @transform_13(%arg0: i32) -> (i32, i32) {
    %c0_i32 = arith.constant 0 : i32
    %c0_i32_0 = arith.constant 0 : i32
    %c0_i32_1 = arith.constant 0 : i32
    return %c0_i32, %c0_i32_0 : i32, i32
  }
  func.func @transform_14(%arg0: i32) -> (i32, i32) {
    %c0_i32 = arith.constant 0 : i32
    %c0_i32_0 = arith.constant 0 : i32
    %c0_i32_1 = arith.constant 0 : i32
    return %c0_i32, %c0_i32_0 : i32, i32
  }
  func.func @transform_15(%arg0: i32) -> (i32, i32) {
    %c0_i32 = arith.constant 0 : i32
    %c0_i32_0 = arith.constant 0 : i32
    %c0_i32_1 = arith.constant 0 : i32
    return %c0_i32, %c0_i32_0 : i32, i32
  }
  func.func @transform_16(%arg0: i32) -> (i32, i32) {
    %c0_i32 = arith.constant 0 : i32
    %c0_i32_0 = arith.constant 0 : i32
    %c0_i32_1 = arith.constant 0 : i32
    return %c0_i32, %c0_i32_0 : i32, i32
  }
  func.func @transform_17(%arg0: i32) -> (i32, i32) {
    %c0_i32 = arith.constant 0 : i32
    %c0_i32_0 = arith.constant 0 : i32
    %c0_i32_1 = arith.constant 0 : i32
    return %c0_i32, %c0_i32_0 : i32, i32
  }
  func.func @transform_18(%arg0: i32) -> (i32, i32) {
    %c0_i32 = arith.constant 0 : i32
    %c0_i32_0 = arith.constant 0 : i32
    %c0_i32_1 = arith.constant 0 : i32
    return %c0_i32, %c0_i32_0 : i32, i32
  }
  func.func @transform_19(%arg0: i32) -> (i32, i32) {
    %c0_i32 = arith.constant 0 : i32
    %c0_i32_0 = arith.constant 0 : i32
    %c0_i32_1 = arith.constant 0 : i32
    return %c0_i32, %c0_i32_0 : i32, i32
  }
  func.func @transform_20(%arg0: i32) -> (i32, i32) {
    %c0_i32 = arith.constant 0 : i32
    %c0_i32_0 = arith.constant 0 : i32
    %c0_i32_1 = arith.constant 0 : i32
    return %c0_i32, %c0_i32_0 : i32, i32
  }
  func.func @transform_21(%arg0: i32) -> (i32, i32) {
    %c0_i32 = arith.constant 0 : i32
    %c0_i32_0 = arith.constant 0 : i32
    %c0_i32_1 = arith.constant 0 : i32
    return %c0_i32, %c0_i32_0 : i32, i32
  }
  func.func @transform_22(%arg0: i32) -> (i32, i32) {
    %c0_i32 = arith.constant 0 : i32
    %c0_i32_0 = arith.constant 0 : i32
    %c0_i32_1 = arith.constant 0 : i32
    return %c0_i32, %c0_i32_0 : i32, i32
  }
  func.func @transform_23(%arg0: i32) -> (i32, i32) {
    %c0_i32 = arith.constant 0 : i32
    %c0_i32_0 = arith.constant 0 : i32
    %c0_i32_1 = arith.constant 0 : i32
    return %c0_i32, %c0_i32_0 : i32, i32
  }
  func.func @transform_24(%arg0: i32) -> (i32, i32) {
    %c0_i32 = arith.constant 0 : i32
    %c0_i32_0 = arith.constant 0 : i32
    %c0_i32_1 = arith.constant 0 : i32
    return %c0_i32, %c0_i32_0 : i32, i32
  }
  func.func @transform_25(%arg0: i32) -> (i32, i32) {
    %c0_i32 = arith.constant 0 : i32
    %c0_i32_0 = arith.constant 0 : i32
    %c0_i32_1 = arith.constant 0 : i32
    return %c0_i32, %c0_i32_0 : i32, i32
  }
  func.func @transform_26(%arg0: i32) -> (i32, i32) {
    %c0_i32 = arith.constant 0 : i32
    %c0_i32_0 = arith.constant 0 : i32
    %c0_i32_1 = arith.constant 0 : i32
    return %c0_i32, %c0_i32_0 : i32, i32
  }
  func.func @transform_27(%arg0: i32) -> (i32, i32) {
    %c0_i32 = arith.constant 0 : i32
    %c0_i32_0 = arith.constant 0 : i32
    %c0_i32_1 = arith.constant 0 : i32
    return %c0_i32, %c0_i32_0 : i32, i32
  }
  func.func @transform_28(%arg0: i32) -> (i32, i32) {
    %c0_i32 = arith.constant 0 : i32
    %c0_i32_0 = arith.constant 0 : i32
    %c0_i32_1 = arith.constant 0 : i32
    return %c0_i32, %c0_i32_0 : i32, i32
  }
  func.func @transform_29(%arg0: i32) -> (i32, i32) {
    %c0_i32 = arith.constant 0 : i32
    %c0_i32_0 = arith.constant 0 : i32
    %c0_i32_1 = arith.constant 0 : i32
    return %c0_i32, %c0_i32_0 : i32, i32
  }
  func.func @transform_30(%arg0: i32) -> (i32, i32) {
    %c0_i32 = arith.constant 0 : i32
    %c0_i32_0 = arith.constant 0 : i32
    %c0_i32_1 = arith.constant 0 : i32
    return %c0_i32, %c0_i32_0 : i32, i32
  }
  func.func @transform_31(%arg0: i32) -> (i32, i32) {
    %c0_i32 = arith.constant 0 : i32
    %c0_i32_0 = arith.constant 0 : i32
    %c0_i32_1 = arith.constant 0 : i32
    return %c0_i32, %c0_i32_0 : i32, i32
  }
  func.func @transform_32(%arg0: i32) -> (i32, i32) {
    %c0_i32 = arith.constant 0 : i32
    %c0_i32_0 = arith.constant 0 : i32
    %c0_i32_1 = arith.constant 0 : i32
    return %c0_i32, %c0_i32_0 : i32, i32
  }
  func.func @transform_33(%arg0: i32) -> (i32, i32) {
    %c0_i32 = arith.constant 0 : i32
    %c0_i32_0 = arith.constant 0 : i32
    %c0_i32_1 = arith.constant 0 : i32
    return %c0_i32, %c0_i32_0 : i32, i32
  }
}

</mosaic_0001>

<bundles_post_ra>
// kernel: dual_gnn_forward.5
= control target key start
LH: loop header
LB: loop body
LE: loop exit
PB: predicated region body
PF: predicated region fallthrough
CT: control target
= control target key end

     0   :  { %s1104_s6 = smov 1   ;;  %s1105_s10 = smov 2   ;;  %s1458_s0 = inlined_call_operand.smem [shape: u32[34], index: -1, kind: input, shape index: {}] }
   0x1   :  { %s1149_s5 = sld [smem:[%s1458_s0]]   ;;  %s1106_s14 = smov 3  }
   0x2   :  { %s1154_s9 = sld [smem:[%s1458_s0 + %s1104_s6]]   ;;  %s1107_s18 = smov 4  }
   0x3   :  { %s1159_s13 = sld [smem:[%s1458_s0 + %s1105_s10]]   ;;  %s1108_s22 = smov 5  }
   0x4   :  { %s1164_s17 = sld [smem:[%s1458_s0 + %s1106_s14]]   ;;  %s1109_s26 = smov 6  }
   0x5   :  { %s1169_s21 = sld [smem:[%s1458_s0 + %s1107_s18]]   ;;  %s1110_s30 = smov 7  }
   0x6   :  { %s1174_s25 = sld [smem:[%s1458_s0 + %s1108_s22]]   ;;  %s1111_s4 = smov 8  }
   0x7   :  { %s1179_s29 = sld [smem:[%s1458_s0 + %s1109_s26]]   ;;  %s1112_s10 = smov 9  }
   0x8   :  { %1463 = sst [smem:[#allocation12_spill]] %s1154_s9  ;;  %s1113_s15 = smov 10  }
   0x9   :  { %1464 = sst [smem:[#allocation13_spill]] %s1159_s13  ;;  %s1114_s20 = smov 11  }
   0xa   :  { %1465 = sst [smem:[#allocation14_spill]] %s1164_s17  ;;  %s1115_s26 = smov 12  }
   0xb   :  { %1466 = sst [smem:[#allocation15_spill]] %s1169_s21  ;;  %s1116_s1 = smov 13  }
   0xc   :  { %s1184_s3 = sld [smem:[%s1458_s0 + %s1110_s30]]   ;;  %s1117_s7 = smov 14  }
   0xd   :  { %1467 = sst [smem:[#allocation16_spill]] %s1179_s29  ;;  %s1119_s22 = smov 16  }
   0xe   :  { %s1189_s8 = sld [smem:[%s1458_s0 + %s1111_s4]]   ;;  %s1120_s28 = smov 17  }
   0xf   :  { %s1194_s14 = sld [smem:[%s1458_s0 + %s1112_s10]]   ;;  %s1129_s10 = smov 26  }
  0x10   :  { %s1199_s19 = sld [smem:[%s1458_s0 + %s1113_s15]]   ;;  %s1118_s15 = smov 15  }
  0x11   :  { %s1204_s24 = sld [smem:[%s1458_s0 + %s1114_s20]]   ;;  %s1130_s16 = smov 27  }
  0x12   :  { %1468 = sst [smem:[#allocation17_spill]] %s1184_s3  ;;  %s1131_s23 = smov 30  }
  0x13   :  { %s1209_s30 = sld [smem:[%s1458_s0 + %s1115_s26]]  }
  0x14   :  { %s1214_s6 = sld [smem:[%s1458_s0 + %s1116_s1]]   ;;  %s1132_s1 = smov 31  }
  0x15   :  { %s1219_s12 = sld [smem:[%s1458_s0 + %s1117_s7]]   ;;  %s1121_s7 = smov 18  }
  0x16   :  { %s1224_s20 = sld [smem:[%s1458_s0 + %s1118_s15]]   ;;  %s1122_s15 = smov 19  }
  0x17   :  { %s1229_s27 = sld [smem:[%s1458_s0 + %s1119_s22]]   ;;  %s1123_s22 = smov 20  }
  0x18   :  { %s1234_s4 = sld [smem:[%s1458_s0 + %s1120_s28]]   ;;  %s1124_s28 = smov 21  }
  0x19   :  { %s1239_s3 = sld [smem:[%s1458_s0 + %s1121_s7]]   ;;  %s1125_s7 = smov 22  }
  0x1a   :  { %s1244_s29 = sld [smem:[%s1458_s0 + %s1122_s15]]   ;;  %s1126_s15 = smov 23  }
  0x1b   :  { %s1249_s17 = sld [smem:[%s1458_s0 + %s1123_s22]]   ;;  %s1127_s22 = smov 24  }
  0x1c   :  { %1469 = sst [smem:[#allocation18_spill]] %s1224_s20 }
  0x1d   :  { %s1254_s21 = sld [smem:[%s1458_s0 + %s1124_s28]]   ;;  %s1128_s28 = smov 25  }
  0x1e   :  { %1470 = sst [smem:[#allocation19_spill]] %s1234_s4 }
  0x1f   :  { %s1259_s4 = sld [smem:[%s1458_s0 + %s1125_s7]]  }
  0x20   :  { %1471 = sst [smem:[#allocation20_spill]] %s1244_s29 }
  0x21   :  { %s1264_s13 = sld [smem:[%s1458_s0 + %s1126_s15]]  }
  0x22   :  { %s1269_s20 = sld [smem:[%s1458_s0 + %s1127_s22]]  }
  0x23   :  { %1472 = sst [smem:[#allocation21_spill]] %s1254_s21 }
  0x24   :  { %s901_s21 = sld [smem:[%s1458_s0 + %s1128_s28]]   ;;  %s1136_s28 = smov 29  }
  0x25   :  { %s1277_s9 = sld [smem:[%s1458_s0 + %s1129_s10]]   ;;  %s1133_s10 = smov 32  }
  0x26   :  { %s1287_s29 = sld [smem:[%s1458_s0 + %s1131_s23]]   ;;  %s1135_s23 = smov 28  }
  0x27   :  { %1473 = sst [smem:[#allocation22_spill]] %s1264_s13 }
  0x28   :  { %1474 = sst [smem:[#allocation23_spill]] %s1269_s20 }
  0x29   :  { %s1282_s13 = sld [smem:[%s1458_s0 + %s1130_s16]]   ;;  %s1134_s16 = smov 33  }
  0x2a   :  { %s1292_s20 = sld [smem:[%s1458_s0 + %s1132_s1]]   ;;  %v73_v0 = vstv %s901_s21 }
  0x2b   :  { %1475 = sst [smem:[#allocation24_spill]] %s1277_s9  ;;  %74 = vst [vmem:[#allocation2] sm:$0x1] %v73_v0 }
  0x2c   :  { %s1297_s9 = sld [smem:[%s1458_s0 + %s1133_s10]]  }
  0x2d   :  { %s904_s1 = sld [smem:[%s1458_s0 + %s1135_s23]]  }
  0x2e   :  { %s905_s7 = sld [smem:[%s1458_s0 + %s1136_s28]]  }
  0x2f   :  { %1476 = sst [smem:[#allocation25_spill]] %s1282_s13 }
  0x30   :  { %1477 = sst [smem:[#allocation26_spill]] %s1292_s20 }
  0x31   :  { %s1302_s13 = sld [smem:[%s1458_s0 + %s1134_s16]]  }
  0x33   :  { %v75_v1 = vstv %s904_s1 }
  0x34   :  { %76 = vst [vmem:[#allocation3] sm:$0x1] %v75_v1  ;;  %v77_v2 = vstv %s905_s7 }
  0x35   :  { %78 = vst [vmem:[#allocation4] sm:$0x1] %v77_v2 }
  0x36   :  { %79 = vsyncpa [#allocation6], 0  ;;  %v145_v3 = vld [vmem:[%s1189_s8 + $0x18] sm:$0x3f]  ;;  %vm154_vm0 = vcmask 1045504   ;;  %v144_v4 = vld [vmem:[%s1189_s8 + $0x10] sm:$0xff] }
  0x37   :  { %910 = vmatpush.msk.msra.mxu3 %vm154_vm0, %v145_v3  ;;  %v143_v5 = vld [vmem:[%s1189_s8 + $0x8] sm:$0xff]  ;;  %v142_v6 = vld [vmem:[%s1189_s8] sm:$0xff]  ;;  %vm150_vm1 = vcmask 244736  }
  0x38   :  { %v141_v7 = vld [vmem:[%s1149_s5] sm:$0x3] }
  0x39   :  { %171 = vmatpush.msra.mxu3 %v144_v4 }
  0x3b   :  { %172 = vmatpush.msra.mxu3 %v143_v5 }
  0x3c   :  { %80 = vsyncpa [#allocation8], 0  ;;  %v188_v8 = vld [vmem:[%s1199_s19 + $0x18] sm:$0x3f]  ;;  %v187_v9 = vld [vmem:[%s1199_s19 + $0x10] sm:$0xff]  ;;  %s1478_s0 = sld [smem:[#allocation23_spill]] }
  0x3d   :  { %173 = vmatpush.msra.mxu3 %v142_v6  ;;  %913 = vmatpush.msk.msra.mxu1 %vm154_vm0, %v188_v8  ;;  %v186_v10 = vld [vmem:[%s1199_s19 + $0x8] sm:$0xff]  ;;  %v185_v11 = vld [vmem:[%s1199_s19] sm:$0xff]  ;;  %v222_v12 = vld [vmem:[%s1209_s30 + $0x18] sm:$0x3f]  ;;  %vm413_vm3 = vcmask 238592   ;;  %s1479_s5 = sld [smem:[#allocation20_spill]] }
  0x3e   :  { %911 = vmatmul.msk.f32.vlgmr.msra.gmra.mxu3 %vm150_vm1, %v141_v7  ;;  %v221_v13 = vld [vmem:[%s1209_s30 + $0x10] sm:$0xff]  ;;  %v220_v14 = vld [vmem:[%s1209_s30 + $0x8] sm:$0xff]  ;;  %v219_v15 = vld [vmem:[%s1209_s30] sm:$0xff]  ;;  %s1481_s21 = sld [smem:[#allocation25_spill]]  ;;  %vm417_vm4 = vcmask 1041408   ;;  %vm463_vm10 = vcmask 0  }
  0x3f   :  { %212 = vmatpush.msra.mxu1 %v187_v9  ;;  %v977_v16 = vld [vmem:[%s1194_s14] ss:$0 sm:$0xff]  ;;  %v263_v25 = vld [vmem:[%s1219_s12 + $0x18] sm:$0x3f]  ;;  %v262_v27 = vld [vmem:[%s1219_s12 + $0x10] sm:$0xff]  ;;  %s1484_s8 = sld [smem:[#allocation22_spill]] }
  0x40   :  { %v338_v26 = vld [vmem:[%s1239_s3 + $0x18] sm:$0x3f]  ;;  %918 = vmatpush.msk.msrb.mxu3 %vm154_vm0, %v263_v25  ;;  %v337_v28 = vld [vmem:[%s1239_s3 + $0x10] sm:$0xff]  ;;  %v261_v29 = vld [vmem:[%s1219_s12 + $0x8] sm:$0xff]  ;;  %s1485_s14 = sld [smem:[#allocation24_spill]]  ;;  %s1138_s20 = smov [#allocation7]  }
  0x41   :  { %213 = vmatpush.msra.mxu1 %v186_v10  ;;  %v336_v30 = vld [vmem:[%s1239_s3 + $0x8] sm:$0xff]  ;;  %v260_v31 = vld [vmem:[%s1219_s12] sm:$0xff]  ;;  %v512_v33 = vld [vmem:[%s1259_s4 + $0x18] sm:$0x3f]  ;;  %s1486_s19 = sld [smem:[#allocation19_spill]]  ;;  %s846_s12 = sshll.u32 %s1297_s9, 4  ;;  %s847_s12 = int_to_ptr.hbm [resolvable:$true] %s846_s12 }
  0x42   :  { %287 = vmatpush.msrb.mxu3 %v262_v27  ;;  %v335_v32 = vld [vmem:[%s1239_s3] sm:$0xff]  ;;  %v511_v34 = vld [vmem:[%s1259_s4 + $0x10] sm:$0xff]  ;;  %v510_v35 = vld [vmem:[%s1259_s4 + $0x8] sm:$0xff]  ;;  %s1483_s3 = sld [smem:[#allocation13_spill]]  ;;  %s1044_s11 = scalar_lea.hbm %s1297_s9, 1 }
  0x43   :  { %214 = vmatpush.msra.mxu1 %v185_v11  ;;  %v509_v36 = vld [vmem:[%s1259_s4] sm:$0xff]  ;;  %v379_v44 = vld [vmem:[%s1249_s17 + $0x18] sm:$0x3f]  ;;  %v378_v45 = vld [vmem:[%s1249_s17 + $0x10] sm:$0xff]  ;;  %s1488_s30 = sld [smem:[#allocation15_spill]]  ;;  %s1040_s4 = sshra.s32 %s847_s12, 4  ;;  %s1041_s4 = int_to_ptr.hbm [resolvable:$true] %s1040_s4 }
  0x44   :  { %288 = vmatpush.msrb.mxu3 %v261_v29  ;;  %v979_v38 = vld [vmem:[%s1214_s6] ss:$0 sm:$0xff]  ;;  %v917_v46 = vld [vmem:[%s1174_s25 + $0x2] sm:$0x3]  ;;  %926 = vmatpush.msk.msra.mxu2 %vm154_vm0, %v379_v44  ;;  %v304_v48 = vld [vmem:[%s1229_s27 + $0x18] sm:$0x3f]  ;;  %p1045_p1 = scmp.lt.s32.totalorder %s1041_s4, %s1297_s9 }
  0x45   :  { %915 = vmatpush.msk.msrb.mxu1 %vm154_vm0, %v222_v12  ;;  %v978_v43 = vld [vmem:[%s1204_s24] ss:$0 sm:$0xff]  ;;  %v377_v49 = vld [vmem:[%s1249_s17 + $0x8] sm:$0xff]  ;;  %921 = vmatpush.msk.msra.mxu0 %vm154_vm0, %v304_v48  ;;  %v303_v50 = vld [vmem:[%s1229_s27 + $0x10] sm:$0xff]  ;;  %s1487_s24 = sld [smem:[#allocation21_spill]]  ;;  %s1042_s10 = scalar_lea.hbm %s1041_s4, 1 }
  0x46   :  { %289 = vmatpush.msrb.mxu3 %v260_v31  ;;  %v253_v47 = vld [vmem:[%s1174_s25] sm:$0x3]  ;;  %403 = vmatpush.msra.mxu2 %v378_v45  ;;  %v302_v52 = vld [vmem:[%s1229_s27 + $0x8] sm:$0xff]  ;;  %v562_v59 = vld [vmem:[%s1478_s0 + $0x78] sm:$0xff]  ;;  %s1482_s25 = sld [smem:[#allocation18_spill]]  ;;  %p1043_p0 = scmp.ne.s32.totalorder %s1041_s4, %s1042_s10 }
  0x47   :  { %243 = vmatpush.msrb.mxu1 %v221_v13  ;;  %v376_v56 = vld [vmem:[%s1249_s17] sm:$0xff]  ;;  %328 = vmatpush.msra.mxu0 %v303_v50  ;;  %v561_v62 = vld [vmem:[%s1478_s0 + $0x70] sm:$0xff]  ;;  %v560_v10 = vld [vmem:[%s1478_s0 + $0x68] sm:$0xff]  ;;  %s1480_s17 = sld [smem:[#allocation12_spill]]  ;;  %p1046_p2 = scmp.lt.s32.totalorder %s1044_s11, %s1042_s10 }
  0x48   :  { %930 = vmatpush.msk.msra.mxu3 %vm154_vm0, %v512_v33  ;;  %404 = vmatpush.msra.mxu2 %v377_v49  ;;  %v301_v11 = vld [vmem:[%s1229_s27] sm:$0xff]  ;;  %v558_v13 = vld [vmem:[%s1478_s0 + $0x58] sm:$0xff]  ;;  %v755_v31 = vld [vmem:[%s1481_s21 + $0x10] sm:$0xff]  ;;  %s1489_s6 = sld [smem:[#allocation14_spill]]  ;;  %s844_s27 = sshll.u32 %s1138_s20, 4  ;;  %s845_s27 = int_to_ptr.vmem [resolvable:$true] %s844_s27 }
  0x49   :  { %244 = vmatpush.msrb.mxu1 %v220_v14  ;;  %329 = vmatpush.msra.mxu0 %v302_v52  ;;  %v559_v12 = vld [vmem:[%s1478_s0 + $0x60] sm:$0xff]  ;;  %v557_v14 = vld [vmem:[%s1478_s0 + $0x50] sm:$0xff]  ;;  %v756_v29 = vld [vmem:[%s1481_s21 + $0x18] sm:$0x3f]  ;;  %p1047_p3 = por %p1046_p2, %p1045_p1 }
  0x4a   :  { %533 = vmatpush.msra.mxu3 %v511_v34  ;;  %405 = vmatpush.msra.mxu2 %v376_v56  ;;  %v980_v25 = vld [vmem:[%s1479_s5] ss:$0 sm:$0xff] }
  0x4b   :  { %245 = vmatpush.msrb.mxu1 %v219_v15  ;;  %330 = vmatpush.msra.mxu0 %v301_v11  ;;  %v556_v15 = vld [vmem:[%s1478_s0 + $0x48] sm:$0xff]  ;;  %p1048_p4 = pnand %p1047_p3, %p1043_p0 }
  0x4c   :  { %534 = vmatpush.msra.mxu3 %v510_v35  ;;  %637 = vmatpush.msrb.mxu2 %v562_v59 }
  0x4d   :  { %567 = vmatpush.msrb.mxu0 %v562_v59 }
  0x4e   :  { %535 = vmatpush.msra.mxu3 %v509_v36  ;;  %638 = vmatpush.msrb.mxu2 %v561_v62 }
  0x4f   :  { %568 = vmatpush.msrb.mxu0 %v561_v62 }
  0x50   :  { %639 = vmatpush.msrb.mxu2 %v560_v10 }
  0x51   :  { %569 = vmatpush.msrb.mxu0 %v560_v10 }
  0x52   :  { %640 = vmatpush.msrb.mxu2 %v559_v12 }
  0x53   :  { %570 = vmatpush.msrb.mxu0 %v559_v12 }
  0x54   :  { %641 = vmatpush.msrb.mxu2 %v558_v13 }
  0x55   :  { %571 = vmatpush.msrb.mxu0 %v558_v13 }
  0x56   :  { %642 = vmatpush.msrb.mxu2 %v557_v14 }
  0x57   :  { %572 = vmatpush.msrb.mxu0 %v557_v14 }
  0x58   :  { %643 = vmatpush.msrb.mxu2 %v556_v15 }
  0x59   :  { %573 = vmatpush.msrb.mxu0 %v556_v15 }
  0xc1   :  { %v175_v17 = vpop.f32.mrf.mxu3 }
  0xc2   :  { %v176_v18 = vadd.f32 %v977_v16, %v175_v17  ;;  %v555_v16 = vld [vmem:[%s1478_s0 + $0x40] sm:$0xff]  ;;  %v554_v17 = vld [vmem:[%s1478_s0 + $0x38] sm:$0xff] }
  0xc3   :  { %644 = vmatpush.msrb.mxu2 %v555_v16  ;;  %574 = vmatpush.msrb.mxu0 %v555_v16 }
  0xc4   :  { %v179_v19 = vmul.f32 1.442695, %v176_v18  ;;  %vm178_vm2 = vcmp.gt.f32.partialorder %v176_v18, 0.0 }
  0xc5   :  { %645 = vmatpush.msrb.mxu2 %v554_v17  ;;  %575 = vmatpush.msrb.mxu0 %v554_v17 }
  0xc6   :  { %988 = vpow2.f32 %v179_v19  ;;  %v552_v19 = vld [vmem:[%s1478_s0 + $0x28] sm:$0xff] }
  0xcc   :  { %v989_v20 = vpop.eup %988 }
  0xcd   :  { %v912_v21 = vadd.f32 -1.0, %v989_v20  ;;  %v551_v20 = vld [vmem:[%s1478_s0 + $0x20] sm:$0xff] }
  0xcf   :  { %v182_v22 = vmul.f32 1.6732632, %v912_v21  ;;  %v550_v21 = vld [vmem:[%s1478_s0 + $0x18] sm:$0xff] }
  0xd1   :  { %v183_v23 = vsel %vm178_vm2, %v176_v18, %v182_v22  ;;  %v553_v18 = vld [vmem:[%s1478_s0 + $0x30] sm:$0xff] }
  0xd2   :  { %v184_v24 = vmul.f32 1.050701, %v183_v23  ;;  %646 = vmatpush.msrb.mxu2 %v553_v18  ;;  %576 = vmatpush.msrb.mxu0 %v553_v18  ;;  %v549_v22 = vld [vmem:[%s1478_s0 + $0x10] sm:$0xff]  ;;  %v548_v23 = vld [vmem:[%s1478_s0 + $0x8] sm:$0xff] }
  0xd4   :  { %914 = vmatmul.msk.f32.vlgmr.msra.gmra.mxu1 %vm150_vm1, %v184_v24  ;;  %647 = vmatpush.msrb.mxu2 %v552_v19 }
  0xd5   :  { %923 = vmatpush.msk.msra.mxu1 %vm154_vm0, %v338_v26  ;;  %577 = vmatpush.msrb.mxu0 %v552_v19 }
  0xd6   :  { %648 = vmatpush.msrb.mxu2 %v551_v20 }
  0xd7   :  { %362 = vmatpush.msra.mxu1 %v337_v28  ;;  %578 = vmatpush.msrb.mxu0 %v551_v20  ;;  %v1384_v28 = vld [vmem:[%s1480_s17] sm:$0x3] }
  0xd8   :  { %649 = vmatpush.msrb.mxu2 %v550_v21 }
  0xd9   :  { %363 = vmatpush.msra.mxu1 %v336_v30  ;;  %579 = vmatpush.msrb.mxu0 %v550_v21  ;;  %v713_v30 = vmul.f32 %v1384_v28, %v1384_v28 }
  0xda   :  { %650 = vmatpush.msrb.mxu2 %v549_v22 }
  0xdb   :  { %364 = vmatpush.msra.mxu1 %v335_v32  ;;  %580 = vmatpush.msrb.mxu0 %v549_v22  ;;  %v1137_v32 = vmov 2.0  }
  0xdc   :  { %916 = vmatmul.msk.f32.vlgmr.msrb.gmra.mxu1 %vm150_vm1, %v184_v24  ;;  %651 = vmatpush.msrb.mxu2 %v548_v23  ;;  %v547_v24 = vld [vmem:[%s1478_s0] sm:$0xff] }
  0xdd   :  { %933 = vmatpush.msk.msrb.mxu1 %vm154_vm0, %v512_v33  ;;  %581 = vmatpush.msrb.mxu0 %v548_v23 }
  0xde   :  { %652 = vmatpush.msrb.mxu2 %v547_v24 }
  0xdf   :  { %623 = vmatpush.msrb.mxu1 %v511_v34  ;;  %582 = vmatpush.msrb.mxu0 %v547_v24  ;;  %v981_v34 = vld [vmem:[%s1482_s25] ss:$0 sm:$0xff] }
  0xe1   :  { %624 = vmatpush.msrb.mxu1 %v510_v35  ;;  %v1393_v35 = vld [vmem:[%s1483_s3] sm:$0x3] }
  0xe3   :  { %625 = vmatpush.msrb.mxu1 %v509_v36  ;;  %v714_v36 = vsel %vm413_vm3, %v713_v30, 0.0 }
  0xe4   :  { %715 = vadd.xlane.f32.xlu1 %v714_v36  ;;  %v752_v36 = vld [vmem:[%s1485_s14 + $0x18] sm:$0x3f] }
 0x151   :  { %v216_v37 = vpop.f32.mrf.mxu1 }
 0x152   :  { %v217_v53 = vadd.f32 %v978_v43, %v216_v37  ;;  %v982_v37 = vld [vmem:[%s1484_s8] ss:$0 sm:$0xff] }
 0x154   :  { %v467_v63 = vmul.f32 %v217_v53, %v217_v53 }
 0x159   :  { %v247_v39 = vpop.f32.mrf.mxu1 }
 0x15a   :  { %v248_v40 = vadd.f32 %v979_v38, %v247_v39 }
 0x15c   :  { %v250_v41 = vmul.f32 0.5, %v248_v40 }
 0x15e   :  { %v251_v42 = vmul.f32 1.442695, %v250_v41 }
 0x160   :  { %990 = vpow2.f32 %v251_v42 }
 0x166   :  { %v991_v51 = vpop.eup %990 }
 0x167   :  { %v258_v54 = vmul.f32 %v991_v51, %v917_v46  ;;  %v254_v55 = vmul.f32 %v991_v51, %v253_v47 }
 0x169   :  { %v255_v57 = vadd.f32 %v254_v55, %v217_v53  ;;  %v259_v58 = vadd.f32 %v258_v54, %v217_v53 }
 0x16b   :  { %919 = vmatmul.msk.f32.vlgmr.msrb.gmra.mxu3 %vm150_vm1, %v255_v57  ;;  %924 = vmatmul.msk.f32.vlgmr.msra.gmra.mxu1 %vm150_vm1, %v259_v58  ;;  %v465_v60 = vmul.f32 1.442695, %v255_v57  ;;  %v490_v61 = vmul.f32 1.442695, %v259_v58 }
 0x16c   :  { %936 = vmatpush.msk.msrb.mxu3 %vm154_vm0, %v756_v29  ;;  %938 = vmatpush.msk.msra.mxu1 %vm154_vm0, %v752_v36 }
 0x16d   :  { %992 = vpow2.f32 %v465_v60 }
 0x16e   :  { %994 = vpow2.f32 %v490_v61  ;;  %776 = vmatpush.msrb.mxu3 %v755_v31 }
 0x16f   :  { %996 = vrcp.f32 %v1137_v32 }
 0x173   :  { %v993_v0 = vpop.eup %992  ;;  %931 = vmatmul.msk.f32.vlgmr.msra.gmra.mxu3 %vm150_vm1, %v259_v58  ;;  %934 = vmatmul.msk.f32.vlgmr.msrb.gmra.mxu1 %vm150_vm1, %v255_v57 }
 0x174   :  { %v995_v1 = vpop.eup %994  ;;  %v468_v2 = vadd.f32 %v993_v0, %v467_v63 }
 0x175   :  { %v492_v4 = vadd.f32 %v995_v1, %v467_v63  ;;  %v997_v43 = vpop.eup %996 }
 0x176   :  { %v928_v3 = vadd.f32 -1.0, %v468_v2  ;;  %v483_v52 = vmul.f32 2.0, %v997_v43  ;;  %vm487_vm8 = vweird.f32 %v997_v43 }
 0x177   :  { %v929_v7 = vadd.f32 -1.0, %v492_v4 }
 0x178   :  { %v470_v5 = vsub.f32 %v928_v3, %v248_v40  ;;  %v484_v61 = vsub.f32 1.0, %v483_v52 }
 0x179   :  { %v494_v8 = vsub.f32 %v929_v7, %v248_v40  ;;  %v729_v40 = vmul.f32 %v1393_v35, %v1393_v35 }
 0x17a   :  { %v471_v6 = vsel %vm413_vm3, %v470_v5, 0.0  ;;  %v485_v7 = vmul.f32 %v997_v43, %v484_v61 }
 0x17b   :  { %472 = vadd.xlane.f32.xlu2 %v471_v6  ;;  %v495_v9 = vsel %vm413_vm3, %v494_v8, 0.0  ;;  %v730_v49 = vsel %vm413_vm3, %v729_v40, 0.0  ;;  %v983_v40 = vld [vmem:[%s1486_s19] ss:$0 sm:$0xff] }
 0x17c   :  { %731 = vadd.xlane.f32.xlu1 %v730_v49  ;;  %v486_v16 = vadd.f32 %v997_v43, %v485_v7  ;;  %v985_v49 = vld [vmem:[#allocation2] ss:$0 sm:$0xff] }
 0x17e   :  { %v1404_v24 = vsel %vm487_vm8, %v997_v43, %v486_v16 }
 0x183   :  { %496 = vadd.xlane.f32.xlu2 %v495_v9 }
 0x1e8   :  { %v366_v26 = vpop.f32.mrf.mxu1 }
 0x1e9   :  { %v367_v27 = vadd.f32 %v980_v25, %v366_v26 }
 0x1eb   :  { %v370_v33 = vmul.f32 1.442695, %v367_v27  ;;  %vm369_vm5 = vcmp.gt.f32.partialorder %v367_v27, 0.0 }
 0x1ed   :  { %998 = vpow2.f32 %v370_v33  ;;  %v754_v33 = vld [vmem:[%s1481_s21 + $0x8] sm:$0xff] }
 0x1ee   :  { %v473_v38 = vpop.xlane.xlu2 %472  ;;  %v291_v39 = vpop.f32.mrf.mxu3  ;;  %777 = vmatpush.msrb.mxu3 %v754_v33 }
 0x1ef   :  { %v474_v41 = vmul.f32 0.5, %v473_v38  ;;  %v292_v42 = vadd.f32 %v981_v34, %v291_v39  ;;  %v753_v34 = vld [vmem:[%s1481_s21] sm:$0xff]  ;;  %v750_v38 = vld [vmem:[%s1485_s14 + $0x8] sm:$0xff] }
 0x1f0   :  { %v627_v44 = vpop.f32.mrf.mxu1  ;;  %778 = vmatpush.msrb.mxu3 %v753_v34  ;;  %v749_v39 = vld [vmem:[%s1485_s14] sm:$0xff] }
 0x1f1   :  { %v475_v45 = vsel %vm417_vm4, %v474_v41, 0.0  ;;  %v295_v46 = vmul.f32 1.442695, %v292_v42  ;;  %v628_v47 = vadd.f32 %v982_v37, %v627_v44  ;;  %vm294_vm6 = vcmp.gt.f32.partialorder %v292_v42, 0.0  ;;  %937 = vmatmul.msk.f32.vlgmr.msrb.gmra.mxu3 %vm150_vm1, %v1393_v35  ;;  %v984_v41 = vld [vmem:[%s1487_s24] ss:$0 sm:$0xff] }
 0x1f2   :  { %v476_v48 = vrot.slane %v475_v45, 4  ;;  %v410_v44 = vld [vmem:[%s1488_s30] sm:$0x3] }
 0x1f3   :  { %v999_v50 = vpop.eup %998  ;;  %1000 = vpow2.f32 %v295_v46  ;;  %v631_v51 = vmul.f32 1.442695, %v628_v47  ;;  %vm630_vm7 = vcmp.gt.f32.partialorder %v628_v47, 0.0 }
 0x1f4   :  { %v925_v53 = vadd.f32 -1.0, %v999_v50  ;;  %v477_v54 = vadd.f32 %v476_v48, %v475_v45  ;;  %v437_v48 = vld [vmem:[%s1489_s6] sm:$0x3] }
 0x1f5   :  { %1002 = vpow2.f32 %v631_v51 }
 0x1f6   :  { %v373_v55 = vmul.f32 1.6732632, %v925_v53  ;;  %v478_v56 = vrot.slane %v477_v54, 2  ;;  %v497_v57 = vpop.xlane.xlu2 %496  ;;  %v537_v58 = vpop.f32.mrf.mxu3 }
 0x1f7   :  { %v498_v59 = vmul.f32 0.5, %v497_v57  ;;  %v538_v60 = vadd.f32 %v982_v37, %v537_v58  ;;  %v751_v37 = vld [vmem:[%s1485_s14 + $0x10] sm:$0xff] }
 0x1f8   :  { %v374_v62 = vsel %vm369_vm5, %v367_v27, %v373_v55  ;;  %v479_v3 = vadd.f32 %v478_v56, %v477_v54  ;;  %802 = vmatpush.msra.mxu1 %v751_v37 }
 0x1f9   :  { %v1001_v63 = vpop.eup %1000  ;;  %v499_v0 = vsel %vm417_vm4, %v498_v59, 0.0  ;;  %v541_v1 = vmul.f32 1.442695, %v538_v60  ;;  %v375_v2 = vmul.f32 1.050701, %v374_v62  ;;  %vm540_vm9 = vcmp.gt.f32.partialorder %v538_v60, 0.0 }
 0x1fa   :  { %v920_v4 = vadd.f32 -1.0, %v1001_v63  ;;  %v500_v5 = vrot.slane %v499_v0, 4  ;;  %v480_v11 = vrot.slane %v479_v3, 1  ;;  %803 = vmatpush.msra.mxu1 %v750_v38 }
 0x1fb   :  { %v1003_v6 = vpop.eup %1002  ;;  %1004 = vpow2.f32 %v541_v1  ;;  %927 = vmatmul.msk.f32.vlgmr.msra.gmra.mxu2 %vm150_vm1, %v375_v2  ;;  %v709_v1 = vmul.f32 %v1393_v35, %v1384_v28 }
 0x1fc   :  { %v298_v8 = vmul.f32 1.6732632, %v920_v4  ;;  %v935_v9 = vadd.f32 -1.0, %v1003_v6  ;;  %v501_v10 = vadd.f32 %v500_v5, %v499_v0  ;;  %v481_v21 = vadd.f32 %v480_v11, %v479_v3  ;;  %804 = vmatpush.msra.mxu1 %v749_v39 }
 0x1fd   :  { %939 = vmatmul.msk.f32.vlgmr.msra.gmra.mxu1 %vm150_vm1, %v1384_v28  ;;  %v710_v2 = vsel %vm413_vm3, %v709_v1, 0.0 }
 0x1fe   :  { %v634_v12 = vmul.f32 1.6732632, %v935_v9  ;;  %v502_v13 = vrot.slane %v501_v10, 2  ;;  %v299_v14 = vsel %vm294_vm6, %v292_v42, %v298_v8  ;;  %v489_v29 = vmul.f32 %v1404_v24, %v481_v21 }
 0x1ff   :  { %v300_v15 = vmul.f32 1.050701, %v299_v14 }
 0x200   :  { %v503_v17 = vadd.f32 %v502_v13, %v501_v10  ;;  %v635_v18 = vsel %vm630_vm7, %v628_v47, %v634_v12 }
 0x201   :  { %v1005_v19 = vpop.eup %1004  ;;  %922 = vmatmul.msk.f32.vlgmr.msra.gmra.mxu0 %vm150_vm1, %v300_v15  ;;  %v636_v20 = vmul.f32 1.050701, %v635_v18 }
 0x202   :  { %v504_v22 = vrot.slane %v503_v17, 1  ;;  %v932_v23 = vadd.f32 -1.0, %v1005_v19 }
 0x203   :  { %653 = vmatmul.f32.vlgmr.msrb.gmra.mxu2 %v636_v20 }
 0x204   :  { %v505_v25 = vadd.f32 %v504_v22, %v503_v17  ;;  %v544_v26 = vmul.f32 1.6732632, %v932_v23 }
 0x206   :  { %v545_v27 = vsel %vm540_vm9, %v538_v60, %v544_v26  ;;  %v506_v30 = vmul.f32 %v505_v25, %v1404_v24 }
 0x207   :  { %v546_v31 = vmul.f32 1.050701, %v545_v27 }
 0x208   :  { %v507_v32 = vadd.f32 %v506_v30, %v489_v29 }
 0x209   :  { %583 = vmatmul.f32.vlgmr.msrb.gmra.mxu0 %v546_v31 }
 0x20a   :  { %508 = vst.msk [vmem:[#allocation7] sm:$0x1] %vm463_vm10, %v507_v32 }
 0x27e   :  { %v332_v42 = vpop.f32.mrf.mxu0  ;;  %v407_v43 = vpop.f32.mrf.mxu2 }
 0x27f   :  { %v333_v45 = vadd.f32 %v983_v40, %v332_v42  ;;  %v408_v46 = vadd.f32 %v984_v41, %v407_v43 }
 0x281   :  { %v411_v47 = vsub.f32 %v333_v45, %v410_v44  ;;  %v438_v51 = vsub.f32 %v408_v46, %v437_v48 }
 0x283   :  { %v412_v50 = vmul.f32 %v411_v47, %v411_v47  ;;  %v439_v59 = vmul.f32 %v438_v51, %v438_v51 }
 0x285   :  { %v414_v52 = vsel %vm413_vm3, %v412_v50, 0.0  ;;  %v440_v0 = vsel %vm413_vm3, %v439_v59, 0.0 }
 0x286   :  { %v584_v53 = vpop.f32.mrf.mxu0  ;;  %v654_v54 = vpop.f32.mrf.mxu2  ;;  %415 = vadd.xlane.f32.xlu0 %v414_v52 }
 0x287   :  { %v1425_v55 = vadd.f32 %v985_v49, %v584_v53  ;;  %v1427_v56 = vadd.f32 %v985_v49, %v654_v54 }
 0x289   :  { %v587_v57 = vand.u32 2147483647, %v1425_v55  ;;  %v657_v58 = vand.u32 2147483647, %v1427_v56 }
 0x28b   :  { %v588_v60 = vsub.f32 0.0, %v587_v57  ;;  %v658_v61 = vsub.f32 0.0, %v657_v58 }
 0x28d   :  { %v589_v62 = vmul.f32 1.442695, %v588_v60  ;;  %v659_v63 = vmul.f32 1.442695, %v658_v61 }
 0x28e   :  { %441 = vadd.xlane.f32.xlu0 %v440_v0 }
 0x28f   :  { %1006 = vpow2.f32 %v589_v62 }
 0x290   :  { %1008 = vpow2.f32 %v659_v63 }
 0x295   :  { %v1007_v3 = vpop.eup %1006 }
 0x296   :  { %v1009_v4 = vpop.eup %1008  ;;  %v591_v5 = vadd.f32 1.0, %v1007_v3  ;;  %711 = vadd.xlane.f32.xlu0 %v710_v2 }
 0x297   :  { %v661_v6 = vadd.f32 1.0, %v1009_v4 }
 0x298   :  { %1051 = shalt.err (!%p1048_p4)
}
 0x299   :  { %849 = dma.vmem_to_hbm [thread:$0]  %s845_s27, 16, %s847_s12, [#allocation8]   ;;  %1010 = vrcp.f32 %v591_v5  ;;  %v603_v10 = vand.u32 2147483648, %v591_v5  ;;  %v601_v13 = vand.u32 2147483647, %v591_v5  ;;  %v673_v14 = vand.u32 2147483648, %v661_v6  ;;  %v716_v57 = vpop.xlane.xlu1 %715 }
 0x29a   :  { %1012 = vrcp.f32 %v661_v6  ;;  %v671_v16 = vand.u32 2147483647, %v661_v6  ;;  %vm597_vm13 = vweird.f32 %v591_v5  ;;  %vm667_vm15 = vweird.f32 %v661_v6  ;;  %s1139_s9 = smov [#allocation9]   ;;  %s857_s15 = sshll.u32 %s1302_s13, 4  ;;  %s858_s15 = int_to_ptr.hbm [resolvable:$true] %s857_s15 }
 0x29b   :  { %v604_v18 = vor.u32 1.1754944e-38, %v603_v10  ;;  %vm602_vm0 = vcmp.eq.f32.partialorder %v601_v13, 8.507059e+37  ;;  %v674_v21 = vor.u32 1.1754944e-38, %v673_v14  ;;  %vm607_vm3 = vcmp.ge.f32.partialorder %v1425_v55, 0.0  ;;  %s855_s16 = sshll.u32 %s1139_s9, 4  ;;  %s1064_s18 = sshra.s32 %s858_s15, 4  ;;  %s856_s16 = int_to_ptr.vmem [resolvable:$true] %s855_s16  ;;  %s1065_s18 = int_to_ptr.hbm [resolvable:$true] %s1064_s18 }
 0x29c   :  { %vm672_vm2 = vcmp.eq.f32.partialorder %v671_v16, 8.507059e+37  ;;  %vm677_vm5 = vcmp.ge.f32.partialorder %v1427_v56, 0.0  ;;  %vm683_vm6 = vcmask 1024   ;;  %s1066_s23 = scalar_lea.hbm %s1065_s18, 1  ;;  %s1068_s22 = scalar_lea.hbm %s1302_s13, 1 }
 0x29d   :  { %p1067_p5 = scmp.ne.s32.totalorder %s1065_s18, %s1066_s23  ;;  %p1069_p6 = scmp.lt.s32.totalorder %s1065_s18, %s1302_s13 }
 0x29e   :  { %p1070_p7 = scmp.lt.s32.totalorder %s1068_s22, %s1066_s23 }
 0x29f   :  { %v1011_v28 = vpop.eup %1010 }
 0x2a0   :  { %v1013_v35 = vpop.eup %1012  ;;  %v593_v7 = vmul.f32 %v1011_v28, %v591_v5  ;;  %vm598_vm11 = vweird.f32 %v1011_v28  ;;  %p1071_p8 = por %p1070_p7, %p1069_p6 }
 0x2a1   :  { %v663_v8 = vmul.f32 %v1013_v35, %v661_v6  ;;  %vm668_vm12 = vweird.f32 %v1013_v35  ;;  %vm599_vm14 = vmor %vm597_vm13, %vm598_vm11 }
 0x2a2   :  { %v594_v9 = vsub.f32 1.0, %v593_v7  ;;  %vm669_vm1 = vmor %vm667_vm15, %vm668_vm12  ;;  %p1072_p9 = pnand %p1071_p8, %p1067_p5 }
 0x2a3   :  { %v664_v11 = vsub.f32 1.0, %v663_v8 }
 0x2a4   :  { %v595_v12 = vmul.f32 %v1011_v28, %v594_v9 }
 0x2a5   :  { %v665_v15 = vmul.f32 %v1013_v35, %v664_v11 }
 0x2a6   :  { %v596_v17 = vadd.f32 %v1011_v28, %v595_v12 }
 0x2a7   :  { %v666_v19 = vadd.f32 %v1013_v35, %v665_v15 }
 0x2a8   :  { %v600_v20 = vsel %vm599_vm14, %v1011_v28, %v596_v17 }
 0x2a9   :  { %v605_v22 = vsel %vm602_vm0, %v604_v18, %v600_v20  ;;  %v670_v23 = vsel %vm669_vm1, %v1013_v35, %v666_v19 }
 0x2aa   :  { %v608_v25 = vsub.f32 1.0, %v605_v22  ;;  %v675_v26 = vsel %vm672_vm2, %v674_v21, %v670_v23 }
 0x2ab   :  { %v678_v27 = vsub.f32 1.0, %v675_v26 }
 0x2ac   :  { %v609_v29 = vsel %vm607_vm3, %v605_v22, %v608_v25 }
 0x2ad   :  { %v680_v30 = vadd.f32 1e-08, %v609_v29  ;;  %v679_v31 = vsel %vm677_vm5, %v675_v26, %v678_v27 }
 0x2ae   :  { %v692_v32 = vsub.f32 1.0, %v679_v31 }
 0x2af   :  { %1014 = vlog2.f32 %v680_v30 }
 0x2b0   :  { %v693_v33 = vadd.f32 1e-08, %v692_v32 }
 0x2b2   :  { %1016 = vlog2.f32 %v693_v33 }
 0x2b5   :  { %v1015_v34 = vpop.eup %1014 }
 0x2b6   :  { %v682_v36 = vmul.f32 0.6931472, %v1015_v34 }
 0x2b8   :  { %v1017_v37 = vpop.eup %1016  ;;  %v684_v38 = vsel %vm683_vm6, %v682_v36, 0.0 }
 0x2b9   :  { %v695_v39 = vmul.f32 0.6931472, %v1017_v37  ;;  %v685_v40 = vrot.slane %v684_v38, 4 }
 0x2bb   :  { %v686_v41 = vadd.f32 %v685_v40, %v684_v38  ;;  %v696_v42 = vsel %vm683_vm6, %v695_v39, 0.0 }
 0x2bc   :  { %v697_v43 = vrot.slane %v696_v42, 4 }
 0x2bd   :  { %v687_v44 = vrot.slane %v686_v41, 2 }
 0x2be   :  { %v698_v45 = vadd.f32 %v697_v43, %v696_v42 }
 0x2bf   :  { %v688_v46 = vadd.f32 %v687_v44, %v686_v41 }
 0x2c0   :  { %v699_v47 = vrot.slane %v698_v45, 2 }
 0x2c1   :  { %v689_v48 = vrot.slane %v688_v46, 1 }
 0x2c2   :  { %v700_v49 = vadd.f32 %v699_v47, %v698_v45 }
 0x2c3   :  { %v690_v50 = vadd.f32 %v689_v48, %v688_v46 }
 0x2c4   :  { %v701_v51 = vrot.slane %v700_v49, 1 }
 0x2c5   :  { %v691_v53 = vmul.f32 %v690_v50, %v1404_v24 }
 0x2c6   :  { %v702_v52 = vadd.f32 %v701_v51, %v700_v49 }
 0x2c8   :  { %v703_v54 = vmul.f32 %v702_v52, %v1404_v24 }
 0x2ca   :  { %v704_v55 = vadd.f32 %v703_v54, %v691_v53 }
 0x2cc   :  { %v705_v56 = vsub.f32 0.0, %v704_v55 }
 0x2ce   :  { %706 = vst.msk [vmem:[#allocation9] sm:$0x1] %vm463_vm10, %v705_v56 }
 0x2cf   :  { %1075 = shalt.err (!%p1072_p9)
}
 0x2d0   :  { %860 = dma.vmem_to_hbm [thread:$0]  %s856_s16, 16, %s858_s15, [#allocation8]   ;;  %v732_v24 = vpop.xlane.xlu1 %731  ;;  %1018 = vrsqrt.f32 %v716_v57  ;;  %vm724_vm7 = vcmp.eq.f32.partialorder %v716_v57, inf  ;;  %v727_v10 = vand.u32 2147483648, %v716_v57  ;;  %vm726_vm9 = vcmp.eq.f32.partialorder %v716_v57, 0.0  ;;  %v780_v17 = vpop.f32.mrf.mxu3 }
 0x2d1   :  { %1020 = vrsqrt.f32 %v732_v24  ;;  %vm740_vm8 = vcmp.eq.f32.partialorder %v732_v24, inf  ;;  %v743_v7 = vand.u32 2147483648, %v732_v24  ;;  %vm742_vm11 = vcmp.eq.f32.partialorder %v732_v24, 0.0  ;;  %v806_v18 = vpop.f32.mrf.mxu1  ;;  %s1490_s13 = sld [smem:[#allocation16_spill]]  ;;  %v986_v25 = vld [vmem:[#allocation3] ss:$0 sm:$0xff] }
 0x2d2   :  { %v807_v23 = vadd.f32 %v806_v18, %v780_v17  ;;  %s1491_s26 = sld [smem:[#allocation17_spill]]  ;;  %v987_v41 = vld [vmem:[#allocation4] ss:$0 sm:$0xff]  ;;  %s1140_s28 = smov [#allocation5]  }
 0x2d3   :  { %s1492_s1 = sld [smem:[#allocation26_spill]]  ;;  %s833_s2 = sshll.u32 %s1140_s28, 4  ;;  %s834_s2 = int_to_ptr.vmem [resolvable:$true] %s833_s2 }
 0x2d4   :  { %v813_v32 = vadd.f32 %v986_v25, %v807_v23 }
 0x2d6   :  { %v1019_v58 = vpop.eup %1018 }
 0x2d7   :  { %v1021_v59 = vpop.eup %1020  ;;  %v718_v60 = vmul.f32 %v1019_v58, %v716_v57  ;;  %v815_v36 = vld [vmem:[%s1490_s13] sm:$0x3] }
 0x2d8   :  { %v734_v61 = vmul.f32 %v1021_v59, %v732_v24  ;;  %v817_v40 = vld [vmem:[%s1491_s26] sm:$0x3] }
 0x2d9   :  { %v719_v62 = vmul.f32 %v1019_v58, %v718_v60  ;;  %s1092_s5 = scalar_lea.hbm %s1492_s1, 1 }
 0x2da   :  { %v735_v63 = vmul.f32 %v1021_v59, %v734_v61 }
 0x2db   :  { %v720_v0 = vmul.f32 0.5, %v719_v62 }
 0x2dc   :  { %v736_v1 = vmul.f32 0.5, %v735_v63 }
 0x2dd   :  { %v721_v2 = vsub.f32 1.5, %v720_v0 }
 0x2de   :  { %v737_v3 = vsub.f32 1.5, %v736_v1 }
 0x2df   :  { %v722_v4 = vmul.f32 %v1019_v58, %v721_v2 }
 0x2e0   :  { %v738_v5 = vmul.f32 %v1021_v59, %v737_v3 }
 0x2e1   :  { %v723_v6 = vmul.f32 %v722_v4, %v716_v57 }
 0x2e2   :  { %v739_v28 = vmul.f32 %v738_v5, %v732_v24 }
 0x2e3   :  { %v725_v9 = vsel %vm724_vm7, %v716_v57, %v723_v6 }
 0x2e4   :  { %v741_v12 = vsel %vm740_vm8, %v732_v24, %v739_v28  ;;  %v728_v14 = vsel %vm726_vm9, %v727_v10, %v725_v9 }
 0x2e5   :  { %v744_v15 = vsel %vm742_vm11, %v743_v7, %v741_v12 }
 0x2e6   :  { %v745_v21 = vmul.f32 %v744_v15, %v728_v14 }
 0x2e8   :  { %v746_v31 = vadd.f32 1e-08, %v745_v21 }
 0x2f9   :  { %v416_v35 = vpop.xlane.xlu0 %415 }
 0x2fa   :  { %v418_v8 = vsel %vm417_vm4, %v416_v35, 0.0 }
 0x2fb   :  { %v419_v11 = vrot.slane %v418_v8, 4 }
 0x2fd   :  { %v420_v13 = vadd.f32 %v419_v11, %v418_v8 }
 0x2ff   :  { %v421_v16 = vrot.slane %v420_v13, 2 }
 0x301   :  { %v422_v19 = vadd.f32 %v421_v16, %v420_v13  ;;  %v442_v20 = vpop.xlane.xlu0 %441 }
 0x302   :  { %v443_v22 = vsel %vm417_vm4, %v442_v20, 0.0 }
 0x303   :  { %v423_v26 = vrot.slane %v422_v19, 1  ;;  %v444_v27 = vrot.slane %v443_v22, 4 }
 0x305   :  { %v424_v29 = vadd.f32 %v423_v26, %v422_v19  ;;  %v445_v30 = vadd.f32 %v444_v27, %v443_v22 }
 0x307   :  { %v446_v33 = vrot.slane %v445_v30, 2  ;;  %1022 = vrsqrt.f32 %v424_v29  ;;  %vm432_vm4 = vcmp.eq.f32.partialorder %v424_v29, inf  ;;  %v435_v63 = vand.u32 2147483648, %v424_v29 }
 0x308   :  { %1024 = vrcp.f32 %v746_v31  ;;  %vm434_vm13 = vcmp.eq.f32.partialorder %v424_v29, 0.0 }
 0x309   :  { %v447_v34 = vadd.f32 %v446_v33, %v445_v30  ;;  %v712_v37 = vpop.xlane.xlu0 %711 }
 0x30a   :  { %v814_v38 = vadd.f32 %v813_v32, %v712_v37 }
 0x30b   :  { %v448_v39 = vrot.slane %v447_v34, 1 }
 0x30c   :  { %v816_v42 = vadd.f32 %v815_v36, %v814_v38 }
 0x30d   :  { %v1023_v43 = vpop.eup %1022  ;;  %v449_v44 = vadd.f32 %v448_v39, %v447_v34 }
 0x30e   :  { %v818_v45 = vadd.f32 %v817_v40, %v816_v42  ;;  %v426_v46 = vmul.f32 %v1023_v43, %v424_v29  ;;  %v1025_v47 = vpop.eup %1024 }
 0x30f   :  { %1026 = vrsqrt.f32 %v449_v44  ;;  %v748_v48 = vmul.f32 %v1025_v47, %v712_v37  ;;  %vm457_vm12 = vcmp.eq.f32.partialorder %v449_v44, inf  ;;  %v460_v0 = vand.u32 2147483648, %v449_v44 }
 0x310   :  { %v823_v49 = vadd.f32 %v987_v41, %v818_v45  ;;  %v427_v50 = vmul.f32 %v1023_v43, %v426_v46  ;;  %vm459_vm14 = vcmp.eq.f32.partialorder %v449_v44, 0.0 }
 0x312   :  { %v824_v51 = vadd.f32 %v823_v49, %v748_v48  ;;  %v428_v52 = vmul.f32 0.5, %v427_v50 }
 0x314   :  { %825 = vst.msk [vmem:[%s1287_s29] sm:$0x3] %vm683_vm6, %v824_v51  ;;  %v429_v53 = vsub.f32 1.5, %v428_v52  ;;  %s835_s29 = sshll.u32 %s1492_s1, 4  ;;  %s836_s29 = int_to_ptr.hbm [resolvable:$true] %s835_s29 }
 0x315   :  { %v1027_v54 = vpop.eup %1026  ;;  %s1088_s7 = sshra.s32 %s836_s29, 4  ;;  %s1089_s7 = int_to_ptr.hbm [resolvable:$true] %s1088_s7 }
 0x316   :  { %v451_v55 = vmul.f32 %v1027_v54, %v449_v44  ;;  %v430_v56 = vmul.f32 %v1023_v43, %v429_v53  ;;  %s1090_s0 = scalar_lea.hbm %s1089_s7, 1  ;;  %p1093_p11 = scmp.lt.s32.totalorder %s1089_s7, %s1492_s1 }
 0x317   :  { %p1091_p10 = scmp.ne.s32.totalorder %s1089_s7, %s1090_s0  ;;  %p1094_p12 = scmp.lt.s32.totalorder %s1092_s5, %s1090_s0 }
 0x318   :  { %v452_v57 = vmul.f32 %v1027_v54, %v451_v55  ;;  %v431_v58 = vmul.f32 %v430_v56, %v424_v29 }
 0x319   :  { %p1095_p13 = por %p1094_p12, %p1093_p11 }
 0x31a   :  { %v453_v24 = vmul.f32 0.5, %v452_v57  ;;  %v433_v61 = vsel %vm432_vm4, %v424_v29, %v431_v58 }
 0x31b   :  { %v436_v2 = vsel %vm434_vm13, %v435_v63, %v433_v61  ;;  %p1096_p0 = pnand %p1095_p13, %p1091_p10 }
 0x31c   :  { %v454_v59 = vsub.f32 1.5, %v453_v24 }
 0x31e   :  { %v455_v60 = vmul.f32 %v1027_v54, %v454_v59 }
 0x320   :  { %v456_v62 = vmul.f32 %v455_v60, %v449_v44 }
 0x322   :  { %v458_v1 = vsel %vm457_vm12, %v449_v44, %v456_v62 }
 0x323   :  { %v461_v3 = vsel %vm459_vm14, %v460_v0, %v458_v1 }
 0x324   :  { %v462_v4 = vadd.f32 %v461_v3, %v436_v2 }
 0x326   :  { %464 = vst.msk [vmem:[#allocation5] sm:$0x1] %vm463_vm10, %v462_v4 }
 0x327   :  { %1099 = shalt.err (!%p1096_p0)
}
 0x328   :  { %838 = dma.vmem_to_hbm [thread:$0]  %s834_s2, 16, %s836_s29, [#allocation6]  }
 0x329   :  { %1100 = dma.done.wait [#allocation6], 16  }
 0x32a   :  { %1101 = vsyncadd [#allocation6], 4294967280 }
 0x32b   :  { %1102 = dma.done.wait [#allocation8], 32  }
 0x32c   :  { %1103 = vsyncadd [#allocation8], 4294967264 }
 0x32d   :  { %875 = vsyncpa [#allocation6], 1 }
 0x32e   :  { %876 = vsyncpa [#allocation8], 1 }

// kernel: dual_gnn_forward.4
= control target key start
LH: loop header
LB: loop body
LE: loop exit
PB: predicated region body
PF: predicated region fallthrough
CT: control target
= control target key end

     0   :  { %16 = vsyncpa [#allocation3], 0  ;;  %s1657_s0 = inlined_call_operand.vmem [shape: f32[8,3,30], index: 0, kind: input, shape index: {}]   ;;  %s1658_s1 = inlined_call_operand.vmem [shape: f32[8,30], index: 1, kind: input, shape index: {}]   ;;  %s1659_s2 = inlined_call_operand.vmem [shape: f32[2,3,30], index: 2, kind: input, shape index: {}]   ;;  %s1660_s3 = inlined_call_operand.vmem [shape: f32[2,30], index: 3, kind: input, shape index: {}]   ;;  %s1661_s4 = inlined_call_operand.vmem [shape: f32[8,2], index: 4, kind: input, shape index: {}]   ;;  %s1662_s5 = inlined_call_operand.vmem [shape: f32[2,8], index: 5, kind: input, shape index: {}]   ;;  %s1663_s6 = inlined_call_operand.vmem [shape: f32[2,8,8], index: 6, kind: input, shape index: {}]   ;;  %s1664_s7 = inlined_call_operand.hbm [shape: f32[20,30,30], index: 7, kind: input, shape index: {}]   ;;  %s1665_s8 = inlined_call_operand.vmem [shape: f32[11,30], index: 8, kind: input, shape index: {}]   ;;  %s1666_s9 = inlined_call_operand.vmem [shape: f32[2,30], index: 9, kind: output, shape index: {0}]   ;;  %s1667_s10 = inlined_call_operand.hbm [shape: f32[2,30], index: 10, kind: output, shape index: {1}]  }
   0x1   :  { %17 = vsyncpa [#allocation4], 0  ;;  %s36_s15 = sshll.u32 %s1664_s7, 4  ;;  %s1341_s16 = smov [#allocation2]   ;;  %s37_s15 = int_to_ptr.hbm [resolvable:$true] %s36_s15 }
   0x2   :  { %s38_s17 = sshll.u32 %s1341_s16, 4  ;;  %s1342_s18 = smov 128   ;;  %s39_s17 = int_to_ptr.vmem [resolvable:$true] %s38_s17 }
   0x3   :  { %s1343_s19 = smov 8  }
   0x4   :  { %44 = dma.hbm_to_vmem [thread:$0]  %s37_s15, 10240, %s39_s17, [#allocation3], %s1342_s18, %s1342_s18, %s1343_s19  }
   0x5   :  { %1337 = dma.done.wait [#allocation3], 10240  }
   0x6   :  { %1338 = vsyncadd [#allocation3], 4294957056  ;;  %vm235_vm0 = vcmask 1045504   ;;  %v270_v0 = vld [vmem:[#allocation2 + $0x38] sm:$0x3f]  ;;  %v269_v1 = vld [vmem:[#allocation2 + $0x30] sm:$0xff] }
   0x7   :  { %1197 = vmatpush.msk.msra.mxu1 %vm235_vm0, %v270_v0  ;;  %v268_v2 = vld [vmem:[#allocation2 + $0x28] sm:$0xff]  ;;  %v207_v3 = vld [vmem:[#allocation2 + $0x18] sm:$0x3f]  ;;  %v51_v4 = vld [vmem:[%s1657_s0] sm:$0x7]  ;;  %vm59_vm1 = vcmask 239616  }
   0x8   :  { %1194 = vmatpush.msk.msra.mxu0 %vm235_vm0, %v207_v3  ;;  %v267_v5 = vld [vmem:[#allocation2 + $0x20] sm:$0xff]  ;;  %v53_v7 = vld [vmem:[%s1657_s0 + $0x8] sm:$0x7]  ;;  %v54_v8 = vld [vmem:[%s1657_s0 + $0xc] sm:$0x7]  ;;  %v1432_v12 = vmul.f32 %v51_v4, %v51_v4  ;;  %v60_v17 = vsel %vm59_vm1, %v51_v4, 0.0 }
   0x9   :  { %v52_v6 = vld [vmem:[%s1657_s0 + $0x4] sm:$0x7]  ;;  %306 = vmatpush.msra.mxu1 %v269_v1  ;;  %v1420_v9 = vld [vmem:[%s1657_s0 + $0x10] sm:$0x7]  ;;  %v1425_v10 = vld [vmem:[%s1657_s0 + $0x14] sm:$0x7]  ;;  %v1436_v14 = vmul.f32 %v53_v7, %v53_v7  ;;  %v1438_v15 = vmul.f32 %v54_v8, %v54_v8 }
   0xa   :  { %v1430_v11 = vld [vmem:[%s1657_s0 + $0x18] sm:$0x7]  ;;  %v1434_v13 = vmul.f32 %v52_v6, %v52_v6  ;;  %v1443_v16 = vld [vmem:[%s1657_s0 + $0x1c] sm:$0x7]  ;;  %v67_v18 = vsel %vm59_vm1, %v52_v6, 0.0  ;;  %v74_v19 = vsel %vm59_vm1, %v53_v7, 0.0 }
   0xb   :  { %v81_v20 = vsel %vm59_vm1, %v54_v8, 0.0  ;;  %307 = vmatpush.msra.mxu1 %v268_v2  ;;  %v61_v21 = vrot.slane %v60_v17, 4  ;;  %v68_v22 = vrot.slane %v67_v18, 4  ;;  %v75_v23 = vrot.slane %v74_v19, 4  ;;  %v206_v25 = vld [vmem:[#allocation2 + $0x10] sm:$0xff]  ;;  %v205_v26 = vld [vmem:[#allocation2 + $0x8] sm:$0xff] }
   0xc   :  { %v82_v24 = vrot.slane %v81_v20, 4  ;;  %v88_v27 = vsel %vm59_vm1, %v1420_v9, 0.0  ;;  %v95_v28 = vsel %vm59_vm1, %v1425_v10, 0.0  ;;  %v102_v29 = vsel %vm59_vm1, %v1430_v11, 0.0  ;;  %252 = vmatpush.msra.mxu0 %v206_v25  ;;  %v471_v31 = vld [vmem:[#allocation2 + $0x78] sm:$0x3f] }
   0xd   :  { %v109_v30 = vsel %vm59_vm1, %v1443_v16, 0.0  ;;  %308 = vmatpush.msra.mxu1 %v267_v5  ;;  %v62_v32 = vadd.f32 %v61_v21, %v60_v17  ;;  %v69_v33 = vadd.f32 %v68_v22, %v67_v18  ;;  %v76_v34 = vadd.f32 %v75_v23, %v74_v19  ;;  %v470_v36 = vld [vmem:[#allocation2 + $0x70] sm:$0xff]  ;;  %v204_v41 = vld [vmem:[#allocation2] sm:$0xff]  ;;  %v469_v46 = vld [vmem:[#allocation2 + $0x68] sm:$0xff]  ;;  %s1182_s21 = sshll.u32 %s1667_s10, 4  ;;  %s1183_s21 = int_to_ptr.hbm [resolvable:$true] %s1182_s21 }
   0xe   :  { %v83_v35 = vadd.f32 %v82_v24, %v81_v20  ;;  %v89_v37 = vrot.slane %v88_v27, 4  ;;  %v96_v38 = vrot.slane %v95_v28, 4  ;;  %v103_v39 = vrot.slane %v102_v29, 4  ;;  %253 = vmatpush.msra.mxu0 %v205_v26  ;;  %v429_v23 = vld [vmem:[#allocation2 + $0x58] sm:$0x3f]  ;;  %v468_v24 = vld [vmem:[#allocation2 + $0x60] sm:$0xff] }
   0xf   :  { %v110_v40 = vrot.slane %v109_v30, 4  ;;  %1207 = vmatpush.msk.msrb.mxu1 %vm235_vm0, %v471_v31  ;;  %v63_v42 = vrot.slane %v62_v32, 2  ;;  %v70_v43 = vrot.slane %v69_v33, 2  ;;  %v77_v44 = vrot.slane %v76_v34, 2 }
  0x10   :  { %v84_v45 = vrot.slane %v83_v35, 2  ;;  %v90_v47 = vadd.f32 %v89_v37, %v88_v27  ;;  %v97_v48 = vadd.f32 %v96_v38, %v95_v28  ;;  %v104_v49 = vadd.f32 %v103_v39, %v102_v29  ;;  %254 = vmatpush.msra.mxu0 %v204_v41  ;;  %v428_v37 = vld [vmem:[#allocation2 + $0x50] sm:$0xff]  ;;  %v427_v38 = vld [vmem:[#allocation2 + $0x48] sm:$0xff] }
  0x11   :  { %v111_v50 = vadd.f32 %v110_v40, %v109_v30  ;;  %vm218_vm2 = vcmask 1041409   ;;  %495 = vmatpush.msrb.mxu1 %v470_v36  ;;  %v64_v51 = vadd.f32 %v63_v42, %v62_v32  ;;  %v71_v52 = vadd.f32 %v70_v43, %v69_v33 }
  0x12   :  { %v78_v53 = vadd.f32 %v77_v44, %v76_v34  ;;  %v85_v54 = vadd.f32 %v84_v45, %v83_v35  ;;  %vm220_vm3 = vcmask 1042434   ;;  %v91_v55 = vrot.slane %v90_v47, 2  ;;  %1204 = vmatpush.msk.msrb.mxu0 %vm235_vm0, %v429_v23  ;;  %v426_v45 = vld [vmem:[#allocation2 + $0x40] sm:$0xff] }
  0x13   :  { %v98_v56 = vrot.slane %v97_v48, 2  ;;  %v105_v57 = vrot.slane %v104_v49, 2  ;;  %v112_v58 = vrot.slane %v111_v50, 2  ;;  %vm222_vm4 = vcmask 1043459   ;;  %496 = vmatpush.msrb.mxu1 %v469_v46 }
  0x14   :  { %v65_v59 = vrot.slane %v64_v51, 1  ;;  %v72_v60 = vrot.slane %v71_v52, 1  ;;  %v79_v61 = vrot.slane %v78_v53, 1  ;;  %v86_v62 = vrot.slane %v85_v54, 1  ;;  %453 = vmatpush.msrb.mxu0 %v428_v37 }
  0x15   :  { %vm224_vm5 = vcmask 1044484   ;;  %v92_v63 = vadd.f32 %v91_v55, %v90_v47  ;;  %v99_v0 = vadd.f32 %v98_v56, %v97_v48  ;;  %v106_v1 = vadd.f32 %v105_v57, %v104_v49  ;;  %497 = vmatpush.msrb.mxu1 %v468_v24 }
  0x16   :  { %v113_v2 = vadd.f32 %v112_v58, %v111_v50  ;;  %vm226_vm6 = vcmask 1045509   ;;  %v66_v3 = vadd.f32 %v65_v59, %v64_v51  ;;  %v73_v4 = vadd.f32 %v72_v60, %v71_v52  ;;  %454 = vmatpush.msrb.mxu0 %v427_v38 }
  0x17   :  { %v80_v5 = vadd.f32 %v79_v61, %v78_v53  ;;  %v87_v6 = vadd.f32 %v86_v62, %v85_v54  ;;  %vm228_vm7 = vcmask 1046534   ;;  %v93_v7 = vrot.slane %v92_v63, 1 }
  0x18   :  { %v100_v8 = vrot.slane %v99_v0, 1  ;;  %v107_v17 = vrot.slane %v106_v1, 1  ;;  %v114_v18 = vrot.slane %v113_v2, 1  ;;  %vm230_vm8 = vcmask 1047559   ;;  %455 = vmatpush.msrb.mxu0 %v426_v45 }
  0x19   :  { %v120_v19 = vmul.f32 %v1420_v9, %v1420_v9  ;;  %v121_v20 = vmul.f32 %v1425_v10, %v1425_v10  ;;  %v122_v21 = vmul.f32 %v1430_v11, %v1430_v11  ;;  %v1466_v22 = vmul.f32 %v1443_v16, %v1443_v16 }
  0x1a   :  { %vm232_vm9 = vcmask 244736   ;;  %v94_v25 = vadd.f32 %v93_v7, %v92_v63  ;;  %v101_v26 = vadd.f32 %v100_v8, %v99_v0  ;;  %v108_v27 = vadd.f32 %v107_v17, %v106_v1 }
  0x1b   :  { %v115_v28 = vadd.f32 %v114_v18, %v113_v2  ;;  %v1469_v9 = vmul.f32 %v66_v3, %v66_v3  ;;  %v1471_v29 = vmul.f32 %v73_v4, %v73_v4  ;;  %v1473_v10 = vmul.f32 %v80_v5, %v80_v5 }
  0x1c   :  { %v1475_v11 = vmul.f32 %v87_v6, %v87_v6  ;;  %v1477_v16 = vmul.f32 %v94_v25, %v94_v25  ;;  %v1479_v30 = vmul.f32 %v101_v26, %v101_v26  ;;  %v1481_v31 = vmul.f32 %v108_v27, %v108_v27 }
  0x1d   :  { %v1483_v32 = vmul.f32 %v115_v28, %v115_v28  ;;  %v281_v33 = vsel %vm218_vm2, %v73_v4, %v66_v3  ;;  %v124_v34 = vsel %vm59_vm1, %v1432_v12, 0.0  ;;  %v131_v35 = vsel %vm59_vm1, %v1434_v13, 0.0 }
  0x1e   :  { %v138_v36 = vsel %vm59_vm1, %v1436_v14, 0.0  ;;  %v282_v39 = vsel %vm220_vm3, %v80_v5, %v281_v33  ;;  %v125_v40 = vrot.slane %v124_v34, 4  ;;  %v132_v41 = vrot.slane %v131_v35, 4 }
  0x1f   :  { %v139_v42 = vrot.slane %v138_v36, 4  ;;  %v283_v43 = vsel %vm222_vm4, %v87_v6, %v282_v39  ;;  %v145_v44 = vsel %vm59_vm1, %v1438_v15, 0.0  ;;  %v152_v12 = vsel %vm59_vm1, %v120_v19, 0.0 }
  0x20   :  { %v159_v13 = vsel %vm59_vm1, %v121_v20, 0.0  ;;  %v284_v14 = vsel %vm224_vm5, %v94_v25, %v283_v43  ;;  %v126_v46 = vadd.f32 %v125_v40, %v124_v34  ;;  %v133_v47 = vadd.f32 %v132_v41, %v131_v35  ;;  %v387_v40 = vld [vmem:[%s1659_s2] sm:$0x7]  ;;  %v388_v41 = vld [vmem:[%s1659_s2 + $0x4] sm:$0x7]  ;;  %s1344_s2 = smov [#allocation5]  }
  0x21   :  { %v140_v48 = vadd.f32 %v139_v42, %v138_v36  ;;  %v285_v49 = vsel %vm226_vm6, %v101_v26, %v284_v14  ;;  %v146_v50 = vrot.slane %v145_v44, 4  ;;  %v153_v51 = vrot.slane %v152_v12, 4  ;;  %s1180_s18 = sshll.u32 %s1344_s2, 4  ;;  %s1181_s18 = int_to_ptr.vmem [resolvable:$true] %s1180_s18 }
  0x22   :  { %v160_v52 = vrot.slane %v159_v13, 4  ;;  %v286_v53 = vsel %vm228_vm7, %v108_v27, %v285_v49  ;;  %v127_v54 = vrot.slane %v126_v46, 2  ;;  %v134_v15 = vrot.slane %v133_v47, 2 }
  0x23   :  { %v141_v55 = vrot.slane %v140_v48, 2  ;;  %v287_v56 = vsel %vm230_vm8, %v115_v28, %v286_v53  ;;  %v147_v57 = vadd.f32 %v146_v50, %v145_v44  ;;  %v154_v58 = vadd.f32 %v153_v51, %v152_v12 }
  0x24   :  { %v161_v59 = vadd.f32 %v160_v52, %v159_v13  ;;  %1198 = vmatmul.msk.f32.vlgmr.msra.gmra.mxu1 %vm232_vm9, %v287_v56  ;;  %v128_v60 = vadd.f32 %v127_v54, %v126_v46  ;;  %v135_v61 = vadd.f32 %v134_v15, %v133_v47  ;;  %v166_v63 = vsel %vm59_vm1, %v122_v21, 0.0 }
  0x25   :  { %v142_v62 = vadd.f32 %v141_v55, %v140_v48  ;;  %v148_v0 = vrot.slane %v147_v57, 2  ;;  %v155_v1 = vrot.slane %v154_v58, 2  ;;  %v167_v3 = vrot.slane %v166_v63, 4 }
  0x26   :  { %v162_v2 = vrot.slane %v161_v59, 2  ;;  %v129_v4 = vrot.slane %v128_v60, 1  ;;  %v136_v5 = vrot.slane %v135_v61, 1  ;;  %v173_v7 = vsel %vm59_vm1, %v1466_v22, 0.0 }
  0x27   :  { %v143_v6 = vrot.slane %v142_v62, 1  ;;  %v149_v8 = vadd.f32 %v148_v0, %v147_v57  ;;  %v156_v17 = vadd.f32 %v155_v1, %v154_v58  ;;  %v168_v19 = vadd.f32 %v167_v3, %v166_v63 }
  0x28   :  { %v163_v18 = vadd.f32 %v162_v2, %v161_v59  ;;  %v130_v20 = vadd.f32 %v129_v4, %v128_v60  ;;  %v137_v23 = vadd.f32 %v136_v5, %v135_v61  ;;  %v174_v25 = vrot.slane %v173_v7, 4 }
  0x29   :  { %v144_v24 = vadd.f32 %v143_v6, %v142_v62  ;;  %v150_v26 = vrot.slane %v149_v8, 1  ;;  %v157_v21 = vrot.slane %v156_v17, 1  ;;  %v169_v28 = vrot.slane %v168_v19, 2 }
  0x2a   :  { %v164_v27 = vrot.slane %v163_v18, 1  ;;  %v175_v33 = vadd.f32 %v174_v25, %v173_v7  ;;  %v188_v34 = vsub.f32 %v1469_v9, %v130_v20  ;;  %v189_v35 = vsub.f32 %v1471_v29, %v137_v23 }
  0x2b   :  { %v190_v36 = vsub.f32 %v1473_v10, %v144_v24  ;;  %v151_v22 = vadd.f32 %v150_v26, %v149_v8  ;;  %v158_v37 = vadd.f32 %v157_v21, %v156_v17  ;;  %v170_v39 = vadd.f32 %v169_v28, %v168_v19 }
  0x2c   :  { %v165_v38 = vadd.f32 %v164_v27, %v163_v18  ;;  %v176_v42 = vrot.slane %v175_v33, 2  ;;  %v196_v43 = vmul.f32 0.5, %v188_v34  ;;  %v197_v44 = vmul.f32 0.5, %v189_v35 }
  0x2d   :  { %v198_v9 = vmul.f32 0.5, %v190_v36  ;;  %v171_v12 = vrot.slane %v170_v39, 1  ;;  %v191_v29 = vsub.f32 %v1475_v11, %v151_v22  ;;  %v192_v10 = vsub.f32 %v1477_v16, %v158_v37 }
  0x2e   :  { %v193_v13 = vsub.f32 %v1479_v30, %v165_v38  ;;  %v177_v45 = vadd.f32 %v176_v42, %v175_v33  ;;  %v219_v14 = vsel %vm218_vm2, %v197_v44, %v196_v43  ;;  %v389_v46 = vsel %vm59_vm1, %v387_v40, 0.0  ;;  %v1250_v42 = vld [vmem:[%s1665_s8 + $0x1] ss:$0 sm:$0xff]  ;;  %v331_v44 = vld [vmem:[#allocation2 + $0xb8] sm:$0x3f] }
  0x2f   :  { %v396_v47 = vsel %vm59_vm1, %v388_v41, 0.0  ;;  %v172_v48 = vadd.f32 %v171_v12, %v170_v39  ;;  %v199_v49 = vmul.f32 0.5, %v191_v29  ;;  %v200_v50 = vmul.f32 0.5, %v192_v10  ;;  %1200 = vmatpush.msk.msra.mxu2 %vm235_vm0, %v331_v44  ;;  %v330_v12 = vld [vmem:[#allocation2 + $0xb0] sm:$0xff]  ;;  %v732_v44 = vld [vmem:[#allocation2 + $0x1a8] sm:$0xff] }
  0x30   :  { %v201_v51 = vmul.f32 0.5, %v193_v13  ;;  %v178_v52 = vrot.slane %v177_v45, 1  ;;  %v221_v53 = vsel %vm220_vm3, %v198_v9, %v219_v14  ;;  %v390_v54 = vrot.slane %v389_v46, 4  ;;  %v325_v9 = vld [vmem:[#allocation2 + $0x98] sm:$0x3f]  ;;  %v324_v29 = vld [vmem:[#allocation2 + $0x90] sm:$0xff] }
  0x31   :  { %v397_v11 = vrot.slane %v396_v47, 4  ;;  %v194_v16 = vsub.f32 %v1481_v31, %v172_v48  ;;  %v223_v30 = vsel %vm222_vm4, %v199_v49, %v221_v53  ;;  %v403_v15 = vmul.f32 %v387_v40, %v387_v40  ;;  %1202 = vmatpush.msk.msra.mxu3 %vm235_vm0, %v325_v9  ;;  %351 = vmatpush.msra.mxu2 %v330_v12  ;;  %v329_v13 = vld [vmem:[#allocation2 + $0xa8] sm:$0xff]  ;;  %v328_v14 = vld [vmem:[#allocation2 + $0xa0] sm:$0xff]  ;;  %v522_v49 = vld [vmem:[#allocation2 + $0xf8] sm:$0x3f] }
  0x32   :  { %v404_v55 = vmul.f32 %v388_v41, %v388_v41  ;;  %v179_v56 = vadd.f32 %v178_v52, %v177_v45  ;;  %v225_v57 = vsel %vm224_vm5, %v200_v50, %v223_v30  ;;  %v391_v58 = vadd.f32 %v390_v54, %v389_v46  ;;  %v323_v45 = vld [vmem:[#allocation2 + $0x88] sm:$0xff]  ;;  %v322_v46 = vld [vmem:[#allocation2 + $0x80] sm:$0xff]  ;;  %v516_v50 = vld [vmem:[#allocation2 + $0xd8] sm:$0x3f] }
  0x33   :  { %v398_v59 = vadd.f32 %v397_v11, %v396_v47  ;;  %v202_v60 = vmul.f32 0.5, %v194_v16  ;;  %v227_v61 = vsel %vm226_vm6, %v201_v51, %v225_v57  ;;  %v405_v62 = vsel %vm59_vm1, %v403_v15, 0.0  ;;  %377 = vmatpush.msra.mxu3 %v324_v29  ;;  %352 = vmatpush.msra.mxu2 %v329_v13  ;;  %v326_v48 = vld [vmem:[%s1658_s1] sm:$0xff]  ;;  %v521_v51 = vld [vmem:[#allocation2 + $0xf0] sm:$0xff]  ;;  %v520_v54 = vld [vmem:[#allocation2 + $0xe8] sm:$0xff] }
  0x34   :  { %v412_v63 = vsel %vm59_vm1, %v404_v55, 0.0  ;;  %v195_v0 = vsub.f32 %v1483_v32, %v179_v56  ;;  %v392_v1 = vrot.slane %v391_v58, 2  ;;  %v406_v2 = vrot.slane %v405_v62, 4  ;;  %v515_v52 = vld [vmem:[#allocation2 + $0xd0] sm:$0xff]  ;;  %v1251_v53 = vld [vmem:[%s1665_s8] ss:$0 sm:$0xff] }
  0x35   :  { %v399_v31 = vrot.slane %v398_v59, 2  ;;  %v229_v3 = vsel %vm228_vm7, %v202_v60, %v227_v61  ;;  %v413_v4 = vrot.slane %v412_v63, 4  ;;  %378 = vmatpush.msra.mxu3 %v323_v45  ;;  %353 = vmatpush.msra.mxu2 %v328_v14  ;;  %v514_v11 = vld [vmem:[#allocation2 + $0xc8] sm:$0xff]  ;;  %v519_v30 = vld [vmem:[#allocation2 + $0xe0] sm:$0xff]  ;;  %vm510_vm14 = vcmask 238592   ;;  %v610_v29 = vld [vmem:[#allocation2 + $0x110] sm:$0xff] }
  0x36   :  { %v203_v5 = vmul.f32 0.5, %v195_v0  ;;  %v393_v6 = vadd.f32 %v392_v1, %v391_v58  ;;  %v407_v8 = vadd.f32 %v406_v2, %v405_v62  ;;  %1201 = vmatmul.msk.f32.vlgmr.msra.gmra.mxu2 %vm232_vm9, %v326_v48  ;;  %v513_v15 = vld [vmem:[#allocation2 + $0xc0] sm:$0xff]  ;;  %v616_v58 = vld [vmem:[#allocation2 + $0x138] sm:$0x3f]  ;;  %vm583_vm15 = vcmask 1041408  }
  0x37   :  { %v400_v7 = vadd.f32 %v399_v31, %v398_v59  ;;  %v414_v17 = vadd.f32 %v413_v4, %v412_v63  ;;  %379 = vmatpush.msra.mxu3 %v322_v46  ;;  %1210 = vmatpush.msk.msrb.mxu2 %vm235_vm0, %v522_v49  ;;  %v517_v55 = vld [vmem:[%s1660_s3] sm:$0x3]  ;;  %v1252_v57 = vld [vmem:[%s1665_s8 + $0x3] ss:$0 sm:$0xff]  ;;  %v1253_v31 = vld [vmem:[%s1665_s8 + $0x2] ss:$0 sm:$0xff] }
  0x38   :  { %v231_v18 = vsel %vm230_vm8, %v203_v5, %v229_v3  ;;  %v394_v19 = vrot.slane %v393_v6, 1  ;;  %v408_v23 = vrot.slane %v407_v8, 2  ;;  %1216 = vmatpush.msk.msra.mxu1 %vm235_vm0, %v616_v58  ;;  %v731_v9 = vld [vmem:[#allocation2 + $0x1a0] sm:$0xff]  ;;  %v611_v12 = vld [vmem:[#allocation2 + $0x118] sm:$0x3f]  ;;  %vm579_vm1 = vcmask 15360  }
  0x39   :  { %v401_v20 = vrot.slane %v400_v7, 1  ;;  %1195 = vmatmul.msk.f32.vlgmr.msra.gmra.mxu0 %vm232_vm9, %v231_v18  ;;  %v415_v24 = vrot.slane %v414_v17, 2  ;;  %1212 = vmatpush.msk.msrb.mxu3 %vm235_vm0, %v516_v50  ;;  %v1254_v13 = vld [vmem:[%s1665_s8 + $0x4] ss:$0 sm:$0xff]  ;;  %v1255_v48 = vld [vmem:[%s1665_s8 + $0x5] ss:$0 sm:$0xff] }
  0x3a   :  { %v395_v32 = vadd.f32 %v394_v19, %v393_v6  ;;  %v409_v26 = vadd.f32 %v408_v23, %v407_v8  ;;  %542 = vmatpush.msrb.mxu2 %v521_v51  ;;  %v726_v58 = vld [vmem:[#allocation2 + $0x180] sm:$0xff] }
  0x3b   :  { %v402_v25 = vadd.f32 %v401_v20, %v400_v7  ;;  %v416_v21 = vadd.f32 %v415_v24, %v414_v17  ;;  %568 = vmatpush.msrb.mxu3 %v515_v52  ;;  %v578_v52 = vld [vmem:[%s1661_s4] sm:$0xff] }
  0x3c   :  { %v419_v27 = vmul.f32 %v395_v32, %v395_v32  ;;  %v410_v33 = vrot.slane %v409_v26, 1  ;;  %543 = vmatpush.msrb.mxu2 %v520_v54  ;;  %v608_v54 = vld [vmem:[#allocation2 + $0x100] sm:$0xff] }
  0x3d   :  { %v476_v28 = vsel %vm218_vm2, %v402_v25, %v395_v32  ;;  %v420_v34 = vmul.f32 %v402_v25, %v402_v25  ;;  %v417_v35 = vrot.slane %v416_v21, 1  ;;  %569 = vmatpush.msrb.mxu3 %v514_v11  ;;  %v678_v32 = vld [vmem:[#allocation2 + $0x178] sm:$0x3f] }
  0x3e   :  { %1208 = vmatmul.msk.f32.vlgmr.msrb.gmra.mxu1 %vm232_vm9, %v476_v28  ;;  %v411_v36 = vadd.f32 %v410_v33, %v409_v26  ;;  %544 = vmatpush.msrb.mxu2 %v519_v30  ;;  %v673_v11 = vld [vmem:[#allocation2 + $0x158] sm:$0x3f]  ;;  %v672_v30 = vld [vmem:[#allocation2 + $0x150] sm:$0xff] }
  0x3f   :  { %v418_v22 = vadd.f32 %v417_v35, %v416_v21  ;;  %570 = vmatpush.msrb.mxu3 %v513_v15  ;;  %1211 = vmatmul.msk.f32.vlgmr.msrb.gmra.mxu2 %vm232_vm9, %v517_v55  ;;  %v728_v15 = vld [vmem:[#allocation2 + $0x190] sm:$0xff]  ;;  %v671_v55 = vld [vmem:[#allocation2 + $0x148] sm:$0xff] }
  0x40   :  { %v421_v37 = vsub.f32 %v419_v27, %v411_v36  ;;  %1218 = vmatpush.msk.msra.mxu2 %vm235_vm0, %v611_v12 }
  0x41   :  { %v422_v38 = vsub.f32 %v420_v34, %v418_v22  ;;  %v615_v22 = vld [vmem:[#allocation2 + $0x130] sm:$0xff] }
  0x42   :  { %v423_v39 = vmul.f32 0.5, %v421_v37  ;;  %v677_v37 = vld [vmem:[#allocation2 + $0x170] sm:$0xff]  ;;  %636 = vmatpush.msra.mxu1 %v615_v22  ;;  %662 = vmatpush.msra.mxu2 %v610_v29 }
  0x43   :  { %v424_v40 = vmul.f32 0.5, %v422_v38  ;;  %v614_v38 = vld [vmem:[#allocation2 + $0x128] sm:$0xff] }
  0x44   :  { %637 = vmatpush.msra.mxu1 %v614_v38 }
  0x45   :  { %v434_v41 = vsel %vm218_vm2, %v424_v40, %v423_v39  ;;  %v676_v39 = vld [vmem:[#allocation2 + $0x168] sm:$0xff]  ;;  %v613_v40 = vld [vmem:[#allocation2 + $0x120] sm:$0xff]  ;;  %vm782_vm2 = vcmask 64512  }
  0x46   :  { %1205 = vmatmul.msk.f32.vlgmr.msrb.gmra.mxu0 %vm232_vm9, %v434_v41  ;;  %v675_v41 = vld [vmem:[#allocation2 + $0x160] sm:$0xff]  ;;  %638 = vmatpush.msra.mxu1 %v613_v40 }
  0xa1   :  { %v310_v43 = vpop.f32.mrf.mxu1 }
  0xa2   :  { %v311_v10 = vadd.f32 %v1250_v42, %v310_v43  ;;  %v734_v42 = vld [vmem:[#allocation2 + $0x1b8] sm:$0x3f]  ;;  %v733_v43 = vld [vmem:[#allocation2 + $0x1b0] sm:$0xff] }
  0xa3   :  { %1224 = vmatpush.msk.msrb.mxu1 %vm235_vm0, %v734_v42 }
  0xa4   :  { %v314_v47 = vmul.f32 1.442695, %v311_v10  ;;  %vm313_vm10 = vcmp.gt.f32.partialorder %v311_v10, 0.0 }
  0xa5   :  { %751 = vmatpush.msrb.mxu1 %v733_v43 }
  0xa6   :  { %1261 = vpow2.f32 %v314_v47 }
  0xa7   :  { %752 = vmatpush.msrb.mxu1 %v732_v44 }
  0xa9   :  { %753 = vmatpush.msrb.mxu1 %v731_v9 }
  0xac   :  { %v1262_v59 = vpop.eup %1261 }
  0xad   :  { %v1199_v63 = vadd.f32 -1.0, %v1262_v59 }
  0xaf   :  { %v317_v1 = vmul.f32 1.6732632, %v1199_v63  ;;  %v992_v63 = vld [vmem:[#allocation2 + $0x200] sm:$0xff] }
  0xb1   :  { %v318_v5 = vsel %vm313_vm10, %v311_v10, %v317_v1 }
  0xb2   :  { %v319_v19 = vmul.f32 1.050701, %v318_v5  ;;  %v912_v5 = vld [vmem:[#allocation2 + $0x1f0] sm:$0xff] }
  0xb6   :  { %v256_v16 = vpop.f32.mrf.mxu0 }
  0xb7   :  { %v257_v56 = vadd.f32 %v1251_v53, %v256_v16  ;;  %v609_v53 = vld [vmem:[#allocation2 + $0x108] sm:$0xff]  ;;  %v729_v16 = vld [vmem:[#allocation2 + $0x198] sm:$0x3f] }
  0xb8   :  { %663 = vmatpush.msra.mxu2 %v609_v53 }
  0xb9   :  { %v260_v60 = vmul.f32 1.442695, %v257_v56  ;;  %vm259_vm11 = vcmp.gt.f32.partialorder %v257_v56, 0.0  ;;  %v355_v10 = vpop.f32.mrf.mxu2 }
  0xba   :  { %664 = vmatpush.msra.mxu2 %v608_v54 }
  0xbb   :  { %v499_v61 = vpop.f32.mrf.mxu1  ;;  %1263 = vpow2.f32 %v260_v60  ;;  %v995_v60 = vld [vmem:[#allocation2 + $0x218] sm:$0x3f] }
  0xbc   :  { %v500_v62 = vadd.f32 %v1252_v57, %v499_v61  ;;  %1226 = vmatpush.msk.msrb.mxu2 %vm235_vm0, %v729_v16  ;;  %v670_v57 = vld [vmem:[#allocation2 + $0x140] sm:$0xff]  ;;  %v994_v61 = vld [vmem:[#allocation2 + $0x210] sm:$0xff] }
  0xbe   :  { %v503_v0 = vmul.f32 1.442695, %v500_v62  ;;  %vm502_vm12 = vcmp.gt.f32.partialorder %v500_v62, 0.0  ;;  %774 = vmatpush.msrb.mxu2 %v728_v15 }
  0xc0   :  { %1265 = vpow2.f32 %v503_v0  ;;  %v1597_v0 = vld [vmem:[%s1662_s5] sm:$0x3] }
  0xc1   :  { %v1264_v2 = vpop.eup %1263 }
  0xc2   :  { %v1196_v3 = vadd.f32 -1.0, %v1264_v2  ;;  %v546_v47 = vpop.f32.mrf.mxu2 }
  0xc3   :  { %v457_v4 = vpop.f32.mrf.mxu0 }
  0xc4   :  { %v263_v6 = vmul.f32 1.6732632, %v1196_v3  ;;  %v458_v7 = vadd.f32 %v1253_v31, %v457_v4  ;;  %v781_v3 = vld [vmem:[%s1663_s6] sm:$0xff]  ;;  %v913_v4 = vld [vmem:[#allocation2 + $0x1f8] sm:$0x3f] }
  0xc6   :  { %v1266_v8 = vpop.eup %1265  ;;  %v264_v17 = vsel %vm259_vm11, %v257_v56, %v263_v6  ;;  %v461_v18 = vmul.f32 1.442695, %v458_v7  ;;  %vm460_vm13 = vcmp.gt.f32.partialorder %v458_v7, 0.0  ;;  %v727_v56 = vld [vmem:[#allocation2 + $0x188] sm:$0xff] }
  0xc7   :  { %v265_v20 = vmul.f32 1.050701, %v264_v17  ;;  %v1209_v23 = vadd.f32 -1.0, %v1266_v8  ;;  %775 = vmatpush.msrb.mxu2 %v727_v56  ;;  %v911_v6 = vld [vmem:[#allocation2 + $0x1e8] sm:$0xff]  ;;  %v910_v17 = vld [vmem:[#allocation2 + $0x1e0] sm:$0xff] }
  0xc8   :  { %1267 = vpow2.f32 %v461_v18  ;;  %v1000_v56 = vld [vmem:[#allocation2 + $0x238] sm:$0x3f] }
  0xc9   :  { %v320_v24 = vadd.f32 %v319_v19, %v265_v20  ;;  %v506_v25 = vmul.f32 1.6732632, %v1209_v23  ;;  %776 = vmatpush.msrb.mxu2 %v726_v58  ;;  %v1229_v19 = vld [vmem:[%s1663_s6 + $0x8] sm:$0xff]  ;;  %v1082_v20 = vld [vmem:[#allocation2 + $0x278] sm:$0x3f] }
  0xca   :  { %v908_v23 = vld [vmem:[#allocation2 + $0x1d8] sm:$0x3f]  ;;  %v998_v58 = vld [vmem:[#allocation2 + $0x228] sm:$0xff] }
  0xcb   :  { %1203 = vmatmul.msk.f32.vlgmr.msra.gmra.mxu3 %vm232_vm9, %v320_v24  ;;  %v507_v27 = vsel %vm502_vm12, %v500_v62, %v506_v25  ;;  %v993_v62 = vld [vmem:[#allocation2 + $0x208] sm:$0xff]  ;;  %v1081_v24 = vld [vmem:[#allocation2 + $0x270] sm:$0xff] }
  0xcc   :  { %1220 = vmatpush.msk.msra.mxu3 %vm235_vm0, %v678_v32  ;;  %v508_v34 = vmul.f32 1.050701, %v507_v27  ;;  %v907_v32 = vld [vmem:[#allocation2 + $0x1d0] sm:$0xff]  ;;  %v1080_v25 = vld [vmem:[#allocation2 + $0x268] sm:$0xff] }
  0xce   :  { %v1268_v26 = vpop.eup %1267  ;;  %695 = vmatpush.msra.mxu3 %v677_v37 }
  0xcf   :  { %v1206_v21 = vadd.f32 -1.0, %v1268_v26  ;;  %v906_v26 = vld [vmem:[#allocation2 + $0x1c8] sm:$0xff] }
  0xd0   :  { %696 = vmatpush.msra.mxu3 %v676_v39 }
  0xd1   :  { %v464_v28 = vmul.f32 1.6732632, %v1206_v21  ;;  %v1079_v21 = vld [vmem:[#allocation2 + $0x260] sm:$0xff] }
  0xd2   :  { %697 = vmatpush.msra.mxu3 %v675_v41  ;;  %v1256_v41 = vld [vmem:[%s1665_s8 + $0x6] ss:$0 sm:$0xff] }
  0xd3   :  { %v465_v33 = vsel %vm460_vm13, %v458_v7, %v464_v28  ;;  %v905_v28 = vld [vmem:[#allocation2 + $0x1c0] sm:$0xff] }
  0xd4   :  { %v466_v35 = vmul.f32 1.050701, %v465_v33  ;;  %v1077_v33 = vld [vmem:[#allocation2 + $0x258] sm:$0x3f] }
  0xd6   :  { %v509_v36 = vadd.f32 %v508_v34, %v466_v35  ;;  %v1076_v34 = vld [vmem:[#allocation2 + $0x250] sm:$0xff]  ;;  %v1075_v35 = vld [vmem:[#allocation2 + $0x248] sm:$0xff] }
  0xd8   :  { %1213 = vmatmul.msk.f32.vlgmr.msrb.gmra.mxu3 %vm232_vm9, %v509_v36  ;;  %511 = vst.msk [vmem:[#allocation5] sm:$0x3] %vm510_vm14, %v509_v36  ;;  %v1074_v36 = vld [vmem:[#allocation2 + $0x240] sm:$0xff] }
  0xd9   :  { %1185 = dma.vmem_to_hbm [thread:$0]  %s1181_s18, 32, %s1183_s21, [#allocation4]  }
 0x14e   :  { %v381_v45 = vpop.f32.mrf.mxu3 }
 0x14f   :  { %v382_v14 = vadd.f32 %v381_v45, %v355_v10 }
 0x151   :  { %v1570_v46 = vadd.f32 %v1254_v13, %v382_v14 }
 0x153   :  { %1217 = vmatmul.msk.f32.vlgmr.msra.gmra.mxu1 %vm232_vm9, %v1570_v46  ;;  %1221 = vmatmul.msk.f32.vlgmr.msra.gmra.mxu3 %vm232_vm9, %v1570_v46 }
 0x15b   :  { %v572_v49 = vpop.f32.mrf.mxu3  ;;  %1225 = vmatmul.msk.f32.vlgmr.msrb.gmra.mxu1 %vm232_vm9, %v1570_v46 }
 0x15c   :  { %v573_v50 = vadd.f32 %v572_v49, %v546_v47 }
 0x15e   :  { %v1581_v51 = vadd.f32 %v1255_v48, %v573_v50 }
 0x160   :  { %1214 = vmatpush.msk.msra.mxu0 %vm583_vm15, %v1581_v51 }
 0x161   :  { %1215 = vmatmul.msk.f32.vlgmr.msra.gmra.mxu0 %vm579_vm1, %v578_v52 }
 0x162   :  { %1222 = vmatpush.msk.msrb.mxu0 %vm235_vm0, %v673_v11 }
 0x164   :  { %718 = vmatpush.msrb.mxu0 %v672_v30 }
 0x166   :  { %719 = vmatpush.msrb.mxu0 %v671_v55 }
 0x168   :  { %720 = vmatpush.msrb.mxu0 %v670_v57  ;;  %v999_v57 = vld [vmem:[#allocation2 + $0x230] sm:$0xff] }
 0x1d0   :  { %v640_v1 = vpop.f32.mrf.mxu1 }
 0x1d6   :  { %v699_v22 = vpop.f32.mrf.mxu3 }
 0x1d8   :  { %v755_v7 = vpop.f32.mrf.mxu1 }
 0x1de   :  { %v604_v59 = vpop.f32.mrf.mxu0 }
 0x1df   :  { %1219 = vmatmul.msk.f32.vlgmr.msra.gmra.mxu2 %vm232_vm9, %v604_v59  ;;  %1223 = vmatmul.msk.f32.vlgmr.msrb.gmra.mxu0 %vm232_vm9, %v604_v59 }
 0x1e0   :  { %899 = vmatpush.msra.mxu2 %v1570_v46 }
 0x1e7   :  { %1227 = vmatmul.msk.f32.vlgmr.msrb.gmra.mxu2 %vm232_vm9, %v604_v59  ;;  %v997_v59 = vld [vmem:[#allocation2 + $0x220] sm:$0xff] }
 0x1e8   :  { %1239 = vmatpush.msk.msrb.mxu2 %vm235_vm0, %v995_v60 }
 0x1ea   :  { %1040 = vmatpush.msrb.mxu2 %v994_v61 }
 0x1ec   :  { %1041 = vmatpush.msrb.mxu2 %v993_v62 }
 0x1ee   :  { %1042 = vmatpush.msrb.mxu2 %v992_v63 }
 0x1ef   :  { %1232 = vmatmul.msk.f32.vlgmr.msra.gmra.mxu2 %vm782_vm2, %v1597_v0 }
 0x1f7   :  { %1240 = vmatmul.msk.f32.vlgmr.msrb.gmra.mxu2 %vm232_vm9, %v1581_v51 }
 0x25c   :  { %v722_v37 = vpop.f32.mrf.mxu0 }
 0x25d   :  { %v723_v38 = vadd.f32 %v722_v37, %v699_v22 }
 0x262   :  { %v666_v31 = vpop.f32.mrf.mxu2 }
 0x263   :  { %v667_v2 = vadd.f32 %v666_v31, %v640_v1 }
 0x265   :  { %801 = vmatpush.msrb.mxu3 %v667_v2 }
 0x266   :  { %1228 = vmatmul.msk.f32.vlgmr.msrb.gmra.mxu3 %vm782_vm2, %v781_v3 }
 0x267   :  { %1233 = vmatpush.msk.msra.mxu3 %vm235_vm0, %v913_v4 }
 0x269   :  { %933 = vmatpush.msra.mxu3 %v912_v5 }
 0x26a   :  { %v778_v8 = vpop.f32.mrf.mxu2 }
 0x26b   :  { %v779_v18 = vadd.f32 %v778_v8, %v755_v7  ;;  %934 = vmatpush.msra.mxu3 %v911_v6  ;;  %v1260_v7 = vld [vmem:[%s1665_s8 + $0x8] ss:$0 sm:$0xff] }
 0x26d   :  { %826 = vmatpush.msra.mxu0 %v779_v18  ;;  %935 = vmatpush.msra.mxu3 %v910_v17 }
 0x26e   :  { %1230 = vmatmul.msk.f32.vlgmr.msra.gmra.mxu0 %vm782_vm2, %v1229_v19 }
 0x26f   :  { %1241 = vmatpush.msk.msrb.mxu3 %vm235_vm0, %v1082_v20  ;;  %1235 = vmatpush.msk.msrb.mxu0 %vm235_vm0, %v908_v23 }
 0x271   :  { %1099 = vmatpush.msrb.mxu3 %v1081_v24  ;;  %958 = vmatpush.msrb.mxu0 %v907_v32 }
 0x272   :  { %v1614_v27 = vpop.f32.mrf.mxu2 }
 0x273   :  { %1100 = vmatpush.msrb.mxu3 %v1080_v25  ;;  %959 = vmatpush.msrb.mxu0 %v906_v26 }
 0x274   :  { %1234 = vmatmul.msk.f32.vlgmr.msra.gmra.mxu3 %vm232_vm9, %v1614_v27 }
 0x275   :  { %1101 = vmatpush.msrb.mxu3 %v1079_v21  ;;  %960 = vmatpush.msrb.mxu0 %v905_v28 }
 0x276   :  { %1236 = vmatmul.msk.f32.vlgmr.msrb.gmra.mxu0 %vm232_vm9, %v1581_v51 }
 0x277   :  { %1243 = vmatpush.msk.msra.mxu0 %vm235_vm0, %v1077_v33 }
 0x279   :  { %1122 = vmatpush.msra.mxu0 %v1076_v34 }
 0x27a   :  { %v1044_v8 = vpop.f32.mrf.mxu2 }
 0x27b   :  { %1123 = vmatpush.msra.mxu0 %v1075_v35 }
 0x27c   :  { %1242 = vmatmul.msk.f32.vlgmr.msrb.gmra.mxu3 %vm232_vm9, %v1614_v27 }
 0x27d   :  { %1124 = vmatpush.msra.mxu0 %v1074_v36 }
 0x27e   :  { %1244 = vmatmul.msk.f32.vlgmr.msra.gmra.mxu0 %vm232_vm9, %v1581_v51 }
 0x2e9   :  { %v803_v39 = vpop.f32.mrf.mxu3 }
 0x2ea   :  { %v804_v40 = vadd.f32 %v803_v39, %v723_v38  ;;  %v1259_v38 = vld [vmem:[%s1665_s8 + $0xa] ss:$0 sm:$0xff] }
 0x2eb   :  { %v828_v42 = vpop.f32.mrf.mxu0 }
 0x2ec   :  { %v831_v43 = vadd.f32 %v828_v42, %v804_v40  ;;  %v1258_v42 = vld [vmem:[%s1665_s8 + $0x9] ss:$0 sm:$0xff] }
 0x2ee   :  { %v834_v44 = vadd.f32 %v1256_v41, %v831_v43 }
 0x2f0   :  { %v835_v9 = vmax.f32 %v834_v44, 0.0 }
 0x2f2   :  { %v836_v12 = vand.u32 2147483647, %v835_v9  ;;  %vm856_vm7 = vcmp.ge.f32.partialorder %v835_v9, 0.0 }
 0x2f3   :  { %v962_v61 = vpop.f32.mrf.mxu0 }
 0x2f4   :  { %v837_v29 = vsub.f32 0.0, %v836_v12 }
 0x2f6   :  { %v838_v10 = vmul.f32 1.442695, %v837_v29 }
 0x2f7   :  { %v937_v60 = vpop.f32.mrf.mxu3 }
 0x2f8   :  { %1269 = vpow2.f32 %v838_v10  ;;  %v963_v62 = vadd.f32 %v962_v61, %v937_v60 }
 0x2fb   :  { %v1126_v40 = vpop.f32.mrf.mxu0 }
 0x2fe   :  { %v1270_v13 = vpop.eup %1269 }
 0x2ff   :  { %v840_v45 = vadd.f32 1.0, %v1270_v13  ;;  %v1103_v37 = vpop.f32.mrf.mxu3 }
 0x300   :  { %v1127_v41 = vadd.f32 %v1126_v40, %v1103_v37 }
 0x301   :  { %1271 = vrcp.f32 %v840_v45  ;;  %v852_v49 = vand.u32 2147483648, %v840_v45  ;;  %v850_v52 = vand.u32 2147483647, %v840_v45  ;;  %vm846_vm4 = vweird.f32 %v840_v45 }
 0x302   :  { %v1131_v12 = vadd.f32 %v1258_v42, %v1127_v41 }
 0x303   :  { %v853_v54 = vor.u32 1.1754944e-38, %v852_v49  ;;  %vm851_vm6 = vcmp.eq.f32.partialorder %v850_v52, 8.507059e+37 }
 0x307   :  { %v1272_v14 = vpop.eup %1271 }
 0x308   :  { %v842_v47 = vmul.f32 %v1272_v14, %v840_v45  ;;  %vm847_vm3 = vweird.f32 %v1272_v14 }
 0x309   :  { %vm848_vm5 = vmor %vm846_vm4, %vm847_vm3 }
 0x30a   :  { %v843_v48 = vsub.f32 1.0, %v842_v47 }
 0x30c   :  { %v844_v50 = vmul.f32 %v1272_v14, %v843_v48 }
 0x30e   :  { %v845_v53 = vadd.f32 %v1272_v14, %v844_v50 }
 0x310   :  { %v849_v11 = vsel %vm848_vm5, %v1272_v14, %v845_v53 }
 0x311   :  { %v854_v16 = vsel %vm851_vm6, %v853_v54, %v849_v11 }
 0x312   :  { %v857_v30 = vsub.f32 1.0, %v854_v16 }
 0x314   :  { %v858_v15 = vsel %vm856_vm7, %v854_v16, %v857_v30 }
 0x315   :  { %v860_v55 = vmul.f32 %v858_v15, %v1570_v46  ;;  %v1257_v46 = vld [vmem:[%s1665_s8 + $0x7] ss:$0 sm:$0xff] }
 0x316   :  { %v967_v63 = vadd.f32 %v1257_v46, %v963_v62 }
 0x317   :  { %879 = vmatpush.msra.mxu1 %v860_v55 }
 0x318   :  { %1231 = vmatmul.msk.f32.vlgmr.msra.gmra.mxu1 %vm782_vm2, %v1597_v0  ;;  %v968_v0 = vand.u32 2147483647, %v967_v63  ;;  %vm988_vm11 = vcmp.ge.f32.partialorder %v967_v63, 0.0 }
 0x319   :  { %1237 = vmatpush.msk.msrb.mxu1 %vm235_vm0, %v1000_v56 }
 0x31a   :  { %v969_v1 = vsub.f32 0.0, %v968_v0 }
 0x31b   :  { %1017 = vmatpush.msrb.mxu1 %v999_v57 }
 0x31c   :  { %v970_v31 = vmul.f32 1.442695, %v969_v1 }
 0x31d   :  { %1018 = vmatpush.msrb.mxu1 %v998_v58 }
 0x31e   :  { %1273 = vpow2.f32 %v970_v31 }
 0x31f   :  { %1019 = vmatpush.msrb.mxu1 %v997_v59 }
 0x320   :  { %1238 = vmatmul.msk.f32.vlgmr.msrb.gmra.mxu1 %vm232_vm9, %v1614_v27 }
 0x324   :  { %v1274_v2 = vpop.eup %1273 }
 0x325   :  { %v972_v3 = vadd.f32 1.0, %v1274_v2 }
 0x327   :  { %1275 = vrcp.f32 %v972_v3  ;;  %v984_v21 = vand.u32 2147483648, %v972_v3  ;;  %vm978_vm8 = vweird.f32 %v972_v3  ;;  %v982_v27 = vand.u32 2147483647, %v972_v3 }
 0x329   :  { %v985_v33 = vor.u32 1.1754944e-38, %v984_v21  ;;  %vm983_vm10 = vcmp.eq.f32.partialorder %v982_v27, 8.507059e+37 }
 0x32d   :  { %v1276_v5 = vpop.eup %1275 }
 0x32e   :  { %v974_v6 = vmul.f32 %v1276_v5, %v972_v3  ;;  %vm979_vm0 = vweird.f32 %v1276_v5 }
 0x32f   :  { %vm980_vm9 = vmor %vm978_vm8, %vm979_vm0 }
 0x330   :  { %v975_v19 = vsub.f32 1.0, %v974_v6 }
 0x332   :  { %v976_v24 = vmul.f32 %v1276_v5, %v975_v19 }
 0x334   :  { %v977_v26 = vadd.f32 %v1276_v5, %v976_v24 }
 0x336   :  { %v981_v28 = vsel %vm980_vm9, %v1276_v5, %v977_v26 }
 0x337   :  { %v986_v35 = vsel %vm983_vm10, %v985_v33, %v981_v28 }
 0x338   :  { %v989_v22 = vsub.f32 1.0, %v986_v35 }
 0x33a   :  { %v990_v39 = vsel %vm988_vm11, %v986_v35, %v989_v22 }
 0x33b   :  { %v1134_v44 = vmul.f32 %v1259_v38, %v990_v39 }
 0x33d   :  { %v1135_v13 = vadd.f32 %v1134_v44, %v1131_v12 }
 0x395   :  { %v1640_v4 = vpop.f32.mrf.mxu1 }
 0x39d   :  { %v1021_v17 = vpop.f32.mrf.mxu1 }
 0x39e   :  { %v1045_v18 = vadd.f32 %v1044_v8, %v1021_v17 }
 0x3a0   :  { %v1049_v20 = vadd.f32 %v1260_v7, %v1045_v18 }
 0x3a2   :  { %v1050_v23 = vand.u32 2147483647, %v1049_v20  ;;  %vm1070_vm2 = vcmp.ge.f32.partialorder %v1049_v20, 0.0 }
 0x3a4   :  { %v1051_v32 = vsub.f32 0.0, %v1050_v23 }
 0x3a6   :  { %v1052_v25 = vmul.f32 1.442695, %v1051_v32 }
 0x3a8   :  { %1277 = vpow2.f32 %v1052_v25 }
 0x3ae   :  { %v1278_v34 = vpop.eup %1277 }
 0x3af   :  { %v1054_v36 = vadd.f32 1.0, %v1278_v34 }
 0x3b1   :  { %1279 = vrcp.f32 %v1054_v36  ;;  %v1066_v10 = vand.u32 2147483648, %v1054_v36  ;;  %v1064_v14 = vand.u32 2147483647, %v1054_v36  ;;  %vm1060_vm13 = vweird.f32 %v1054_v36 }
 0x3b2   :  { %1281 = vtanh.f32 %v1135_v13 }
 0x3b3   :  { %v1067_v48 = vor.u32 1.1754944e-38, %v1066_v10  ;;  %vm1065_vm1 = vcmp.eq.f32.partialorder %v1064_v14, 8.507059e+37 }
 0x3b7   :  { %v1280_v43 = vpop.eup %1279 }
 0x3b8   :  { %v1056_v9 = vmul.f32 %v1280_v43, %v1054_v36  ;;  %vm1061_vm12 = vweird.f32 %v1280_v43  ;;  %v1282_v11 = vpop.eup %1281 }
 0x3b9   :  { %vm1062_vm15 = vmor %vm1060_vm13, %vm1061_vm12 }
 0x3ba   :  { %v1057_v29 = vsub.f32 1.0, %v1056_v9 }
 0x3bc   :  { %v1058_v45 = vmul.f32 %v1280_v43, %v1057_v29 }
 0x3be   :  { %v1059_v47 = vadd.f32 %v1280_v43, %v1058_v45 }
 0x3c0   :  { %v1063_v49 = vsel %vm1062_vm15, %v1280_v43, %v1059_v47 }
 0x3c1   :  { %v1068_v50 = vsel %vm1065_vm1, %v1067_v48, %v1063_v49 }
 0x3c2   :  { %v1071_v52 = vsub.f32 1.0, %v1068_v50 }
 0x3c4   :  { %v1072_v53 = vsel %vm1070_vm2, %v1068_v50, %v1071_v52 }
 0x3c5   :  { %v1137_v54 = vsub.f32 1.0, %v1072_v53 }
 0x3c7   :  { %v1138_v16 = vmul.f32 %v1282_v11, %v1137_v54 }
 0x3c9   :  { %v1139_v30 = vand.u32 2147483647, %v1138_v16  ;;  %vm1159_vm7 = vcmp.ge.f32.partialorder %v1138_v16, 0.0 }
 0x3cb   :  { %v1140_v15 = vsub.f32 0.0, %v1139_v30 }
 0x3cd   :  { %v1141_v55 = vmul.f32 1.442695, %v1140_v15 }
 0x3cf   :  { %1283 = vpow2.f32 %v1141_v55 }
 0x3d5   :  { %v1284_v56 = vpop.eup %1283 }
 0x3d6   :  { %v1143_v57 = vadd.f32 1.0, %v1284_v56 }
 0x3d8   :  { %1285 = vrcp.f32 %v1143_v57  ;;  %v1155_v61 = vand.u32 2147483648, %v1143_v57  ;;  %v1153_v46 = vand.u32 2147483647, %v1143_v57  ;;  %vm1149_vm4 = vweird.f32 %v1143_v57 }
 0x3da   :  { %v1156_v0 = vor.u32 1.1754944e-38, %v1155_v61  ;;  %vm1154_vm6 = vcmp.eq.f32.partialorder %v1153_v46, 8.507059e+37 }
 0x3de   :  { %v1286_v58 = vpop.eup %1285 }
 0x3df   :  { %v1145_v59 = vmul.f32 %v1286_v58, %v1143_v57  ;;  %vm1150_vm3 = vweird.f32 %v1286_v58 }
 0x3e0   :  { %vm1151_vm5 = vmor %vm1149_vm4, %vm1150_vm3 }
 0x3e1   :  { %v1146_v60 = vsub.f32 1.0, %v1145_v59 }
 0x3e3   :  { %v1147_v62 = vmul.f32 %v1286_v58, %v1146_v60 }
 0x3e5   :  { %v1148_v63 = vadd.f32 %v1286_v58, %v1147_v62 }
 0x3e7   :  { %v1152_v1 = vsel %vm1151_vm5, %v1286_v58, %v1148_v63 }
 0x3e8   :  { %v1157_v31 = vsel %vm1154_vm6, %v1156_v0, %v1152_v1 }
 0x3e9   :  { %v1160_v2 = vsub.f32 1.0, %v1157_v31 }
 0x3eb   :  { %v1161_v3 = vsel %vm1159_vm7, %v1157_v31, %v1160_v2 }
 0x3ec   :  { %v1162_v5 = vsub.f32 1.0, %v1161_v3 }
 0x3ee   :  { %v1163_v6 = vmul.f32 %v1162_v5, %v1581_v51 }
 0x3f0   :  { %v1164_v7 = vadd.f32 %v1163_v6, %v1640_v4 }
 0x3f2   :  { %v1166_v8 = vmul.f32 1.442695, %v1164_v7  ;;  %vm1165_vm0 = vcmp.gt.f32.partialorder %v1164_v7, 0.0 }
 0x3f4   :  { %1287 = vpow2.f32 %v1166_v8 }
 0x3fa   :  { %v1288_v17 = vpop.eup %1287 }
 0x3fb   :  { %v1245_v18 = vadd.f32 -1.0, %v1288_v17 }
 0x3fd   :  { %v1169_v19 = vmul.f32 1.6732632, %v1245_v18 }
 0x3ff   :  { %v1170_v20 = vsel %vm1165_vm0, %v1164_v7, %v1169_v19 }
 0x400   :  { %v1171_v23 = vmul.f32 1.050701, %v1170_v20 }
 0x402   :  { %1172 = vst.msk [vmem:[%s1666_s9] sm:$0x3] %vm510_vm14, %v1171_v23 }
 0x403   :  { %1339 = dma.done.wait [#allocation4], 32  }
 0x404   :  { %1340 = vsyncadd [#allocation4], 4294967264 }
 0x405   :  { %1192 = vsyncpa [#allocation3], 1 }
 0x406   :  { %1193 = vsyncpa [#allocation4], 1 }

// kernel: dual_gnn_forward.3
= control target key start
LH: loop header
LB: loop body
LE: loop exit
PB: predicated region body
PF: predicated region fallthrough
CT: control target
= control target key end

     0   :  { %16 = vsyncpa [#allocation3], 0  ;;  %s1361_s16 = smov [#allocation2]   ;;  %s1362_s18 = smov 128   ;;  %s1762_s0 = inlined_call_operand.vmem [shape: f32[8,9,30], index: 0, kind: input, shape index: {}]   ;;  %s1763_s1 = inlined_call_operand.vmem [shape: f32[8,30], index: 1, kind: input, shape index: {}]   ;;  %s1764_s2 = inlined_call_operand.vmem [shape: f32[2,9,30], index: 2, kind: input, shape index: {}]   ;;  %s1765_s3 = inlined_call_operand.vmem [shape: f32[2,30], index: 3, kind: input, shape index: {}]   ;;  %s1766_s4 = inlined_call_operand.vmem [shape: f32[8,2], index: 4, kind: input, shape index: {}]   ;;  %s1767_s5 = inlined_call_operand.vmem [shape: f32[2,8], index: 5, kind: input, shape index: {}]   ;;  %s1768_s6 = inlined_call_operand.vmem [shape: f32[2,8,8], index: 6, kind: input, shape index: {}]   ;;  %s1769_s7 = inlined_call_operand.hbm [shape: f32[20,30,30], index: 7, kind: input, shape index: {}]   ;;  %s1770_s8 = inlined_call_operand.vmem [shape: f32[11,30], index: 8, kind: input, shape index: {}]   ;;  %s1771_s9 = inlined_call_operand.vmem [shape: f32[2,30], index: 9, kind: output, shape index: {0}]   ;;  %s1772_s10 = inlined_call_operand.vmem [shape: f32[2,30], index: 10, kind: output, shape index: {1}]  }
   0x1   :  { %s35_s15 = sshll.u32 %s1769_s7, 4  ;;  %s37_s17 = sshll.u32 %s1361_s16, 4  ;;  %s36_s15 = int_to_ptr.hbm [resolvable:$true] %s35_s15  ;;  %s38_s17 = int_to_ptr.vmem [resolvable:$true] %s37_s17 }
   0x2   :  { %s1363_s19 = smov 8  }
   0x3   :  { %43 = dma.hbm_to_vmem [thread:$0]  %s36_s15, 10240, %s38_s17, [#allocation3], %s1362_s18, %s1362_s18, %s1363_s19  }
   0x4   :  { %1359 = dma.done.wait [#allocation3], 10240  }
   0x5   :  { %1360 = vsyncadd [#allocation3], 4294957056  ;;  %vm282_vm0 = vcmask 1045504   ;;  %vm66_vm1 = vcmask 244736   ;;  %v317_v0 = vld [vmem:[#allocation2 + $0x38] sm:$0x3f] }
   0x6   :  { %v316_v1 = vld [vmem:[#allocation2 + $0x30] sm:$0xff]  ;;  %vm68_vm2 = vcmask 237568   ;;  %1244 = vmatpush.msk.msra.mxu1 %vm282_vm0, %v317_v0  ;;  %v315_v2 = vld [vmem:[#allocation2 + $0x28] sm:$0xff]  ;;  %v255_v3 = vld [vmem:[#allocation2 + $0x18] sm:$0x3f]  ;;  %vm266_vm3 = vcmask 1041409  }
   0x7   :  { %v50_v4 = vld [vmem:[%s1762_s0] sm:$0xff]  ;;  %1241 = vmatpush.msk.msra.mxu0 %vm282_vm0, %v255_v3  ;;  %v51_v5 = vld [vmem:[%s1762_s0 + $0x8] sm:$0x1]  ;;  %v52_v6 = vld [vmem:[%s1762_s0 + $0x10] sm:$0xff]  ;;  %vm268_vm4 = vcmask 1042434   ;;  %vm270_vm5 = vcmask 1043459  }
   0x8   :  { %v53_v7 = vld [vmem:[%s1762_s0 + $0x18] sm:$0x1]  ;;  %v67_v8 = vsel %vm66_vm1, %v50_v4, 0.0  ;;  %v1437_v9 = vmul.f32 %v50_v4, %v50_v4  ;;  %353 = vmatpush.msra.mxu1 %v316_v1  ;;  %v54_v10 = vld [vmem:[%s1762_s0 + $0x20] sm:$0xff]  ;;  %v55_v11 = vld [vmem:[%s1762_s0 + $0x28] sm:$0x1]  ;;  %v1450_v15 = vmul.f32 %v51_v5, %v51_v5  ;;  %v1452_v16 = vmul.f32 %v52_v6, %v52_v6 }
   0x9   :  { %v56_v12 = vld [vmem:[%s1762_s0 + $0x30] sm:$0xff]  ;;  %v69_v13 = vsel %vm68_vm2, %v51_v5, 0.0  ;;  %v77_v14 = vsel %vm66_vm1, %v52_v6, 0.0  ;;  %v314_v17 = vld [vmem:[#allocation2 + $0x20] sm:$0xff]  ;;  %v57_v18 = vld [vmem:[%s1762_s0 + $0x38] sm:$0x1]  ;;  %v1463_v22 = vmul.f32 %v53_v7, %v53_v7  ;;  %v1465_v23 = vmul.f32 %v54_v10, %v54_v10 }
   0xa   :  { %v1460_v19 = vld [vmem:[%s1762_s0 + $0x40] sm:$0xff]  ;;  %v70_v20 = vadd.f32 %v69_v13, %v67_v8  ;;  %v78_v21 = vsel %vm68_vm2, %v53_v7, 0.0  ;;  %354 = vmatpush.msra.mxu1 %v315_v2  ;;  %v1470_v24 = vld [vmem:[%s1762_s0 + $0x48] sm:$0x1]  ;;  %v1475_v25 = vld [vmem:[%s1762_s0 + $0x50] sm:$0xff]  ;;  %v86_v27 = vsel %vm66_vm1, %v54_v10, 0.0  ;;  %v1479_v29 = vmul.f32 %v55_v11, %v55_v11 }
   0xb   :  { %v79_v26 = vadd.f32 %v78_v21, %v77_v14  ;;  %v87_v28 = vsel %vm68_vm2, %v55_v11, 0.0  ;;  %v1484_v30 = vld [vmem:[%s1762_s0 + $0x58] sm:$0x1]  ;;  %v1489_v31 = vld [vmem:[%s1762_s0 + $0x60] sm:$0xff]  ;;  %v1494_v32 = vld [vmem:[%s1762_s0 + $0x68] sm:$0x1]  ;;  %v1496_v35 = vmul.f32 %v56_v12, %v56_v12  ;;  %v1498_v36 = vmul.f32 %v57_v18, %v57_v18 }
   0xc   :  { %v71_v33 = vrot.slane %v70_v20, 4  ;;  %v88_v34 = vadd.f32 %v87_v28, %v86_v27  ;;  %355 = vmatpush.msra.mxu1 %v314_v17  ;;  %v95_v38 = vsel %vm66_vm1, %v56_v12, 0.0  ;;  %v96_v39 = vsel %vm68_vm2, %v57_v18, 0.0  ;;  %v254_v41 = vld [vmem:[#allocation2 + $0x10] sm:$0xff]  ;;  %v253_v42 = vld [vmem:[#allocation2 + $0x8] sm:$0xff]  ;;  %v252_v54 = vld [vmem:[#allocation2] sm:$0xff] }
   0xd   :  { %v80_v37 = vrot.slane %v79_v26, 4  ;;  %v104_v40 = vsel %vm66_vm1, %v1460_v19, 0.0  ;;  %v1507_v43 = vld [vmem:[%s1762_s0 + $0x70] sm:$0xff]  ;;  %v97_v46 = vadd.f32 %v96_v39, %v95_v38  ;;  %v105_v47 = vsel %vm68_vm2, %v1470_v24, 0.0  ;;  %299 = vmatpush.msra.mxu0 %v254_v41  ;;  %v530_v48 = vld [vmem:[#allocation2 + $0x78] sm:$0x3f] }
   0xe   :  { %v72_v44 = vadd.f32 %v71_v33, %v70_v20  ;;  %v89_v45 = vrot.slane %v88_v34, 4  ;;  %v529_v49 = vld [vmem:[#allocation2 + $0x70] sm:$0xff]  ;;  %v106_v51 = vadd.f32 %v105_v47, %v104_v40  ;;  %v113_v52 = vsel %vm66_vm1, %v1475_v25, 0.0  ;;  %1254 = vmatpush.msk.msrb.mxu1 %vm282_vm0, %v530_v48  ;;  %v528_v55 = vld [vmem:[#allocation2 + $0x68] sm:$0xff]  ;;  %v65_v0 = vld [vmem:[%s1762_s0 + $0x78] sm:$0x1] }
   0xf   :  { %v81_v50 = vadd.f32 %v80_v37, %v79_v26  ;;  %v114_v53 = vsel %vm68_vm2, %v1484_v30, 0.0  ;;  %v98_v58 = vrot.slane %v97_v46, 4  ;;  %300 = vmatpush.msra.mxu0 %v253_v42  ;;  %v122_v62 = vsel %vm66_vm1, %v1489_v31, 0.0 }
  0x10   :  { %v73_v56 = vrot.slane %v72_v44, 2  ;;  %v90_v57 = vadd.f32 %v89_v45, %v88_v34  ;;  %v115_v59 = vadd.f32 %v114_v53, %v113_v52  ;;  %v107_v61 = vrot.slane %v106_v51, 4  ;;  %554 = vmatpush.msrb.mxu1 %v529_v49 }
  0x11   :  { %v82_v60 = vrot.slane %v81_v50, 2  ;;  %v123_v63 = vsel %vm68_vm2, %v1494_v32, 0.0  ;;  %v99_v3 = vadd.f32 %v98_v58, %v97_v46  ;;  %301 = vmatpush.msra.mxu0 %v252_v54  ;;  %v131_v8 = vsel %vm66_vm1, %v1507_v43, 0.0 }
  0x12   :  { %v74_v1 = vadd.f32 %v73_v56, %v72_v44  ;;  %v91_v2 = vrot.slane %v90_v57, 2  ;;  %v116_v4 = vrot.slane %v115_v59, 4  ;;  %v108_v6 = vadd.f32 %v107_v61, %v106_v51  ;;  %555 = vmatpush.msrb.mxu1 %v528_v55 }
  0x13   :  { %v83_v5 = vadd.f32 %v82_v60, %v81_v50  ;;  %v124_v7 = vadd.f32 %v123_v63, %v122_v62  ;;  %v100_v12 = vrot.slane %v99_v3, 2  ;;  %v132_v20 = vsel %vm68_vm2, %v65_v0, 0.0 }
  0x14   :  { %v75_v10 = vrot.slane %v74_v1, 1  ;;  %v92_v11 = vadd.f32 %v91_v2, %v90_v57  ;;  %v117_v13 = vadd.f32 %v116_v4, %v115_v59  ;;  %v109_v17 = vrot.slane %v108_v6, 2 }
  0x15   :  { %v84_v14 = vrot.slane %v83_v5, 1  ;;  %v125_v18 = vrot.slane %v124_v7, 4  ;;  %v101_v27 = vadd.f32 %v100_v12, %v99_v3  ;;  %v133_v38 = vadd.f32 %v132_v20, %v131_v8 }
  0x16   :  { %v76_v21 = vadd.f32 %v75_v10, %v74_v1  ;;  %v93_v26 = vrot.slane %v92_v11, 1  ;;  %v118_v28 = vrot.slane %v117_v13, 2  ;;  %v110_v34 = vadd.f32 %v109_v17, %v108_v6  ;;  %v488_v10 = vld [vmem:[#allocation2 + $0x58] sm:$0x3f] }
  0x17   :  { %v85_v33 = vadd.f32 %v84_v14, %v83_v5  ;;  %v126_v37 = vadd.f32 %v125_v18, %v124_v7  ;;  %vm272_vm6 = vcmask 1044484   ;;  %v102_v40 = vrot.slane %v101_v27, 1  ;;  %1251 = vmatpush.msk.msrb.mxu0 %vm282_vm0, %v488_v10 }
  0x18   :  { %v94_v39 = vadd.f32 %v93_v26, %v92_v11  ;;  %v119_v41 = vadd.f32 %v118_v28, %v117_v13  ;;  %v1528_v42 = vmul.f32 %v1460_v19, %v1460_v19  ;;  %vm274_vm7 = vcmask 1045509   ;;  %v527_v11 = vld [vmem:[#allocation2 + $0x60] sm:$0xff] }
  0x19   :  { %v111_v44 = vrot.slane %v110_v34, 1  ;;  %v127_v45 = vrot.slane %v126_v37, 2  ;;  %v134_v46 = vrot.slane %v133_v38, 4  ;;  %v149_v47 = vmul.f32 %v1470_v24, %v1470_v24  ;;  %556 = vmatpush.msrb.mxu1 %v527_v11 }
  0x1a   :  { %vm276_vm8 = vcmask 1046534   ;;  %v103_v48 = vadd.f32 %v102_v40, %v101_v27  ;;  %v120_v49 = vrot.slane %v119_v41, 1  ;;  %v150_v50 = vmul.f32 %v1475_v25, %v1475_v25 }
  0x1b   :  { %v151_v51 = vmul.f32 %v1484_v30, %v1484_v30  ;;  %vm278_vm9 = vcmask 1047559   ;;  %v112_v52 = vadd.f32 %v111_v44, %v110_v34  ;;  %v128_v19 = vadd.f32 %v127_v45, %v126_v37 }
  0x1c   :  { %v135_v53 = vadd.f32 %v134_v46, %v133_v38  ;;  %v152_v54 = vmul.f32 %v1489_v31, %v1489_v31  ;;  %v121_v55 = vadd.f32 %v120_v49, %v119_v41  ;;  %v1540_v24 = vmul.f32 %v1494_v32, %v1494_v32  ;;  %v486_v49 = vld [vmem:[#allocation2 + $0x48] sm:$0xff] }
  0x1d   :  { %v1544_v56 = vmul.f32 %v1507_v43, %v1507_v43  ;;  %v1546_v25 = vmul.f32 %v65_v0, %v65_v0  ;;  %v129_v57 = vrot.slane %v128_v19, 1  ;;  %v1548_v58 = vmul.f32 %v76_v21, %v76_v21 }
  0x1e   :  { %v136_v30 = vrot.slane %v135_v53, 2  ;;  %v1550_v59 = vmul.f32 %v85_v33, %v85_v33  ;;  %v1552_v60 = vmul.f32 %v94_v39, %v94_v39  ;;  %v1554_v31 = vmul.f32 %v103_v48, %v103_v48 }
  0x1f   :  { %v1556_v61 = vmul.f32 %v112_v52, %v112_v52  ;;  %v1558_v32 = vmul.f32 %v121_v55, %v121_v55  ;;  %v130_v62 = vadd.f32 %v129_v57, %v128_v19  ;;  %v328_v43 = vsel %vm266_vm3, %v85_v33, %v76_v21 }
  0x20   :  { %v137_v63 = vadd.f32 %v136_v30, %v135_v53  ;;  %v156_v0 = vsel %vm66_vm1, %v1437_v9, 0.0  ;;  %v329_v1 = vsel %vm268_vm4, %v94_v39, %v328_v43  ;;  %v157_v2 = vsel %vm68_vm2, %v1450_v15, 0.0  ;;  %v485_v30 = vld [vmem:[#allocation2 + $0x40] sm:$0xff] }
  0x21   :  { %v165_v3 = vsel %vm66_vm1, %v1452_v16, 0.0  ;;  %v166_v4 = vsel %vm68_vm2, %v1463_v22, 0.0  ;;  %v1570_v6 = vmul.f32 %v130_v62, %v130_v62  ;;  %v330_v7 = vsel %vm270_vm5, %v103_v48, %v329_v1  ;;  %v487_v48 = vld [vmem:[#allocation2 + $0x50] sm:$0xff] }
  0x22   :  { %v138_v5 = vrot.slane %v137_v63, 1  ;;  %v158_v8 = vadd.f32 %v157_v2, %v156_v0  ;;  %v331_v9 = vsel %vm272_vm6, %v112_v52, %v330_v7  ;;  %v167_v12 = vadd.f32 %v166_v4, %v165_v3  ;;  %512 = vmatpush.msrb.mxu0 %v487_v48 }
  0x23   :  { %v174_v15 = vsel %vm66_vm1, %v1465_v23, 0.0  ;;  %v175_v16 = vsel %vm68_vm2, %v1479_v29, 0.0  ;;  %v332_v13 = vsel %vm274_vm7, %v121_v55, %v331_v9  ;;  %v183_v21 = vsel %vm66_vm1, %v1496_v35, 0.0 }
  0x24   :  { %v139_v22 = vadd.f32 %v138_v5, %v137_v63  ;;  %v159_v14 = vrot.slane %v158_v8, 4  ;;  %v176_v17 = vadd.f32 %v175_v16, %v174_v15  ;;  %v333_v18 = vsel %vm276_vm8, %v130_v62, %v332_v13  ;;  %513 = vmatpush.msrb.mxu0 %v486_v49 }
  0x25   :  { %v168_v20 = vrot.slane %v167_v12, 4  ;;  %v184_v23 = vsel %vm68_vm2, %v1498_v36, 0.0  ;;  %v192_v37 = vsel %vm66_vm1, %v1528_v42, 0.0  ;;  %v193_v38 = vsel %vm68_vm2, %v149_v47, 0.0 }
  0x26   :  { %v1585_v26 = vmul.f32 %v139_v22, %v139_v22  ;;  %v334_v29 = vsel %vm278_vm9, %v139_v22, %v333_v18  ;;  %v160_v27 = vadd.f32 %v159_v14, %v158_v8  ;;  %v177_v28 = vrot.slane %v176_v17, 4  ;;  %514 = vmatpush.msrb.mxu0 %v485_v30 }
  0x27   :  { %1245 = vmatmul.msk.f32.vlgmr.msra.gmra.mxu1 %vm66_vm1, %v334_v29  ;;  %v169_v33 = vadd.f32 %v168_v20, %v167_v12  ;;  %v185_v34 = vadd.f32 %v184_v23, %v183_v21  ;;  %v194_v40 = vadd.f32 %v193_v38, %v192_v37  ;;  %v201_v36 = vsel %vm66_vm1, %v150_v50, 0.0 }
  0x28   :  { %v161_v39 = vrot.slane %v160_v27, 2  ;;  %v178_v35 = vadd.f32 %v177_v28, %v176_v17  ;;  %v202_v45 = vsel %vm68_vm2, %v151_v51, 0.0  ;;  %v210_v46 = vsel %vm66_vm1, %v152_v54, 0.0 }
  0x29   :  { %v170_v41 = vrot.slane %v169_v33, 2  ;;  %v186_v44 = vrot.slane %v185_v34, 4  ;;  %v195_v53 = vrot.slane %v194_v40, 4  ;;  %v203_v55 = vadd.f32 %v202_v45, %v201_v36  ;;  %v437_v36 = vld [vmem:[%s1764_s2 + $0x18] sm:$0x1] }
  0x2a   :  { %v162_v52 = vadd.f32 %v161_v39, %v160_v27  ;;  %v179_v19 = vrot.slane %v178_v35, 2  ;;  %v211_v57 = vsel %vm68_vm2, %v1540_v24, 0.0  ;;  %v219_v50 = vsel %vm66_vm1, %v1544_v56, 0.0 }
  0x2b   :  { %v171_v42 = vadd.f32 %v170_v41, %v169_v33  ;;  %v187_v47 = vadd.f32 %v186_v44, %v185_v34  ;;  %v196_v63 = vadd.f32 %v195_v53, %v194_v40  ;;  %v204_v54 = vrot.slane %v203_v55, 4  ;;  %v436_v40 = vld [vmem:[%s1764_s2 + $0x10] sm:$0xff] }
  0x2c   :  { %v163_v62 = vrot.slane %v162_v52, 1  ;;  %v180_v51 = vadd.f32 %v179_v19, %v178_v35  ;;  %v212_v1 = vadd.f32 %v211_v57, %v210_v46  ;;  %v220_v2 = vsel %vm68_vm2, %v1546_v25, 0.0  ;;  %v434_v25 = vld [vmem:[%s1764_s2] sm:$0xff] }
  0x2d   :  { %v172_v43 = vrot.slane %v171_v42, 1  ;;  %v188_v0 = vrot.slane %v187_v47, 2  ;;  %v197_v5 = vrot.slane %v196_v63, 2  ;;  %v205_v7 = vadd.f32 %v204_v54, %v203_v55 }
  0x2e   :  { %v164_v3 = vadd.f32 %v163_v62, %v162_v52  ;;  %v181_v4 = vrot.slane %v180_v51, 1  ;;  %v213_v56 = vrot.slane %v212_v1, 4  ;;  %v221_v10 = vadd.f32 %v220_v2, %v219_v50 }
  0x2f   :  { %v173_v24 = vadd.f32 %v172_v43, %v171_v42  ;;  %v189_v8 = vadd.f32 %v188_v0, %v187_v47  ;;  %v198_v9 = vadd.f32 %v197_v5, %v196_v63  ;;  %v206_v12 = vrot.slane %v205_v7, 2 }
  0x30   :  { %v182_v11 = vadd.f32 %v181_v4, %v180_v51  ;;  %v236_v15 = vsub.f32 %v1548_v58, %v164_v3  ;;  %v214_v22 = vadd.f32 %v213_v56, %v212_v1  ;;  %v222_v13 = vrot.slane %v221_v10, 4  ;;  %v435_v58 = vld [vmem:[%s1764_s2 + $0x8] sm:$0x1] }
  0x31   :  { %v190_v16 = vrot.slane %v189_v8, 1  ;;  %v237_v14 = vsub.f32 %v1550_v59, %v173_v24  ;;  %v199_v17 = vrot.slane %v198_v9, 1  ;;  %v207_v18 = vadd.f32 %v206_v12, %v205_v7 }
  0x32   :  { %v238_v20 = vsub.f32 %v1552_v60, %v182_v11  ;;  %v244_v21 = vmul.f32 0.5, %v236_v15  ;;  %v215_v29 = vrot.slane %v214_v22, 2  ;;  %v223_v27 = vadd.f32 %v222_v13, %v221_v10 }
  0x33   :  { %v191_v23 = vadd.f32 %v190_v16, %v189_v8  ;;  %v245_v28 = vmul.f32 0.5, %v237_v14  ;;  %v200_v33 = vadd.f32 %v199_v17, %v198_v9  ;;  %v208_v34 = vrot.slane %v207_v18, 1 }
  0x34   :  { %v246_v59 = vmul.f32 0.5, %v238_v20  ;;  %v438_v37 = vsel %vm66_vm1, %v434_v25, 0.0  ;;  %v216_v38 = vadd.f32 %v215_v29, %v214_v22  ;;  %v224_v39 = vrot.slane %v223_v27, 2 }
  0x35   :  { %v239_v35 = vsub.f32 %v1554_v31, %v191_v23  ;;  %v267_v60 = vsel %vm266_vm3, %v245_v28, %v244_v21  ;;  %v209_v41 = vadd.f32 %v208_v34, %v207_v18  ;;  %v240_v44 = vsub.f32 %v1556_v61, %v200_v33 }
  0x36   :  { %v269_v45 = vsel %vm268_vm4, %v246_v59, %v267_v60  ;;  %v439_v46 = vsel %vm68_vm2, %v435_v58, 0.0  ;;  %v217_v48 = vrot.slane %v216_v38, 1  ;;  %v225_v49 = vadd.f32 %v224_v39, %v223_v27 }
  0x37   :  { %v247_v31 = vmul.f32 0.5, %v239_v35  ;;  %v440_v52 = vadd.f32 %v439_v46, %v438_v37  ;;  %v241_v19 = vsub.f32 %v1558_v32, %v209_v41  ;;  %v248_v53 = vmul.f32 0.5, %v240_v44 }
  0x38   :  { %v447_v55 = vsel %vm66_vm1, %v436_v40, 0.0  ;;  %v448_v42 = vsel %vm68_vm2, %v437_v36, 0.0  ;;  %v218_v47 = vadd.f32 %v217_v48, %v216_v38  ;;  %v226_v57 = vrot.slane %v225_v49, 1  ;;  %v1296_v48 = vld [vmem:[%s1770_s8 + $0x1] ss:$0 sm:$0xff] }
  0x39   :  { %v271_v50 = vsel %vm270_vm5, %v247_v31, %v269_v45  ;;  %v441_v61 = vrot.slane %v440_v52, 4  ;;  %v249_v30 = vmul.f32 0.5, %v241_v19  ;;  %v449_v51 = vadd.f32 %v448_v42, %v447_v55  ;;  %v372_v19 = vld [vmem:[#allocation2 + $0x98] sm:$0x3f]  ;;  %v371_v55 = vld [vmem:[#allocation2 + $0x90] sm:$0xff] }
  0x3a   :  { %v273_v62 = vsel %vm272_vm6, %v248_v53, %v271_v50  ;;  %v456_v63 = vmul.f32 %v434_v25, %v434_v25  ;;  %v227_v54 = vadd.f32 %v226_v57, %v225_v49  ;;  %v242_v43 = vsub.f32 %v1570_v6, %v218_v47  ;;  %1249 = vmatpush.msk.msra.mxu3 %vm282_vm0, %v372_v19  ;;  %v377_v53 = vld [vmem:[#allocation2 + $0xb0] sm:$0xff]  ;;  %v376_v47 = vld [vmem:[#allocation2 + $0xa8] sm:$0xff]  ;;  %v375_v50 = vld [vmem:[#allocation2 + $0xa0] sm:$0xff] }
  0x3b   :  { %v442_v0 = vadd.f32 %v441_v61, %v440_v52  ;;  %v457_v32 = vmul.f32 %v435_v58, %v435_v58  ;;  %v275_v1 = vsel %vm274_vm7, %v249_v30, %v273_v62  ;;  %v450_v2 = vrot.slane %v449_v51, 4  ;;  %v378_v52 = vld [vmem:[#allocation2 + $0xb8] sm:$0x3f]  ;;  %v370_v57 = vld [vmem:[#allocation2 + $0x88] sm:$0xff]  ;;  %v369_v61 = vld [vmem:[#allocation2 + $0x80] sm:$0xff] }
  0x3c   :  { %v458_v3 = vmul.f32 %v436_v40, %v436_v40  ;;  %v459_v4 = vmul.f32 %v437_v36, %v437_v36  ;;  %v243_v5 = vsub.f32 %v1585_v26, %v227_v54  ;;  %v250_v7 = vmul.f32 0.5, %v242_v43  ;;  %1247 = vmatpush.msk.msra.mxu2 %vm282_vm0, %v378_v52  ;;  %424 = vmatpush.msra.mxu3 %v371_v55  ;;  %v1297_v30 = vld [vmem:[%s1770_s8] ss:$0 sm:$0xff]  ;;  %v580_v43 = vld [vmem:[#allocation2 + $0xf0] sm:$0xff]  ;;  %v670_v19 = vld [vmem:[#allocation2 + $0x118] sm:$0x3f] }
  0x3d   :  { %v443_v24 = vrot.slane %v442_v0, 2  ;;  %v460_v8 = vsel %vm66_vm1, %v456_v63, 0.0  ;;  %v451_v56 = vadd.f32 %v450_v2, %v449_v51  ;;  %v461_v10 = vsel %vm68_vm2, %v457_v32, 0.0  ;;  %v373_v62 = vld [vmem:[%s1763_s1] sm:$0xff]  ;;  %v581_v51 = vld [vmem:[#allocation2 + $0xf8] sm:$0x3f] }
  0x3e   :  { %v469_v11 = vsel %vm66_vm1, %v458_v3, 0.0  ;;  %v470_v6 = vsel %vm68_vm2, %v459_v4, 0.0  ;;  %v251_v9 = vmul.f32 0.5, %v243_v5  ;;  %v277_v12 = vsel %vm276_vm8, %v250_v7, %v275_v1  ;;  %398 = vmatpush.msra.mxu2 %v377_v53  ;;  %425 = vmatpush.msra.mxu3 %v370_v57  ;;  %v575_v63 = vld [vmem:[#allocation2 + $0xd8] sm:$0x3f]  ;;  %v579_v1 = vld [vmem:[#allocation2 + $0xe8] sm:$0xff] }
  0x3f   :  { %v444_v15 = vadd.f32 %v443_v24, %v442_v0  ;;  %v462_v16 = vadd.f32 %v461_v10, %v460_v8  ;;  %v452_v22 = vrot.slane %v451_v56, 2  ;;  %v471_v13 = vadd.f32 %v470_v6, %v469_v11  ;;  %v574_v0 = vld [vmem:[#allocation2 + $0xd0] sm:$0xff]  ;;  %v573_v2 = vld [vmem:[#allocation2 + $0xc8] sm:$0xff]  ;;  %v1298_v5 = vld [vmem:[%s1770_s8 + $0x3] ss:$0 sm:$0xff] }
  0x40   :  { %v279_v26 = vsel %vm278_vm9, %v251_v9, %v277_v12  ;;  %399 = vmatpush.msra.mxu2 %v376_v47  ;;  %426 = vmatpush.msra.mxu3 %v369_v61  ;;  %v578_v7 = vld [vmem:[#allocation2 + $0xe0] sm:$0xff]  ;;  %v675_v10 = vld [vmem:[#allocation2 + $0x138] sm:$0x3f]  ;;  %vm569_vm14 = vcmask 238592   ;;  %v669_v53 = vld [vmem:[#allocation2 + $0x110] sm:$0xff]  ;;  %vm642_vm15 = vcmask 1041408  }
  0x41   :  { %v445_v14 = vrot.slane %v444_v15, 1  ;;  %v463_v25 = vrot.slane %v462_v16, 4  ;;  %1242 = vmatmul.msk.f32.vlgmr.msra.gmra.mxu0 %vm66_vm1, %v279_v26  ;;  %v453_v17 = vadd.f32 %v452_v22, %v451_v56  ;;  %v472_v18 = vrot.slane %v471_v13, 4  ;;  %v572_v24 = vld [vmem:[#allocation2 + $0xc0] sm:$0xff]  ;;  %1263 = vmatpush.msk.msra.mxu1 %vm282_vm0, %v675_v10  ;;  %v1053_v10 = vld [vmem:[#allocation2 + $0x210] sm:$0xff] }
  0x42   :  { %400 = vmatpush.msra.mxu2 %v375_v50  ;;  %1259 = vmatpush.msk.msrb.mxu3 %vm282_vm0, %v575_v63  ;;  %v576_v8 = vld [vmem:[%s1765_s3] sm:$0x3]  ;;  %v1299_v26 = vld [vmem:[%s1770_s8 + $0x2] ss:$0 sm:$0xff]  ;;  %vm638_vm2 = vcmask 15360  }
  0x43   :  { %v464_v20 = vadd.f32 %v463_v25, %v462_v16  ;;  %v446_v21 = vadd.f32 %v445_v14, %v444_v15  ;;  %v454_v23 = vrot.slane %v453_v17, 1  ;;  %v473_v29 = vadd.f32 %v472_v18, %v471_v13  ;;  %1248 = vmatmul.msk.f32.vlgmr.msra.gmra.mxu2 %vm66_vm1, %v373_v62  ;;  %v790_v52 = vld [vmem:[#allocation2 + $0x1a0] sm:$0xff] }
  0x44   :  { %1257 = vmatpush.msk.msrb.mxu2 %vm282_vm0, %v581_v51  ;;  %627 = vmatpush.msrb.mxu3 %v574_v0  ;;  %v667_v0 = vld [vmem:[#allocation2 + $0x100] sm:$0xff] }
  0x45   :  { %v465_v27 = vrot.slane %v464_v20, 2  ;;  %v455_v28 = vadd.f32 %v454_v23, %v453_v17  ;;  %v474_v58 = vrot.slane %v473_v29, 2  ;;  %v478_v37 = vmul.f32 %v446_v21, %v446_v21  ;;  %v737_v23 = vld [vmem:[#allocation2 + $0x178] sm:$0x3f] }
  0x46   :  { %601 = vmatpush.msrb.mxu2 %v580_v43  ;;  %628 = vmatpush.msrb.mxu3 %v573_v2  ;;  %v668_v43 = vld [vmem:[#allocation2 + $0x108] sm:$0xff]  ;;  %v731_v2 = vld [vmem:[#allocation2 + $0x150] sm:$0xff] }
  0x47   :  { %v466_v33 = vadd.f32 %v465_v27, %v464_v20  ;;  %v535_v34 = vsel %vm266_vm3, %v455_v28, %v446_v21  ;;  %v475_v59 = vadd.f32 %v474_v58, %v473_v29  ;;  %v479_v39 = vmul.f32 %v455_v28, %v455_v28 }
  0x48   :  { %1255 = vmatmul.msk.f32.vlgmr.msrb.gmra.mxu1 %vm66_vm1, %v535_v34  ;;  %602 = vmatpush.msrb.mxu2 %v579_v1  ;;  %v788_v1 = vld [vmem:[#allocation2 + $0x198] sm:$0x3f] }
  0x49   :  { %v467_v38 = vrot.slane %v466_v33, 1  ;;  %v476_v35 = vrot.slane %v475_v59, 1  ;;  %629 = vmatpush.msrb.mxu3 %v572_v24  ;;  %v785_v24 = vld [vmem:[#allocation2 + $0x180] sm:$0xff] }
  0x4a   :  { %603 = vmatpush.msrb.mxu2 %v578_v7  ;;  %v729_v7 = vld [vmem:[#allocation2 + $0x140] sm:$0xff] }
  0x4b   :  { %v468_v60 = vadd.f32 %v467_v38, %v466_v33  ;;  %v477_v40 = vadd.f32 %v476_v35, %v475_v59  ;;  %1258 = vmatmul.msk.f32.vlgmr.msrb.gmra.mxu2 %vm66_vm1, %v576_v8 }
  0x4c   :  { %1265 = vmatpush.msk.msra.mxu2 %vm282_vm0, %v670_v19 }
  0x4d   :  { %v480_v36 = vsub.f32 %v478_v37, %v468_v60  ;;  %v481_v41 = vsub.f32 %v479_v39, %v477_v40  ;;  %v674_v40 = vld [vmem:[#allocation2 + $0x130] sm:$0xff] }
  0x4e   :  { %695 = vmatpush.msra.mxu1 %v674_v40  ;;  %721 = vmatpush.msra.mxu2 %v669_v53 }
  0x4f   :  { %v482_v44 = vmul.f32 0.5, %v480_v36  ;;  %v483_v45 = vmul.f32 0.5, %v481_v41  ;;  %v736_v36 = vld [vmem:[#allocation2 + $0x170] sm:$0xff]  ;;  %v673_v41 = vld [vmem:[#allocation2 + $0x128] sm:$0xff] }
  0x50   :  { %696 = vmatpush.msra.mxu1 %v673_v41  ;;  %722 = vmatpush.msra.mxu2 %v668_v43 }
  0x51   :  { %v493_v46 = vsel %vm266_vm3, %v483_v45, %v482_v44  ;;  %v735_v44 = vld [vmem:[#allocation2 + $0x168] sm:$0xff]  ;;  %v672_v45 = vld [vmem:[#allocation2 + $0x120] sm:$0xff]  ;;  %vm841_vm3 = vcmask 64512  }
  0x52   :  { %1252 = vmatmul.msk.f32.vlgmr.msrb.gmra.mxu0 %vm66_vm1, %v493_v46  ;;  %v734_v46 = vld [vmem:[#allocation2 + $0x160] sm:$0xff]  ;;  %697 = vmatpush.msra.mxu1 %v672_v45 }
  0x53   :  { %723 = vmatpush.msra.mxu2 %v667_v0 }
  0x55   :  { %1273 = vmatpush.msk.msrb.mxu2 %vm282_vm0, %v788_v1 }
  0xa4   :  { %v357_v49 = vpop.f32.mrf.mxu1 }
  0xa5   :  { %v358_v31 = vadd.f32 %v1296_v48, %v357_v49  ;;  %v793_v48 = vld [vmem:[#allocation2 + $0x1b8] sm:$0x3f]  ;;  %v792_v49 = vld [vmem:[#allocation2 + $0x1b0] sm:$0xff] }
  0xa6   :  { %1271 = vmatpush.msk.msrb.mxu1 %vm282_vm0, %v793_v48 }
  0xa7   :  { %v361_v42 = vmul.f32 1.442695, %v358_v31  ;;  %vm360_vm10 = vcmp.gt.f32.partialorder %v358_v31, 0.0 }
  0xa8   :  { %810 = vmatpush.msrb.mxu1 %v792_v49 }
  0xa9   :  { %1307 = vpow2.f32 %v361_v42  ;;  %v1300_v42 = vld [vmem:[%s1770_s8 + $0x4] ss:$0 sm:$0xff] }
  0xaf   :  { %v1308_v3 = vpop.eup %1307 }
  0xb0   :  { %v1246_v56 = vadd.f32 -1.0, %v1308_v3  ;;  %v787_v3 = vld [vmem:[#allocation2 + $0x190] sm:$0xff] }
  0xb1   :  { %833 = vmatpush.msrb.mxu2 %v787_v3 }
  0xb2   :  { %v364_v9 = vmul.f32 1.6732632, %v1246_v56  ;;  %v1054_v56 = vld [vmem:[#allocation2 + $0x218] sm:$0x3f] }
  0xb4   :  { %v365_v22 = vsel %vm360_vm10, %v358_v31, %v364_v9  ;;  %v791_v31 = vld [vmem:[#allocation2 + $0x1a8] sm:$0xff]  ;;  %v1705_v9 = vld [vmem:[%s1767_s5] sm:$0x3] }
  0xb5   :  { %v366_v25 = vmul.f32 1.050701, %v365_v22  ;;  %811 = vmatpush.msrb.mxu1 %v791_v31  ;;  %v840_v22 = vld [vmem:[%s1768_s6] sm:$0xff] }
  0xb7   :  { %812 = vmatpush.msrb.mxu1 %v790_v52 }
  0xbe   :  { %v303_v54 = vpop.f32.mrf.mxu0 }
  0xbf   :  { %v304_v32 = vadd.f32 %v1297_v30, %v303_v54  ;;  %v1301_v30 = vld [vmem:[%s1770_s8 + $0x5] ss:$0 sm:$0xff] }
  0xc0   :  { %v637_v54 = vld [vmem:[%s1766_s4] sm:$0xff] }
  0xc1   :  { %v307_v4 = vmul.f32 1.442695, %v304_v32  ;;  %vm306_vm11 = vcmp.gt.f32.partialorder %v304_v32, 0.0 }
  0xc3   :  { %1309 = vpow2.f32 %v307_v4  ;;  %v730_v4 = vld [vmem:[#allocation2 + $0x148] sm:$0xff] }
  0xc5   :  { %v558_v11 = vpop.f32.mrf.mxu1 }
  0xc6   :  { %v559_v6 = vadd.f32 %v1298_v5, %v558_v11  ;;  %v402_v55 = vpop.f32.mrf.mxu2  ;;  %v786_v5 = vld [vmem:[#allocation2 + $0x188] sm:$0xff] }
  0xc7   :  { %834 = vmatpush.msrb.mxu2 %v786_v5  ;;  %v1052_v11 = vld [vmem:[#allocation2 + $0x208] sm:$0xff]  ;;  %v1059_v5 = vld [vmem:[#allocation2 + $0x238] sm:$0x3f] }
  0xc8   :  { %v562_v12 = vmul.f32 1.442695, %v559_v6  ;;  %vm561_vm12 = vcmp.gt.f32.partialorder %v559_v6, 0.0 }
  0xc9   :  { %v1310_v15 = vpop.eup %1309  ;;  %835 = vmatpush.msrb.mxu2 %v785_v24  ;;  %v1057_v24 = vld [vmem:[#allocation2 + $0x228] sm:$0xff] }
  0xca   :  { %v1243_v16 = vadd.f32 -1.0, %v1310_v15  ;;  %1311 = vpow2.f32 %v562_v12 }
  0xcc   :  { %v310_v13 = vmul.f32 1.6732632, %v1243_v16 }
  0xce   :  { %v311_v14 = vsel %vm306_vm11, %v304_v32, %v310_v13  ;;  %v605_v61 = vpop.f32.mrf.mxu2  ;;  %v732_v32 = vld [vmem:[#allocation2 + $0x158] sm:$0x3f] }
  0xcf   :  { %v312_v17 = vmul.f32 1.050701, %v311_v14  ;;  %v516_v18 = vpop.f32.mrf.mxu0  ;;  %v972_v13 = vld [vmem:[#allocation2 + $0x1f8] sm:$0x3f]  ;;  %v970_v14 = vld [vmem:[#allocation2 + $0x1e8] sm:$0xff] }
  0xd0   :  { %v517_v20 = vadd.f32 %v1299_v26, %v516_v18  ;;  %v1312_v29 = vpop.eup %1311  ;;  %v971_v26 = vld [vmem:[#allocation2 + $0x1f0] sm:$0xff]  ;;  %v969_v18 = vld [vmem:[#allocation2 + $0x1e0] sm:$0xff] }
  0xd1   :  { %v367_v21 = vadd.f32 %v366_v25, %v312_v17  ;;  %v1256_v28 = vadd.f32 -1.0, %v1312_v29  ;;  %v967_v29 = vld [vmem:[#allocation2 + $0x1d8] sm:$0x3f] }
  0xd2   :  { %v520_v27 = vmul.f32 1.442695, %v517_v20  ;;  %vm519_vm13 = vcmp.gt.f32.partialorder %v517_v20, 0.0 }
  0xd3   :  { %1250 = vmatmul.msk.f32.vlgmr.msra.gmra.mxu3 %vm66_vm1, %v367_v21  ;;  %v565_v58 = vmul.f32 1.6732632, %v1256_v28  ;;  %v1276_v21 = vld [vmem:[%s1768_s6 + $0x8] sm:$0xff]  ;;  %v966_v28 = vld [vmem:[#allocation2 + $0x1d0] sm:$0xff] }
  0xd4   :  { %1313 = vpow2.f32 %v520_v27  ;;  %1267 = vmatpush.msk.msra.mxu3 %vm282_vm0, %v737_v23  ;;  %v1141_v23 = vld [vmem:[#allocation2 + $0x278] sm:$0x3f]  ;;  %v1140_v27 = vld [vmem:[#allocation2 + $0x270] sm:$0xff] }
  0xd5   :  { %v566_v59 = vsel %vm561_vm12, %v559_v6, %v565_v58  ;;  %v1051_v6 = vld [vmem:[#allocation2 + $0x200] sm:$0xff]  ;;  %v1139_v58 = vld [vmem:[#allocation2 + $0x268] sm:$0xff] }
  0xd6   :  { %v567_v39 = vmul.f32 1.050701, %v566_v59  ;;  %754 = vmatpush.msra.mxu3 %v736_v36 }
  0xd8   :  { %755 = vmatpush.msra.mxu3 %v735_v44 }
  0xda   :  { %v1314_v33 = vpop.eup %1313  ;;  %756 = vmatpush.msra.mxu3 %v734_v46  ;;  %v1302_v46 = vld [vmem:[%s1770_s8 + $0x6] ss:$0 sm:$0xff] }
  0xdb   :  { %v1253_v34 = vadd.f32 -1.0, %v1314_v33  ;;  %v965_v33 = vld [vmem:[#allocation2 + $0x1c8] sm:$0xff] }
  0xdd   :  { %v523_v37 = vmul.f32 1.6732632, %v1253_v34  ;;  %v1138_v34 = vld [vmem:[#allocation2 + $0x260] sm:$0xff] }
  0xdf   :  { %v524_v38 = vsel %vm519_vm13, %v517_v20, %v523_v37  ;;  %v964_v37 = vld [vmem:[#allocation2 + $0x1c0] sm:$0xff] }
  0xe0   :  { %v525_v35 = vmul.f32 1.050701, %v524_v38  ;;  %v1136_v38 = vld [vmem:[#allocation2 + $0x258] sm:$0x3f] }
  0xe2   :  { %v568_v60 = vadd.f32 %v567_v39, %v525_v35  ;;  %v1135_v39 = vld [vmem:[#allocation2 + $0x250] sm:$0xff]  ;;  %v1134_v35 = vld [vmem:[#allocation2 + $0x248] sm:$0xff] }
  0xe4   :  { %570 = vst.msk [vmem:[%s1772_s10] sm:$0x3] %vm569_vm14, %v568_v60  ;;  %1260 = vmatmul.msk.f32.vlgmr.msrb.gmra.mxu3 %vm66_vm1, %v568_v60  ;;  %v1133_v60 = vld [vmem:[#allocation2 + $0x240] sm:$0xff] }
 0x156   :  { %v428_v47 = vpop.f32.mrf.mxu3 }
 0x157   :  { %v429_v57 = vadd.f32 %v428_v47, %v402_v55 }
 0x159   :  { %v1678_v50 = vadd.f32 %v1300_v42, %v429_v57 }
 0x15b   :  { %1264 = vmatmul.msk.f32.vlgmr.msra.gmra.mxu1 %vm66_vm1, %v1678_v50  ;;  %1268 = vmatmul.msk.f32.vlgmr.msra.gmra.mxu3 %vm66_vm1, %v1678_v50 }
 0x163   :  { %1272 = vmatmul.msk.f32.vlgmr.msrb.gmra.mxu1 %vm66_vm1, %v1678_v50 }
 0x167   :  { %v631_v62 = vpop.f32.mrf.mxu3 }
 0x168   :  { %v632_v51 = vadd.f32 %v631_v62, %v605_v61 }
 0x16a   :  { %v1689_v63 = vadd.f32 %v1301_v30, %v632_v51 }
 0x16c   :  { %1261 = vmatpush.msk.msra.mxu0 %vm642_vm15, %v1689_v63 }
 0x16d   :  { %1262 = vmatmul.msk.f32.vlgmr.msra.gmra.mxu0 %vm638_vm2, %v637_v54 }
 0x16e   :  { %1269 = vmatpush.msk.msrb.mxu0 %vm282_vm0, %v732_v32 }
 0x170   :  { %777 = vmatpush.msrb.mxu0 %v731_v2 }
 0x172   :  { %778 = vmatpush.msrb.mxu0 %v730_v4 }
 0x174   :  { %779 = vmatpush.msrb.mxu0 %v729_v7  ;;  %v1058_v7 = vld [vmem:[#allocation2 + $0x230] sm:$0xff] }
 0x1d8   :  { %v699_v12 = vpop.f32.mrf.mxu1 }
 0x1de   :  { %v758_v40 = vpop.f32.mrf.mxu3 }
 0x1e0   :  { %v814_v25 = vpop.f32.mrf.mxu1 }
 0x1ea   :  { %v663_v8 = vpop.f32.mrf.mxu0 }
 0x1eb   :  { %1266 = vmatmul.msk.f32.vlgmr.msra.gmra.mxu2 %vm66_vm1, %v663_v8  ;;  %1270 = vmatmul.msk.f32.vlgmr.msrb.gmra.mxu0 %vm66_vm1, %v663_v8 }
 0x1ec   :  { %958 = vmatpush.msra.mxu2 %v1678_v50 }
 0x1f3   :  { %1274 = vmatmul.msk.f32.vlgmr.msrb.gmra.mxu2 %vm66_vm1, %v663_v8  ;;  %v1056_v8 = vld [vmem:[#allocation2 + $0x220] sm:$0xff] }
 0x1f4   :  { %1286 = vmatpush.msk.msrb.mxu2 %vm282_vm0, %v1054_v56 }
 0x1f6   :  { %1099 = vmatpush.msrb.mxu2 %v1053_v10 }
 0x1f8   :  { %1100 = vmatpush.msrb.mxu2 %v1052_v11 }
 0x1fa   :  { %1101 = vmatpush.msrb.mxu2 %v1051_v6 }
 0x1fb   :  { %1279 = vmatmul.msk.f32.vlgmr.msra.gmra.mxu2 %vm841_vm3, %v1705_v9 }
 0x203   :  { %1287 = vmatmul.msk.f32.vlgmr.msrb.gmra.mxu2 %vm66_vm1, %v1689_v63 }
 0x268   :  { %v781_v36 = vpop.f32.mrf.mxu0 }
 0x269   :  { %v782_v41 = vadd.f32 %v781_v36, %v758_v40 }
 0x26e   :  { %v725_v15 = vpop.f32.mrf.mxu2 }
 0x26f   :  { %v726_v16 = vadd.f32 %v725_v15, %v699_v12 }
 0x271   :  { %860 = vmatpush.msrb.mxu3 %v726_v16 }
 0x272   :  { %1275 = vmatmul.msk.f32.vlgmr.msrb.gmra.mxu3 %vm841_vm3, %v840_v22 }
 0x273   :  { %1280 = vmatpush.msk.msra.mxu3 %vm282_vm0, %v972_v13 }
 0x275   :  { %992 = vmatpush.msra.mxu3 %v971_v26 }
 0x276   :  { %v837_v17 = vpop.f32.mrf.mxu2 }
 0x277   :  { %v838_v20 = vadd.f32 %v837_v17, %v814_v25  ;;  %993 = vmatpush.msra.mxu3 %v970_v14  ;;  %v1306_v25 = vld [vmem:[%s1770_s8 + $0x8] ss:$0 sm:$0xff] }
 0x279   :  { %885 = vmatpush.msra.mxu0 %v838_v20  ;;  %994 = vmatpush.msra.mxu3 %v969_v18 }
 0x27a   :  { %1277 = vmatmul.msk.f32.vlgmr.msra.gmra.mxu0 %vm841_vm3, %v1276_v21 }
 0x27b   :  { %1288 = vmatpush.msk.msrb.mxu3 %vm282_vm0, %v1141_v23  ;;  %1282 = vmatpush.msk.msrb.mxu0 %vm282_vm0, %v967_v29 }
 0x27d   :  { %1158 = vmatpush.msrb.mxu3 %v1140_v27  ;;  %1017 = vmatpush.msrb.mxu0 %v966_v28 }
 0x27e   :  { %v1722_v59 = vpop.f32.mrf.mxu2 }
 0x27f   :  { %1159 = vmatpush.msrb.mxu3 %v1139_v58  ;;  %1018 = vmatpush.msrb.mxu0 %v965_v33 }
 0x280   :  { %1281 = vmatmul.msk.f32.vlgmr.msra.gmra.mxu3 %vm66_vm1, %v1722_v59 }
 0x281   :  { %1160 = vmatpush.msrb.mxu3 %v1138_v34  ;;  %1019 = vmatpush.msrb.mxu0 %v964_v37 }
 0x282   :  { %1283 = vmatmul.msk.f32.vlgmr.msrb.gmra.mxu0 %vm66_vm1, %v1689_v63 }
 0x283   :  { %1290 = vmatpush.msk.msra.mxu0 %vm282_vm0, %v1136_v38 }
 0x285   :  { %1181 = vmatpush.msra.mxu0 %v1135_v39 }
 0x286   :  { %v1103_v17 = vpop.f32.mrf.mxu2 }
 0x287   :  { %1182 = vmatpush.msra.mxu0 %v1134_v35 }
 0x288   :  { %1289 = vmatmul.msk.f32.vlgmr.msrb.gmra.mxu3 %vm66_vm1, %v1722_v59 }
 0x289   :  { %1183 = vmatpush.msra.mxu0 %v1133_v60 }
 0x28a   :  { %1291 = vmatmul.msk.f32.vlgmr.msra.gmra.mxu0 %vm66_vm1, %v1689_v63 }
 0x2f5   :  { %v862_v44 = vpop.f32.mrf.mxu3 }
 0x2f6   :  { %v863_v45 = vadd.f32 %v862_v44, %v782_v41  ;;  %v1305_v41 = vld [vmem:[%s1770_s8 + $0xa] ss:$0 sm:$0xff] }
 0x2f7   :  { %v887_v48 = vpop.f32.mrf.mxu0 }
 0x2f8   :  { %v890_v49 = vadd.f32 %v887_v48, %v863_v45  ;;  %v1304_v48 = vld [vmem:[%s1770_s8 + $0x9] ss:$0 sm:$0xff] }
 0x2fa   :  { %v893_v31 = vadd.f32 %v1302_v46, %v890_v49 }
 0x2fc   :  { %v894_v52 = vmax.f32 %v893_v31, 0.0 }
 0x2fe   :  { %v895_v19 = vand.u32 2147483647, %v894_v52  ;;  %vm915_vm8 = vcmp.ge.f32.partialorder %v894_v52, 0.0 }
 0x2ff   :  { %v1021_v10 = vpop.f32.mrf.mxu0 }
 0x300   :  { %v896_v53 = vsub.f32 0.0, %v895_v19 }
 0x302   :  { %v897_v55 = vmul.f32 1.442695, %v896_v53 }
 0x303   :  { %v996_v56 = vpop.f32.mrf.mxu3 }
 0x304   :  { %1315 = vpow2.f32 %v897_v55  ;;  %v1022_v11 = vadd.f32 %v1021_v10, %v996_v56 }
 0x307   :  { %v1185_v45 = vpop.f32.mrf.mxu0 }
 0x30a   :  { %v1316_v42 = vpop.eup %1315 }
 0x30b   :  { %v899_v47 = vadd.f32 1.0, %v1316_v42  ;;  %v1162_v36 = vpop.f32.mrf.mxu3 }
 0x30c   :  { %v1186_v46 = vadd.f32 %v1185_v45, %v1162_v36 }
 0x30d   :  { %1317 = vrcp.f32 %v899_v47  ;;  %v911_v62 = vand.u32 2147483648, %v899_v47  ;;  %v909_v54 = vand.u32 2147483647, %v899_v47  ;;  %vm905_vm5 = vweird.f32 %v899_v47 }
 0x30e   :  { %v1190_v19 = vadd.f32 %v1304_v48, %v1186_v46 }
 0x30f   :  { %v912_v0 = vor.u32 1.1754944e-38, %v911_v62  ;;  %vm910_vm7 = vcmp.eq.f32.partialorder %v909_v54, 8.507059e+37 }
 0x313   :  { %v1318_v57 = vpop.eup %1317 }
 0x314   :  { %v901_v61 = vmul.f32 %v1318_v57, %v899_v47  ;;  %vm906_vm4 = vweird.f32 %v1318_v57 }
 0x315   :  { %vm907_vm6 = vmor %vm905_vm5, %vm906_vm4 }
 0x316   :  { %v902_v30 = vsub.f32 1.0, %v901_v61 }
 0x318   :  { %v903_v51 = vmul.f32 %v1318_v57, %v902_v30 }
 0x31a   :  { %v904_v43 = vadd.f32 %v1318_v57, %v903_v51 }
 0x31c   :  { %v908_v32 = vsel %vm907_vm6, %v1318_v57, %v904_v43 }
 0x31d   :  { %v913_v1 = vsel %vm910_vm7, %v912_v0, %v908_v32 }
 0x31e   :  { %v916_v2 = vsub.f32 1.0, %v913_v1 }
 0x320   :  { %v917_v3 = vsel %vm915_vm8, %v913_v1, %v916_v2 }
 0x321   :  { %v919_v4 = vmul.f32 %v917_v3, %v1678_v50  ;;  %v1303_v50 = vld [vmem:[%s1770_s8 + $0x7] ss:$0 sm:$0xff] }
 0x322   :  { %v1026_v6 = vadd.f32 %v1303_v50, %v1022_v11 }
 0x323   :  { %938 = vmatpush.msra.mxu1 %v919_v4 }
 0x324   :  { %1278 = vmatmul.msk.f32.vlgmr.msra.gmra.mxu1 %vm841_vm3, %v1705_v9  ;;  %v1027_v9 = vand.u32 2147483647, %v1026_v6  ;;  %vm1047_vm11 = vcmp.ge.f32.partialorder %v1026_v6, 0.0 }
 0x325   :  { %1284 = vmatpush.msk.msrb.mxu1 %vm282_vm0, %v1059_v5 }
 0x326   :  { %v1028_v12 = vsub.f32 0.0, %v1027_v9 }
 0x327   :  { %1076 = vmatpush.msrb.mxu1 %v1058_v7 }
 0x328   :  { %v1029_v15 = vmul.f32 1.442695, %v1028_v12 }
 0x329   :  { %1077 = vmatpush.msrb.mxu1 %v1057_v24 }
 0x32a   :  { %1319 = vpow2.f32 %v1029_v15 }
 0x32b   :  { %1078 = vmatpush.msrb.mxu1 %v1056_v8 }
 0x32c   :  { %1285 = vmatmul.msk.f32.vlgmr.msrb.gmra.mxu1 %vm66_vm1, %v1722_v59 }
 0x330   :  { %v1320_v16 = vpop.eup %1319 }
 0x331   :  { %v1031_v22 = vadd.f32 1.0, %v1320_v16 }
 0x333   :  { %1321 = vrcp.f32 %v1031_v22  ;;  %v1043_v34 = vand.u32 2147483648, %v1031_v22  ;;  %vm1037_vm1 = vweird.f32 %v1031_v22  ;;  %v1041_v59 = vand.u32 2147483647, %v1031_v22 }
 0x335   :  { %v1044_v38 = vor.u32 1.1754944e-38, %v1043_v34  ;;  %vm1042_vm10 = vcmp.eq.f32.partialorder %v1041_v59, 8.507059e+37 }
 0x339   :  { %v1322_v26 = vpop.eup %1321 }
 0x33a   :  { %v1033_v14 = vmul.f32 %v1322_v26, %v1031_v22  ;;  %vm1038_vm0 = vweird.f32 %v1322_v26 }
 0x33b   :  { %vm1039_vm9 = vmor %vm1037_vm1, %vm1038_vm0 }
 0x33c   :  { %v1034_v21 = vsub.f32 1.0, %v1033_v14 }
 0x33e   :  { %v1035_v27 = vmul.f32 %v1322_v26, %v1034_v21 }
 0x340   :  { %v1036_v33 = vadd.f32 %v1322_v26, %v1035_v27 }
 0x342   :  { %v1040_v37 = vsel %vm1039_vm9, %v1322_v26, %v1036_v33 }
 0x343   :  { %v1045_v35 = vsel %vm1042_vm10, %v1044_v38, %v1040_v37 }
 0x344   :  { %v1048_v40 = vsub.f32 1.0, %v1045_v35 }
 0x346   :  { %v1049_v44 = vsel %vm1047_vm11, %v1045_v35, %v1048_v40 }
 0x347   :  { %v1193_v31 = vmul.f32 %v1305_v41, %v1049_v44 }
 0x349   :  { %v1194_v42 = vadd.f32 %v1193_v31, %v1190_v19 }
 0x3a1   :  { %v1745_v13 = vpop.f32.mrf.mxu1 }
 0x3a9   :  { %v1080_v18 = vpop.f32.mrf.mxu1 }
 0x3aa   :  { %v1104_v20 = vadd.f32 %v1103_v17, %v1080_v18 }
 0x3ac   :  { %v1108_v23 = vadd.f32 %v1306_v25, %v1104_v20 }
 0x3ae   :  { %v1109_v29 = vand.u32 2147483647, %v1108_v23  ;;  %vm1129_vm3 = vcmp.ge.f32.partialorder %v1108_v23, 0.0 }
 0x3b0   :  { %v1110_v28 = vsub.f32 0.0, %v1109_v29 }
 0x3b2   :  { %v1111_v58 = vmul.f32 1.442695, %v1110_v28 }
 0x3b4   :  { %1323 = vpow2.f32 %v1111_v58 }
 0x3ba   :  { %v1324_v39 = vpop.eup %1323 }
 0x3bb   :  { %v1113_v60 = vadd.f32 1.0, %v1324_v39 }
 0x3bd   :  { %1325 = vrcp.f32 %v1113_v60  ;;  %v1125_v55 = vand.u32 2147483648, %v1113_v60  ;;  %v1123_v57 = vand.u32 2147483647, %v1113_v60  ;;  %vm1119_vm13 = vweird.f32 %v1113_v60 }
 0x3be   :  { %1327 = vtanh.f32 %v1194_v42 }
 0x3bf   :  { %v1126_v30 = vor.u32 1.1754944e-38, %v1125_v55  ;;  %vm1124_vm2 = vcmp.eq.f32.partialorder %v1123_v57, 8.507059e+37 }
 0x3c3   :  { %v1326_v49 = vpop.eup %1325 }
 0x3c4   :  { %v1115_v52 = vmul.f32 %v1326_v49, %v1113_v60  ;;  %vm1120_vm12 = vweird.f32 %v1326_v49  ;;  %v1328_v32 = vpop.eup %1327 }
 0x3c5   :  { %vm1121_vm15 = vmor %vm1119_vm13, %vm1120_vm12 }
 0x3c6   :  { %v1116_v53 = vsub.f32 1.0, %v1115_v52 }
 0x3c8   :  { %v1117_v47 = vmul.f32 %v1326_v49, %v1116_v53 }
 0x3ca   :  { %v1118_v61 = vadd.f32 %v1326_v49, %v1117_v47 }
 0x3cc   :  { %v1122_v62 = vsel %vm1121_vm15, %v1326_v49, %v1118_v61 }
 0x3cd   :  { %v1127_v51 = vsel %vm1124_vm2, %v1126_v30, %v1122_v62 }
 0x3ce   :  { %v1130_v54 = vsub.f32 1.0, %v1127_v51 }
 0x3d0   :  { %v1131_v43 = vsel %vm1129_vm3, %v1127_v51, %v1130_v54 }
 0x3d1   :  { %v1196_v0 = vsub.f32 1.0, %v1131_v43 }
 0x3d3   :  { %v1197_v1 = vmul.f32 %v1328_v32, %v1196_v0 }
 0x3d5   :  { %v1198_v2 = vand.u32 2147483647, %v1197_v1  ;;  %vm1218_vm8 = vcmp.ge.f32.partialorder %v1197_v1, 0.0 }
 0x3d7   :  { %v1199_v3 = vsub.f32 0.0, %v1198_v2 }
 0x3d9   :  { %v1200_v4 = vmul.f32 1.442695, %v1199_v3 }
 0x3db   :  { %1329 = vpow2.f32 %v1200_v4 }
 0x3e1   :  { %v1330_v5 = vpop.eup %1329 }
 0x3e2   :  { %v1202_v7 = vadd.f32 1.0, %v1330_v5 }
 0x3e4   :  { %1331 = vrcp.f32 %v1202_v7  ;;  %v1214_v10 = vand.u32 2147483648, %v1202_v7  ;;  %v1212_v50 = vand.u32 2147483647, %v1202_v7  ;;  %vm1208_vm5 = vweird.f32 %v1202_v7 }
 0x3e6   :  { %v1215_v9 = vor.u32 1.1754944e-38, %v1214_v10  ;;  %vm1213_vm7 = vcmp.eq.f32.partialorder %v1212_v50, 8.507059e+37 }
 0x3ea   :  { %v1332_v24 = vpop.eup %1331 }
 0x3eb   :  { %v1204_v8 = vmul.f32 %v1332_v24, %v1202_v7  ;;  %vm1209_vm4 = vweird.f32 %v1332_v24 }
 0x3ec   :  { %vm1210_vm6 = vmor %vm1208_vm5, %vm1209_vm4 }
 0x3ed   :  { %v1205_v56 = vsub.f32 1.0, %v1204_v8 }
 0x3ef   :  { %v1206_v11 = vmul.f32 %v1332_v24, %v1205_v56 }
 0x3f1   :  { %v1207_v6 = vadd.f32 %v1332_v24, %v1206_v11 }
 0x3f3   :  { %v1211_v12 = vsel %vm1210_vm6, %v1332_v24, %v1207_v6 }
 0x3f4   :  { %v1216_v15 = vsel %vm1213_vm7, %v1215_v9, %v1211_v12 }
 0x3f5   :  { %v1219_v16 = vsub.f32 1.0, %v1216_v15 }
 0x3f7   :  { %v1220_v22 = vsel %vm1218_vm8, %v1216_v15, %v1219_v16 }
 0x3f8   :  { %v1221_v26 = vsub.f32 1.0, %v1220_v22 }
 0x3fa   :  { %v1222_v14 = vmul.f32 %v1221_v26, %v1689_v63 }
 0x3fc   :  { %v1223_v25 = vadd.f32 %v1222_v14, %v1745_v13 }
 0x3fe   :  { %v1225_v17 = vmul.f32 1.442695, %v1223_v25  ;;  %vm1224_vm0 = vcmp.gt.f32.partialorder %v1223_v25, 0.0 }
 0x400   :  { %1333 = vpow2.f32 %v1225_v17 }
 0x406   :  { %v1334_v18 = vpop.eup %1333 }
 0x407   :  { %v1292_v20 = vadd.f32 -1.0, %v1334_v18 }
 0x409   :  { %v1228_v21 = vmul.f32 1.6732632, %v1292_v20 }
 0x40b   :  { %v1229_v23 = vsel %vm1224_vm0, %v1223_v25, %v1228_v21 }
 0x40c   :  { %v1230_v29 = vmul.f32 1.050701, %v1229_v23 }
 0x40e   :  { %1231 = vst.msk [vmem:[%s1771_s9] sm:$0x3] %vm569_vm14, %v1230_v29 }
 0x40f   :  { %1240 = vsyncpa [#allocation3], 1 }

</bundles_post_ra>
